<compile_context>
chip_gen: v7x
topology: tpu7x:2x2x1
jax: 0.10.0
libtpu: 0.0.40
codegen_flags: <defaults>
</compile_context>

<pallas_src>
import functools

import jax
import jax.numpy as jnp
from jax.experimental import pallas as pl
from jax.experimental.pallas import tpu as pltpu


# ----------------------------------------------------------------------------
# Kernel
# ----------------------------------------------------------------------------
def actor_rnn_v2_kernel(
    x_ref,        # (T, bm, D)    bf16  time-major input (D unpadded)
    wi0_ref,      # (D, 4H)       bf16  layer-0 input weights (gate order i,f,o,g)
    b0_ref,       # (1, 4H)       f32   b_ih0 + b_hh0
    wh0_ref,      # (H, 4H)       bf16  layer-0 recurrent weights
    w1_ref,       # (2H, 4H)      bf16  fused [W_ih1; W_hh1]
    b1_ref,       # (1, 4H)       f32
    w2_ref,       # (2H, 4H)      bf16  fused [W_ih2; W_hh2]
    b2_ref,       # (1, 4H)       f32
    wmu_ref,      # (H, Ap)       bf16  mu head (action dim padded to Ap=128)
    bmu_ref,      # (1, Ap)       f32
    out_ref,      # (bm, Ap)      f32   softmax probs (lane-dense, padded)
    xproj_ref,    # (T, bm, 4H)   f32   VMEM scratch: off-chain layer-0 x-proj
    *, max_action: float, n_act: int,
):
    T, B, _ = x_ref.shape
    H = wh0_ref.shape[0]
    H4 = 4 * H
    Ap = out_ref.shape[-1]
    f32, bf16 = jnp.float32, jnp.bfloat16

    # Hoist bias broadcasts out of the loops (JAX does not CSE broadcasts).
    b0 = jnp.broadcast_to(b0_ref[...], (B, H4))
    b1 = jnp.broadcast_to(b1_ref[...], (B, H4))
    b2 = jnp.broadcast_to(b2_ref[...], (B, H4))

    # ---- Off-chain prologue: layer-0 input projection for every timestep.
    # Independent of the recurrence, so it never sits on the serial chain.
    for t in range(T):
        xproj_ref[t] = (
            jnp.dot(x_ref[t], wi0_ref[...], preferred_element_type=f32) + b0
        )

    def cell_update(gates, c):
        # gates: (B, 4H) f32, tightly packed columns [i | f | o | g].
        # 64-lane slices are cheap VPU/XLU work; state math stays f32 (v5e).
        i = jax.nn.sigmoid(gates[:, 0:H])
        f = jax.nn.sigmoid(gates[:, H:2 * H])
        o = jax.nn.sigmoid(gates[:, 2 * H:3 * H])
        g = jnp.tanh(gates[:, 3 * H:4 * H])
        c_new = f * c + i * g
        h_new = o * jnp.tanh(c_new)
        return h_new, c_new

    z = jnp.zeros((B, H), f32)
    h0, c0, h1, c1, h2, c2 = z, z, z, z, z, z

    # T is small & static -> trace-time unrolled straight-line code.  Weights
    # are re-read from VMEM refs every cell (never hoisted as live values).
    # TODO(synk): at large bm switch to lax.fori_loop(..., unroll=True) to
    # bound live ranges, and hold each layer's RHS in MXU staging registers
    # (pltpu.matmul_push_rhs / matmul_acc_lhs / matmul_pop) across timesteps.
    # TODO(synk): on v6e/v7x the gate nonlinearities could run in bf16 (EUP
    # bf16); kept f32 so the same kernel is numerically safe on v5e.
    for t in range(T):
        # Layer 0: x-contribution precomputed; on-chain matmul K = H only.
        g0 = xproj_ref[t] + jnp.dot(h0.astype(bf16), wh0_ref[...],
                                    preferred_element_type=f32)
        h0, c0 = cell_update(g0, c0)

        # Layers 1/2: one fused [h_below, h_self] @ W matmul (K = 2H = 128).
        xh1 = jnp.concatenate([h0, h1], axis=-1).astype(bf16)
        g1 = jnp.dot(xh1, w1_ref[...], preferred_element_type=f32) + b1
        h1, c1 = cell_update(g1, c1)

        xh2 = jnp.concatenate([h1, h2], axis=-1).astype(bf16)
        g2 = jnp.dot(xh2, w2_ref[...], preferred_element_type=f32) + b2
        h2, c2 = cell_update(g2, c2)

    # Head: mu = max_action * tanh(Linear(h2)); softmax over the real actions.
    # Head math stays f32 (the -1e30 mask would overflow in bf16).
    mu = jnp.dot(h2.astype(bf16), wmu_ref[...],
                 preferred_element_type=f32) + bmu_ref[...]
    mu = max_action * jnp.tanh(mu)
    col = jax.lax.broadcasted_iota(jnp.int32, (B, Ap), 1)
    mu = jnp.where(col < n_act, mu, -1e30)                 # mask padded lanes
    m = jnp.max(mu, axis=-1, keepdims=True)
    e = jnp.exp(mu - m)
    denom = jnp.sum(e, axis=-1, keepdims=True)
    inv = pl.reciprocal(denom, approx=True)                # EUP slot, free-ish
    out_ref[...] = (e * inv).astype(out_ref.dtype)


# ----------------------------------------------------------------------------
# Wrapper (layout plumbing only; the hot path runs in the kernel)
# ----------------------------------------------------------------------------
def actor_rnn_v2_forward(actor_input, kp, *, max_action, action_dim,
                         batch_block=None):
    if actor_input.ndim == 2:                     # mirror `.unsqueeze(-2)`
        actor_input = actor_input[:, None, :]
    B, T, D = actor_input.shape
    H = kp["wh0"].shape[0]
    Ap = kp["wmu"].shape[1]

    # Batch tiling.  Default: one grid step (v5e/v6e: single TC, avoid per-step
    # overhead).  On v7x pass batch_block so grid >= 2 and both TCs are used.
    # bm is a multiple of 16 (bf16 sublane tile); B is zero-padded up to a
    # multiple of bm so there is never a ragged last block.
    if batch_block is None or batch_block >= B:
        bm = B
    else:
        bm = max(16, (int(batch_block) // 16) * 16)
    B_pad = pl.cdiv(B, bm) * bm
    grid = (B_pad // bm,)

    # Time-major bf16 input (x_ref[t] is a free leading-axis ref index).
    x = jnp.transpose(actor_input, (1, 0, 2)).astype(jnp.bfloat16)   # (T, B, D)
    if B_pad != B:
        x = jnp.pad(x, ((0, 0), (0, B_pad - B), (0, 0)))

    # Weights/biases replicated across the batch grid.
    # TODO(synk): pipeline_mode=pl.Buffered(1) on these constant-index specs
    # would reclaim the needless double-buffer VMEM when bm is pushed high.
    def rep(a):
        return pl.BlockSpec(a.shape, lambda i, nd=a.ndim: (0,) * nd)

    in_specs = [
        pl.BlockSpec((T, bm, D), lambda i: (0, i, 0)),
        rep(kp["wi0"]), rep(kp["b0"]), rep(kp["wh0"]),
        rep(kp["w1"]), rep(kp["b1"]),
        rep(kp["w2"]), rep(kp["b2"]),
        rep(kp["wmu"]), rep(kp["bmu"]),
    ]

    out_padded = pl.pallas_call(
        functools.partial(actor_rnn_v2_kernel,
                          max_action=float(max_action), n_act=int(action_dim)),
        out_shape=jax.ShapeDtypeStruct((B_pad, Ap), jnp.float32),
        grid=grid,
        in_specs=in_specs,
        out_specs=pl.BlockSpec((bm, Ap), lambda i: (i, 0)),
        scratch_shapes=[pltpu.VMEM((T, bm, 4 * H), jnp.float32)],
        compiler_params=pltpu.CompilerParams(
            dimension_semantics=("parallel",)),
    )(x, kp["wi0"], kp["b0"], kp["wh0"], kp["w1"], kp["b1"],
      kp["w2"], kp["b2"], kp["wmu"], kp["bmu"])

    return out_padded[:B, :action_dim]


# ----------------------------------------------------------------------------
# Parameter generation (PyTorch layout) + packing into the kernel layout
# ----------------------------------------------------------------------------
def init_params(key, input_dim, hidden, action_dim, num_layers=3):
    """PyTorch-style raw LSTM/Linear parameters, U(-1/sqrt(H), 1/sqrt(H))."""
    k = 1.0 / jnp.sqrt(jnp.float32(hidden))
    raw = {"w_ih": [], "w_hh": [], "b_ih": [], "b_hh": []}
    for l in range(num_layers):
        in_dim = input_dim if l == 0 else hidden
        key, k1, k2, k3, k4 = jax.random.split(key, 5)
        raw["w_ih"].append(jax.random.uniform(k1, (4 * hidden, in_dim), jnp.float32, -k, k))
        raw["w_hh"].append(jax.random.uniform(k2, (4 * hidden, hidden), jnp.float32, -k, k))
        raw["b_ih"].append(jax.random.uniform(k3, (4 * hidden,), jnp.float32, -k, k))
        raw["b_hh"].append(jax.random.uniform(k4, (4 * hidden,), jnp.float32, -k, k))
    key, k5, k6 = jax.random.split(key, 3)
    raw["w_mu"] = jax.random.uniform(k5, (action_dim, hidden), jnp.float32, -k, k)
    raw["b_mu"] = jax.random.uniform(k6, (action_dim,), jnp.float32, -k, k)
    return raw


def pack_params(raw, D, H, A, Ap=128):
    """Pack PyTorch (i,f,g,o) weights into tight, gate-permuted (i,f,o,g)
    kernel weights: no gate/K zero padding; only the head's action dim is
    padded to 128 lanes for a lane-dense output."""
    bf16, f32 = jnp.bfloat16, jnp.float32

    def perm(w):  # reorder torch gate rows (i, f, g, o) -> kernel (i, f, o, g)
        return jnp.concatenate(
            [w[0:H], w[H:2 * H], w[3 * H:4 * H], w[2 * H:3 * H]], axis=0)

    def fused(l):  # [W_ih.T; W_hh.T] -> (2H, 4H)
        return jnp.concatenate(
            [perm(raw["w_ih"][l]).T, perm(raw["w_hh"][l]).T], axis=0).astype(bf16)

    def bias(l):
        return perm(raw["b_ih"][l] + raw["b_hh"][l])[None, :].astype(f32)

    kp = {
        "wi0": perm(raw["w_ih"][0]).T.astype(bf16),   # (D, 4H)
        "wh0": perm(raw["w_hh"][0]).T.astype(bf16),   # (H, 4H)
        "b0": bias(0),
        "w1": fused(1), "b1": bias(1),
        "w2": fused(2), "b2": bias(2),
        "wmu": jnp.pad(raw["w_mu"].T, ((0, 0), (0, Ap - A))).astype(bf16),
        "bmu": jnp.pad(raw["b_mu"], (0, Ap - A))[None, :].astype(f32),
    }
    return kp


# ----------------------------------------------------------------------------
# Pure-JAX f32 reference of the same math (PyTorch semantics) for validation
# ----------------------------------------------------------------------------
def _reference_forward(actor_input, raw, max_action):
    if actor_input.ndim == 2:
        actor_input = actor_input[:, None, :]
    B, T, _ = actor_input.shape
    H = raw["w_hh"][0].shape[1]
    hs = [jnp.zeros((B, H), jnp.float32) for _ in range(3)]
    cs = [jnp.zeros((B, H), jnp.float32) for _ in range(3)]
    for t in range(T):
        inp = actor_input[:, t, :]
        for l in range(3):
            g = (inp @ raw["w_ih"][l].T + hs[l] @ raw["w_hh"][l].T
                 + raw["b_ih"][l] + raw["b_hh"][l])
            i = jax.nn.sigmoid(g[:, 0:H])
            f = jax.nn.sigmoid(g[:, H:2 * H])
            gg = jnp.tanh(g[:, 2 * H:3 * H])
            o = jax.nn.sigmoid(g[:, 3 * H:4 * H])
            cs[l] = f * cs[l] + i * gg
            hs[l] = o * jnp.tanh(cs[l])
            inp = hs[l]
    mu = hs[2] @ raw["w_mu"].T + raw["b_mu"]
    mu = max_action * jnp.tanh(mu)
    return jax.nn.softmax(mu, axis=-1)


if __name__ == "__main__":
    B, T, D, H, A = 2, 8, 16, 64, 5
    max_action = 1.0

    key = jax.random.PRNGKey(0)
    key, pk, xk, xk2 = jax.random.split(key, 4)
    raw = init_params(pk, input_dim=D, hidden=H, action_dim=A)
    kp = pack_params(raw, D, H, A)

    # --- Test 1: small batch, single grid step (default path). ---------------
    actor_input = jax.random.normal(xk, (B, T, D), jnp.float32)
    out = actor_rnn_v2_forward(actor_input, kp, max_action=max_action, action_dim=A)
    out = jax.block_until_ready(out)
    ref = _reference_forward(actor_input, raw, max_action)
    assert out.shape == (B, A)
    assert bool(jnp.all(jnp.isfinite(out)))
    # approx reciprocal + bf16 MXU operands -> loose-ish tolerances.
    assert jnp.allclose(jnp.sum(out, axis=-1), 1.0, atol=1e-2)
    assert jnp.allclose(out, ref, atol=2e-2, rtol=2e-2)

    # --- Test 2: ragged batch + batch grid (padded, parallel grid steps). ----
    B2 = 33
    actor_input2 = jax.random.normal(xk2, (B2, T, D), jnp.float32)
    out2 = actor_rnn_v2_forward(actor_input2, kp, max_action=max_action,
                                action_dim=A, batch_block=16)
    out2 = jax.block_until_ready(out2)
    ref2 = _reference_forward(actor_input2, raw, max_action)
    assert out2.shape == (B2, A)
    assert bool(jnp.all(jnp.isfinite(out2)))
    assert jnp.allclose(jnp.sum(out2, axis=-1), 1.0, atol=1e-2)
    assert jnp.allclose(out2, ref2, atol=2e-2, rtol=2e-2)

    print("KERNEL_OK")
</pallas_src>

<mosaic_0001>
module attributes {stable_mosaic.version = 11 : i64} {
  func.func @actor_rnn_v2_kernel(%arg0: i32, %arg1: memref<8x2x16xbf16, #tpu.memory_space<vmem>>, %arg2: memref<16x256xbf16, #tpu.memory_space<vmem>>, %arg3: memref<1x256xf32, #tpu.memory_space<vmem>>, %arg4: memref<64x256xbf16, #tpu.memory_space<vmem>>, %arg5: memref<128x256xbf16, #tpu.memory_space<vmem>>, %arg6: memref<1x256xf32, #tpu.memory_space<vmem>>, %arg7: memref<128x256xbf16, #tpu.memory_space<vmem>>, %arg8: memref<1x256xf32, #tpu.memory_space<vmem>>, %arg9: memref<64x128xbf16, #tpu.memory_space<vmem>>, %arg10: memref<1x128xf32, #tpu.memory_space<vmem>>, %arg11: memref<2x128xf32, #tpu.memory_space<vmem>>, %arg12: memref<8x2x256xf32, #tpu.memory_space<vmem>>) attributes {dimension_semantics = [#tpu.dimension_semantics<parallel>], iteration_bounds = array<i64: 1>, scalar_prefetch = 0 : i64, scratch_operands = 1 : i64, tpu.core_type = #tpu.core_type<tc>, window_params = [{transform_indices = @transform_0, window_bounds = array<i64: 8, 2, 16>}, {pipeline_mode = #tpu.pipeline_mode<synchronous>, transform_indices = @transform_1, window_bounds = array<i64: 16, 256>}, {pipeline_mode = #tpu.pipeline_mode<synchronous>, transform_indices = @transform_2, window_bounds = array<i64: 1, 256>}, {pipeline_mode = #tpu.pipeline_mode<synchronous>, transform_indices = @transform_3, window_bounds = array<i64: 64, 256>}, {pipeline_mode = #tpu.pipeline_mode<synchronous>, transform_indices = @transform_4, window_bounds = array<i64: 128, 256>}, {pipeline_mode = #tpu.pipeline_mode<synchronous>, transform_indices = @transform_5, window_bounds = array<i64: 1, 256>}, {pipeline_mode = #tpu.pipeline_mode<synchronous>, transform_indices = @transform_6, window_bounds = array<i64: 128, 256>}, {pipeline_mode = #tpu.pipeline_mode<synchronous>, transform_indices = @transform_7, window_bounds = array<i64: 1, 256>}, {pipeline_mode = #tpu.pipeline_mode<synchronous>, transform_indices = @transform_8, window_bounds = array<i64: 64, 128>}, {pipeline_mode = #tpu.pipeline_mode<synchronous>, transform_indices = @transform_9, window_bounds = array<i64: 1, 128>}, {transform_indices = @transform_10, window_bounds = array<i64: 2, 128>}]} {
    %c0 = arith.constant 0 : index
    %c0_0 = arith.constant 0 : index
    %0 = vector.load %arg3[%c0, %c0_0] : memref<1x256xf32, #tpu.memory_space<vmem>>, vector<1x256xf32>
    %1 = vector.shape_cast %0 : vector<1x256xf32> to vector<1x256xf32>
    %2 = vector.broadcast %1 : vector<1x256xf32> to vector<2x256xf32>
    %c0_1 = arith.constant 0 : index
    %c0_2 = arith.constant 0 : index
    %3 = vector.load %arg6[%c0_1, %c0_2] : memref<1x256xf32, #tpu.memory_space<vmem>>, vector<1x256xf32>
    %4 = vector.shape_cast %3 : vector<1x256xf32> to vector<1x256xf32>
    %5 = vector.broadcast %4 : vector<1x256xf32> to vector<2x256xf32>
    %c0_3 = arith.constant 0 : index
    %c0_4 = arith.constant 0 : index
    %6 = vector.load %arg8[%c0_3, %c0_4] : memref<1x256xf32, #tpu.memory_space<vmem>>, vector<1x256xf32>
    %7 = vector.shape_cast %6 : vector<1x256xf32> to vector<1x256xf32>
    %8 = vector.broadcast %7 : vector<1x256xf32> to vector<2x256xf32>
    %c0_5 = arith.constant 0 : index
    %c0_6 = arith.constant 0 : index
    %c0_7 = arith.constant 0 : index
    %9 = vector.load %arg1[%c0_5, %c0_6, %c0_7] : memref<8x2x16xbf16, #tpu.memory_space<vmem>>, vector<1x2x16xbf16>
    %10 = vector.shape_cast %9 : vector<1x2x16xbf16> to vector<2x16xbf16>
    %c0_8 = arith.constant 0 : index
    %c0_9 = arith.constant 0 : index
    %11 = vector.load %arg2[%c0_8, %c0_9] : memref<16x256xbf16, #tpu.memory_space<vmem>>, vector<16x256xbf16>
    %cst = arith.constant dense<0.000000e+00> : vector<2x256xf32>
    %12 = tpu.matmul %10, %11, %cst {dimension_numbers = #tpu.dot_dimension_numbers<[1], [0], [0], [1], [0, 0, 1, 1], [], []>} : vector<2x16xbf16>, vector<16x256xbf16>, vector<2x256xf32> -> vector<2x256xf32>
    %13 = arith.addf %12, %2 : vector<2x256xf32>
    %c0_10 = arith.constant 0 : index
    %c0_11 = arith.constant 0 : index
    %c0_12 = arith.constant 0 : index
    %14 = vector.load %arg12[%c0_10, %c0_11, %c0_12] : memref<8x2x256xf32, #tpu.memory_space<vmem>>, vector<1x2x256xf32>
    %15 = vector.shape_cast %14 : vector<1x2x256xf32> to vector<2x256xf32>
    %16 = vector.shape_cast %13 : vector<2x256xf32> to vector<1x2x256xf32>
    tpu.vector_store %arg12[%c0_10, %c0_11, %c0_12], %16 {strides = array<i32>} : memref<8x2x256xf32, #tpu.memory_space<vmem>>, vector<1x2x256xf32>,
    %c1 = arith.constant 1 : index
    %c0_13 = arith.constant 0 : index
    %c0_14 = arith.constant 0 : index
    %17 = vector.load %arg1[%c1, %c0_13, %c0_14] : memref<8x2x16xbf16, #tpu.memory_space<vmem>>, vector<1x2x16xbf16>
    %18 = vector.shape_cast %17 : vector<1x2x16xbf16> to vector<2x16xbf16>
    %c0_15 = arith.constant 0 : index
    %c0_16 = arith.constant 0 : index
    %19 = vector.load %arg2[%c0_15, %c0_16] : memref<16x256xbf16, #tpu.memory_space<vmem>>, vector<16x256xbf16>
    %cst_17 = arith.constant dense<0.000000e+00> : vector<2x256xf32>
    %20 = tpu.matmul %18, %19, %cst_17 {dimension_numbers = #tpu.dot_dimension_numbers<[1], [0], [0], [1], [0, 0, 1, 1], [], []>} : vector<2x16xbf16>, vector<16x256xbf16>, vector<2x256xf32> -> vector<2x256xf32>
    %21 = arith.addf %20, %2 : vector<2x256xf32>
    %c1_18 = arith.constant 1 : index
    %c0_19 = arith.constant 0 : index
    %c0_20 = arith.constant 0 : index
    %22 = vector.load %arg12[%c1_18, %c0_19, %c0_20] : memref<8x2x256xf32, #tpu.memory_space<vmem>>, vector<1x2x256xf32>
    %23 = vector.shape_cast %22 : vector<1x2x256xf32> to vector<2x256xf32>
    %24 = vector.shape_cast %21 : vector<2x256xf32> to vector<1x2x256xf32>
    tpu.vector_store %arg12[%c1_18, %c0_19, %c0_20], %24 {strides = array<i32>} : memref<8x2x256xf32, #tpu.memory_space<vmem>>, vector<1x2x256xf32>,
    %c2 = arith.constant 2 : index
    %c0_21 = arith.constant 0 : index
    %c0_22 = arith.constant 0 : index
    %25 = vector.load %arg1[%c2, %c0_21, %c0_22] : memref<8x2x16xbf16, #tpu.memory_space<vmem>>, vector<1x2x16xbf16>
    %26 = vector.shape_cast %25 : vector<1x2x16xbf16> to vector<2x16xbf16>
    %c0_23 = arith.constant 0 : index
    %c0_24 = arith.constant 0 : index
    %27 = vector.load %arg2[%c0_23, %c0_24] : memref<16x256xbf16, #tpu.memory_space<vmem>>, vector<16x256xbf16>
    %cst_25 = arith.constant dense<0.000000e+00> : vector<2x256xf32>
    %28 = tpu.matmul %26, %27, %cst_25 {dimension_numbers = #tpu.dot_dimension_numbers<[1], [0], [0], [1], [0, 0, 1, 1], [], []>} : vector<2x16xbf16>, vector<16x256xbf16>, vector<2x256xf32> -> vector<2x256xf32>
    %29 = arith.addf %28, %2 : vector<2x256xf32>
    %c2_26 = arith.constant 2 : index
    %c0_27 = arith.constant 0 : index
    %c0_28 = arith.constant 0 : index
    %30 = vector.load %arg12[%c2_26, %c0_27, %c0_28] : memref<8x2x256xf32, #tpu.memory_space<vmem>>, vector<1x2x256xf32>
    %31 = vector.shape_cast %30 : vector<1x2x256xf32> to vector<2x256xf32>
    %32 = vector.shape_cast %29 : vector<2x256xf32> to vector<1x2x256xf32>
    tpu.vector_store %arg12[%c2_26, %c0_27, %c0_28], %32 {strides = array<i32>} : memref<8x2x256xf32, #tpu.memory_space<vmem>>, vector<1x2x256xf32>,
    %c3 = arith.constant 3 : index
    %c0_29 = arith.constant 0 : index
    %c0_30 = arith.constant 0 : index
    %33 = vector.load %arg1[%c3, %c0_29, %c0_30] : memref<8x2x16xbf16, #tpu.memory_space<vmem>>, vector<1x2x16xbf16>
    %34 = vector.shape_cast %33 : vector<1x2x16xbf16> to vector<2x16xbf16>
    %c0_31 = arith.constant 0 : index
    %c0_32 = arith.constant 0 : index
    %35 = vector.load %arg2[%c0_31, %c0_32] : memref<16x256xbf16, #tpu.memory_space<vmem>>, vector<16x256xbf16>
    %cst_33 = arith.constant dense<0.000000e+00> : vector<2x256xf32>
    %36 = tpu.matmul %34, %35, %cst_33 {dimension_numbers = #tpu.dot_dimension_numbers<[1], [0], [0], [1], [0, 0, 1, 1], [], []>} : vector<2x16xbf16>, vector<16x256xbf16>, vector<2x256xf32> -> vector<2x256xf32>
    %37 = arith.addf %36, %2 : vector<2x256xf32>
    %c3_34 = arith.constant 3 : index
    %c0_35 = arith.constant 0 : index
    %c0_36 = arith.constant 0 : index
    %38 = vector.load %arg12[%c3_34, %c0_35, %c0_36] : memref<8x2x256xf32, #tpu.memory_space<vmem>>, vector<1x2x256xf32>
    %39 = vector.shape_cast %38 : vector<1x2x256xf32> to vector<2x256xf32>
    %40 = vector.shape_cast %37 : vector<2x256xf32> to vector<1x2x256xf32>
    tpu.vector_store %arg12[%c3_34, %c0_35, %c0_36], %40 {strides = array<i32>} : memref<8x2x256xf32, #tpu.memory_space<vmem>>, vector<1x2x256xf32>,
    %c4 = arith.constant 4 : index
    %c0_37 = arith.constant 0 : index
    %c0_38 = arith.constant 0 : index
    %41 = vector.load %arg1[%c4, %c0_37, %c0_38] : memref<8x2x16xbf16, #tpu.memory_space<vmem>>, vector<1x2x16xbf16>
    %42 = vector.shape_cast %41 : vector<1x2x16xbf16> to vector<2x16xbf16>
    %c0_39 = arith.constant 0 : index
    %c0_40 = arith.constant 0 : index
    %43 = vector.load %arg2[%c0_39, %c0_40] : memref<16x256xbf16, #tpu.memory_space<vmem>>, vector<16x256xbf16>
    %cst_41 = arith.constant dense<0.000000e+00> : vector<2x256xf32>
    %44 = tpu.matmul %42, %43, %cst_41 {dimension_numbers = #tpu.dot_dimension_numbers<[1], [0], [0], [1], [0, 0, 1, 1], [], []>} : vector<2x16xbf16>, vector<16x256xbf16>, vector<2x256xf32> -> vector<2x256xf32>
    %45 = arith.addf %44, %2 : vector<2x256xf32>
    %c4_42 = arith.constant 4 : index
    %c0_43 = arith.constant 0 : index
    %c0_44 = arith.constant 0 : index
    %46 = vector.load %arg12[%c4_42, %c0_43, %c0_44] : memref<8x2x256xf32, #tpu.memory_space<vmem>>, vector<1x2x256xf32>
    %47 = vector.shape_cast %46 : vector<1x2x256xf32> to vector<2x256xf32>
    %48 = vector.shape_cast %45 : vector<2x256xf32> to vector<1x2x256xf32>
    tpu.vector_store %arg12[%c4_42, %c0_43, %c0_44], %48 {strides = array<i32>} : memref<8x2x256xf32, #tpu.memory_space<vmem>>, vector<1x2x256xf32>,
    %c5 = arith.constant 5 : index
    %c0_45 = arith.constant 0 : index
    %c0_46 = arith.constant 0 : index
    %49 = vector.load %arg1[%c5, %c0_45, %c0_46] : memref<8x2x16xbf16, #tpu.memory_space<vmem>>, vector<1x2x16xbf16>
    %50 = vector.shape_cast %49 : vector<1x2x16xbf16> to vector<2x16xbf16>
    %c0_47 = arith.constant 0 : index
    %c0_48 = arith.constant 0 : index
    %51 = vector.load %arg2[%c0_47, %c0_48] : memref<16x256xbf16, #tpu.memory_space<vmem>>, vector<16x256xbf16>
    %cst_49 = arith.constant dense<0.000000e+00> : vector<2x256xf32>
    %52 = tpu.matmul %50, %51, %cst_49 {dimension_numbers = #tpu.dot_dimension_numbers<[1], [0], [0], [1], [0, 0, 1, 1], [], []>} : vector<2x16xbf16>, vector<16x256xbf16>, vector<2x256xf32> -> vector<2x256xf32>
    %53 = arith.addf %52, %2 : vector<2x256xf32>
    %c5_50 = arith.constant 5 : index
    %c0_51 = arith.constant 0 : index
    %c0_52 = arith.constant 0 : index
    %54 = vector.load %arg12[%c5_50, %c0_51, %c0_52] : memref<8x2x256xf32, #tpu.memory_space<vmem>>, vector<1x2x256xf32>
    %55 = vector.shape_cast %54 : vector<1x2x256xf32> to vector<2x256xf32>
    %56 = vector.shape_cast %53 : vector<2x256xf32> to vector<1x2x256xf32>
    tpu.vector_store %arg12[%c5_50, %c0_51, %c0_52], %56 {strides = array<i32>} : memref<8x2x256xf32, #tpu.memory_space<vmem>>, vector<1x2x256xf32>,
    %c6 = arith.constant 6 : index
    %c0_53 = arith.constant 0 : index
    %c0_54 = arith.constant 0 : index
    %57 = vector.load %arg1[%c6, %c0_53, %c0_54] : memref<8x2x16xbf16, #tpu.memory_space<vmem>>, vector<1x2x16xbf16>
    %58 = vector.shape_cast %57 : vector<1x2x16xbf16> to vector<2x16xbf16>
    %c0_55 = arith.constant 0 : index
    %c0_56 = arith.constant 0 : index
    %59 = vector.load %arg2[%c0_55, %c0_56] : memref<16x256xbf16, #tpu.memory_space<vmem>>, vector<16x256xbf16>
    %cst_57 = arith.constant dense<0.000000e+00> : vector<2x256xf32>
    %60 = tpu.matmul %58, %59, %cst_57 {dimension_numbers = #tpu.dot_dimension_numbers<[1], [0], [0], [1], [0, 0, 1, 1], [], []>} : vector<2x16xbf16>, vector<16x256xbf16>, vector<2x256xf32> -> vector<2x256xf32>
    %61 = arith.addf %60, %2 : vector<2x256xf32>
    %c6_58 = arith.constant 6 : index
    %c0_59 = arith.constant 0 : index
    %c0_60 = arith.constant 0 : index
    %62 = vector.load %arg12[%c6_58, %c0_59, %c0_60] : memref<8x2x256xf32, #tpu.memory_space<vmem>>, vector<1x2x256xf32>
    %63 = vector.shape_cast %62 : vector<1x2x256xf32> to vector<2x256xf32>
    %64 = vector.shape_cast %61 : vector<2x256xf32> to vector<1x2x256xf32>
    tpu.vector_store %arg12[%c6_58, %c0_59, %c0_60], %64 {strides = array<i32>} : memref<8x2x256xf32, #tpu.memory_space<vmem>>, vector<1x2x256xf32>,
    %c7 = arith.constant 7 : index
    %c0_61 = arith.constant 0 : index
    %c0_62 = arith.constant 0 : index
    %65 = vector.load %arg1[%c7, %c0_61, %c0_62] : memref<8x2x16xbf16, #tpu.memory_space<vmem>>, vector<1x2x16xbf16>
    %66 = vector.shape_cast %65 : vector<1x2x16xbf16> to vector<2x16xbf16>
    %c0_63 = arith.constant 0 : index
    %c0_64 = arith.constant 0 : index
    %67 = vector.load %arg2[%c0_63, %c0_64] : memref<16x256xbf16, #tpu.memory_space<vmem>>, vector<16x256xbf16>
    %cst_65 = arith.constant dense<0.000000e+00> : vector<2x256xf32>
    %68 = tpu.matmul %66, %67, %cst_65 {dimension_numbers = #tpu.dot_dimension_numbers<[1], [0], [0], [1], [0, 0, 1, 1], [], []>} : vector<2x16xbf16>, vector<16x256xbf16>, vector<2x256xf32> -> vector<2x256xf32>
    %69 = arith.addf %68, %2 : vector<2x256xf32>
    %c7_66 = arith.constant 7 : index
    %c0_67 = arith.constant 0 : index
    %c0_68 = arith.constant 0 : index
    %70 = vector.load %arg12[%c7_66, %c0_67, %c0_68] : memref<8x2x256xf32, #tpu.memory_space<vmem>>, vector<1x2x256xf32>
    %71 = vector.shape_cast %70 : vector<1x2x256xf32> to vector<2x256xf32>
    %72 = vector.shape_cast %69 : vector<2x256xf32> to vector<1x2x256xf32>
    tpu.vector_store %arg12[%c7_66, %c0_67, %c0_68], %72 {strides = array<i32>} : memref<8x2x256xf32, #tpu.memory_space<vmem>>, vector<1x2x256xf32>,
    %cst_69 = arith.constant 0.000000e+00 : f32
    %73 = vector.broadcast %cst_69 : f32 to vector<2x64xf32>
    %c0_70 = arith.constant 0 : index
    %c0_71 = arith.constant 0 : index
    %c0_72 = arith.constant 0 : index
    %74 = vector.load %arg12[%c0_70, %c0_71, %c0_72] : memref<8x2x256xf32, #tpu.memory_space<vmem>>, vector<1x2x256xf32>
    %75 = vector.shape_cast %74 : vector<1x2x256xf32> to vector<2x256xf32>
    %76 = arith.truncf %73 : vector<2x64xf32> to vector<2x64xbf16>
    %c0_73 = arith.constant 0 : index
    %c0_74 = arith.constant 0 : index
    %77 = vector.load %arg4[%c0_73, %c0_74] : memref<64x256xbf16, #tpu.memory_space<vmem>>, vector<64x256xbf16>
    %cst_75 = arith.constant dense<0.000000e+00> : vector<2x256xf32>
    %78 = tpu.matmul %76, %77, %cst_75 {dimension_numbers = #tpu.dot_dimension_numbers<[1], [0], [0], [1], [0, 0, 1, 1], [], []>} : vector<2x64xbf16>, vector<64x256xbf16>, vector<2x256xf32> -> vector<2x256xf32>
    %79 = arith.addf %75, %78 : vector<2x256xf32>
    %80 = vector.extract_strided_slice %79 {offsets = [0, 0], sizes = [2, 64], strides = [1, 1]} : vector<2x256xf32> to vector<2x64xf32>
    %81 = arith.negf %80 : vector<2x64xf32>
    %82 = math.exp %81 : vector<2x64xf32>
    %cst_76 = arith.constant 1.000000e+00 : f32
    %83 = vector.broadcast %cst_76 : f32 to vector<2x64xf32>
    %84 = arith.addf %83, %82 : vector<2x64xf32>
    %85 = arith.divf %83, %84 : vector<2x64xf32>
    %86 = vector.extract_strided_slice %79 {offsets = [0, 64], sizes = [2, 64], strides = [1, 1]} : vector<2x256xf32> to vector<2x64xf32>
    %87 = arith.negf %86 : vector<2x64xf32>
    %88 = math.exp %87 : vector<2x64xf32>
    %cst_77 = arith.constant 1.000000e+00 : f32
    %89 = vector.broadcast %cst_77 : f32 to vector<2x64xf32>
    %90 = arith.addf %89, %88 : vector<2x64xf32>
    %91 = arith.divf %89, %90 : vector<2x64xf32>
    %92 = vector.extract_strided_slice %79 {offsets = [0, 128], sizes = [2, 64], strides = [1, 1]} : vector<2x256xf32> to vector<2x64xf32>
    %93 = arith.negf %92 : vector<2x64xf32>
    %94 = math.exp %93 : vector<2x64xf32>
    %cst_78 = arith.constant 1.000000e+00 : f32
    %95 = vector.broadcast %cst_78 : f32 to vector<2x64xf32>
    %96 = arith.addf %95, %94 : vector<2x64xf32>
    %97 = arith.divf %95, %96 : vector<2x64xf32>
    %98 = vector.extract_strided_slice %79 {offsets = [0, 192], sizes = [2, 64], strides = [1, 1]} : vector<2x256xf32> to vector<2x64xf32>
    %99 = math.tanh %98 : vector<2x64xf32>
    %100 = arith.mulf %91, %73 : vector<2x64xf32>
    %101 = arith.mulf %85, %99 : vector<2x64xf32>
    %102 = arith.addf %100, %101 : vector<2x64xf32>
    %103 = math.tanh %102 : vector<2x64xf32>
    %104 = arith.mulf %97, %103 : vector<2x64xf32>
    %105 = tpu.concatenate %104, %73 in 1 : vector<2x64xf32>, vector<2x64xf32> -> vector<2x128xf32>
    %106 = arith.truncf %105 : vector<2x128xf32> to vector<2x128xbf16>
    %c0_79 = arith.constant 0 : index
    %c0_80 = arith.constant 0 : index
    %107 = vector.load %arg5[%c0_79, %c0_80] : memref<128x256xbf16, #tpu.memory_space<vmem>>, vector<128x256xbf16>
    %cst_81 = arith.constant dense<0.000000e+00> : vector<2x256xf32>
    %108 = tpu.matmul %106, %107, %cst_81 {dimension_numbers = #tpu.dot_dimension_numbers<[1], [0], [0], [1], [0, 0, 1, 1], [], []>} : vector<2x128xbf16>, vector<128x256xbf16>, vector<2x256xf32> -> vector<2x256xf32>
    %109 = arith.addf %108, %5 : vector<2x256xf32>
    %110 = vector.extract_strided_slice %109 {offsets = [0, 0], sizes = [2, 64], strides = [1, 1]} : vector<2x256xf32> to vector<2x64xf32>
    %111 = arith.negf %110 : vector<2x64xf32>
    %112 = math.exp %111 : vector<2x64xf32>
    %cst_82 = arith.constant 1.000000e+00 : f32
    %113 = vector.broadcast %cst_82 : f32 to vector<2x64xf32>
    %114 = arith.addf %113, %112 : vector<2x64xf32>
    %115 = arith.divf %113, %114 : vector<2x64xf32>
    %116 = vector.extract_strided_slice %109 {offsets = [0, 64], sizes = [2, 64], strides = [1, 1]} : vector<2x256xf32> to vector<2x64xf32>
    %117 = arith.negf %116 : vector<2x64xf32>
    %118 = math.exp %117 : vector<2x64xf32>
    %cst_83 = arith.constant 1.000000e+00 : f32
    %119 = vector.broadcast %cst_83 : f32 to vector<2x64xf32>
    %120 = arith.addf %119, %118 : vector<2x64xf32>
    %121 = arith.divf %119, %120 : vector<2x64xf32>
    %122 = vector.extract_strided_slice %109 {offsets = [0, 128], sizes = [2, 64], strides = [1, 1]} : vector<2x256xf32> to vector<2x64xf32>
    %123 = arith.negf %122 : vector<2x64xf32>
    %124 = math.exp %123 : vector<2x64xf32>
    %cst_84 = arith.constant 1.000000e+00 : f32
    %125 = vector.broadcast %cst_84 : f32 to vector<2x64xf32>
    %126 = arith.addf %125, %124 : vector<2x64xf32>
    %127 = arith.divf %125, %126 : vector<2x64xf32>
    %128 = vector.extract_strided_slice %109 {offsets = [0, 192], sizes = [2, 64], strides = [1, 1]} : vector<2x256xf32> to vector<2x64xf32>
    %129 = math.tanh %128 : vector<2x64xf32>
    %130 = arith.mulf %121, %73 : vector<2x64xf32>
    %131 = arith.mulf %115, %129 : vector<2x64xf32>
    %132 = arith.addf %130, %131 : vector<2x64xf32>
    %133 = math.tanh %132 : vector<2x64xf32>
    %134 = arith.mulf %127, %133 : vector<2x64xf32>
    %135 = tpu.concatenate %134, %73 in 1 : vector<2x64xf32>, vector<2x64xf32> -> vector<2x128xf32>
    %136 = arith.truncf %135 : vector<2x128xf32> to vector<2x128xbf16>
    %c0_85 = arith.constant 0 : index
    %c0_86 = arith.constant 0 : index
    %137 = vector.load %arg7[%c0_85, %c0_86] : memref<128x256xbf16, #tpu.memory_space<vmem>>, vector<128x256xbf16>
    %cst_87 = arith.constant dense<0.000000e+00> : vector<2x256xf32>
    %138 = tpu.matmul %136, %137, %cst_87 {dimension_numbers = #tpu.dot_dimension_numbers<[1], [0], [0], [1], [0, 0, 1, 1], [], []>} : vector<2x128xbf16>, vector<128x256xbf16>, vector<2x256xf32> -> vector<2x256xf32>
    %139 = arith.addf %138, %8 : vector<2x256xf32>
    %140 = vector.extract_strided_slice %139 {offsets = [0, 0], sizes = [2, 64], strides = [1, 1]} : vector<2x256xf32> to vector<2x64xf32>
    %141 = arith.negf %140 : vector<2x64xf32>
    %142 = math.exp %141 : vector<2x64xf32>
    %cst_88 = arith.constant 1.000000e+00 : f32
    %143 = vector.broadcast %cst_88 : f32 to vector<2x64xf32>
    %144 = arith.addf %143, %142 : vector<2x64xf32>
    %145 = arith.divf %143, %144 : vector<2x64xf32>
    %146 = vector.extract_strided_slice %139 {offsets = [0, 64], sizes = [2, 64], strides = [1, 1]} : vector<2x256xf32> to vector<2x64xf32>
    %147 = arith.negf %146 : vector<2x64xf32>
    %148 = math.exp %147 : vector<2x64xf32>
    %cst_89 = arith.constant 1.000000e+00 : f32
    %149 = vector.broadcast %cst_89 : f32 to vector<2x64xf32>
    %150 = arith.addf %149, %148 : vector<2x64xf32>
    %151 = arith.divf %149, %150 : vector<2x64xf32>
    %152 = vector.extract_strided_slice %139 {offsets = [0, 128], sizes = [2, 64], strides = [1, 1]} : vector<2x256xf32> to vector<2x64xf32>
    %153 = arith.negf %152 : vector<2x64xf32>
    %154 = math.exp %153 : vector<2x64xf32>
    %cst_90 = arith.constant 1.000000e+00 : f32
    %155 = vector.broadcast %cst_90 : f32 to vector<2x64xf32>
    %156 = arith.addf %155, %154 : vector<2x64xf32>
    %157 = arith.divf %155, %156 : vector<2x64xf32>
    %158 = vector.extract_strided_slice %139 {offsets = [0, 192], sizes = [2, 64], strides = [1, 1]} : vector<2x256xf32> to vector<2x64xf32>
    %159 = math.tanh %158 : vector<2x64xf32>
    %160 = arith.mulf %151, %73 : vector<2x64xf32>
    %161 = arith.mulf %145, %159 : vector<2x64xf32>
    %162 = arith.addf %160, %161 : vector<2x64xf32>
    %163 = math.tanh %162 : vector<2x64xf32>
    %164 = arith.mulf %157, %163 : vector<2x64xf32>
    %c1_91 = arith.constant 1 : index
    %c0_92 = arith.constant 0 : index
    %c0_93 = arith.constant 0 : index
    %165 = vector.load %arg12[%c1_91, %c0_92, %c0_93] : memref<8x2x256xf32, #tpu.memory_space<vmem>>, vector<1x2x256xf32>
    %166 = vector.shape_cast %165 : vector<1x2x256xf32> to vector<2x256xf32>
    %167 = arith.truncf %104 : vector<2x64xf32> to vector<2x64xbf16>
    %c0_94 = arith.constant 0 : index
    %c0_95 = arith.constant 0 : index
    %168 = vector.load %arg4[%c0_94, %c0_95] : memref<64x256xbf16, #tpu.memory_space<vmem>>, vector<64x256xbf16>
    %cst_96 = arith.constant dense<0.000000e+00> : vector<2x256xf32>
    %169 = tpu.matmul %167, %168, %cst_96 {dimension_numbers = #tpu.dot_dimension_numbers<[1], [0], [0], [1], [0, 0, 1, 1], [], []>} : vector<2x64xbf16>, vector<64x256xbf16>, vector<2x256xf32> -> vector<2x256xf32>
    %170 = arith.addf %166, %169 : vector<2x256xf32>
    %171 = vector.extract_strided_slice %170 {offsets = [0, 0], sizes = [2, 64], strides = [1, 1]} : vector<2x256xf32> to vector<2x64xf32>
    %172 = arith.negf %171 : vector<2x64xf32>
    %173 = math.exp %172 : vector<2x64xf32>
    %cst_97 = arith.constant 1.000000e+00 : f32
    %174 = vector.broadcast %cst_97 : f32 to vector<2x64xf32>
    %175 = arith.addf %174, %173 : vector<2x64xf32>
    %176 = arith.divf %174, %175 : vector<2x64xf32>
    %177 = vector.extract_strided_slice %170 {offsets = [0, 64], sizes = [2, 64], strides = [1, 1]} : vector<2x256xf32> to vector<2x64xf32>
    %178 = arith.negf %177 : vector<2x64xf32>
    %179 = math.exp %178 : vector<2x64xf32>
    %cst_98 = arith.constant 1.000000e+00 : f32
    %180 = vector.broadcast %cst_98 : f32 to vector<2x64xf32>
    %181 = arith.addf %180, %179 : vector<2x64xf32>
    %182 = arith.divf %180, %181 : vector<2x64xf32>
    %183 = vector.extract_strided_slice %170 {offsets = [0, 128], sizes = [2, 64], strides = [1, 1]} : vector<2x256xf32> to vector<2x64xf32>
    %184 = arith.negf %183 : vector<2x64xf32>
    %185 = math.exp %184 : vector<2x64xf32>
    %cst_99 = arith.constant 1.000000e+00 : f32
    %186 = vector.broadcast %cst_99 : f32 to vector<2x64xf32>
    %187 = arith.addf %186, %185 : vector<2x64xf32>
    %188 = arith.divf %186, %187 : vector<2x64xf32>
    %189 = vector.extract_strided_slice %170 {offsets = [0, 192], sizes = [2, 64], strides = [1, 1]} : vector<2x256xf32> to vector<2x64xf32>
    %190 = math.tanh %189 : vector<2x64xf32>
    %191 = arith.mulf %182, %102 : vector<2x64xf32>
    %192 = arith.mulf %176, %190 : vector<2x64xf32>
    %193 = arith.addf %191, %192 : vector<2x64xf32>
    %194 = math.tanh %193 : vector<2x64xf32>
    %195 = arith.mulf %188, %194 : vector<2x64xf32>
    %196 = tpu.concatenate %195, %134 in 1 : vector<2x64xf32>, vector<2x64xf32> -> vector<2x128xf32>
    %197 = arith.truncf %196 : vector<2x128xf32> to vector<2x128xbf16>
    %c0_100 = arith.constant 0 : index
    %c0_101 = arith.constant 0 : index
    %198 = vector.load %arg5[%c0_100, %c0_101] : memref<128x256xbf16, #tpu.memory_space<vmem>>, vector<128x256xbf16>
    %cst_102 = arith.constant dense<0.000000e+00> : vector<2x256xf32>
    %199 = tpu.matmul %197, %198, %cst_102 {dimension_numbers = #tpu.dot_dimension_numbers<[1], [0], [0], [1], [0, 0, 1, 1], [], []>} : vector<2x128xbf16>, vector<128x256xbf16>, vector<2x256xf32> -> vector<2x256xf32>
    %200 = arith.addf %199, %5 : vector<2x256xf32>
    %201 = vector.extract_strided_slice %200 {offsets = [0, 0], sizes = [2, 64], strides = [1, 1]} : vector<2x256xf32> to vector<2x64xf32>
    %202 = arith.negf %201 : vector<2x64xf32>
    %203 = math.exp %202 : vector<2x64xf32>
    %cst_103 = arith.constant 1.000000e+00 : f32
    %204 = vector.broadcast %cst_103 : f32 to vector<2x64xf32>
    %205 = arith.addf %204, %203 : vector<2x64xf32>
    %206 = arith.divf %204, %205 : vector<2x64xf32>
    %207 = vector.extract_strided_slice %200 {offsets = [0, 64], sizes = [2, 64], strides = [1, 1]} : vector<2x256xf32> to vector<2x64xf32>
    %208 = arith.negf %207 : vector<2x64xf32>
    %209 = math.exp %208 : vector<2x64xf32>
    %cst_104 = arith.constant 1.000000e+00 : f32
    %210 = vector.broadcast %cst_104 : f32 to vector<2x64xf32>
    %211 = arith.addf %210, %209 : vector<2x64xf32>
    %212 = arith.divf %210, %211 : vector<2x64xf32>
    %213 = vector.extract_strided_slice %200 {offsets = [0, 128], sizes = [2, 64], strides = [1, 1]} : vector<2x256xf32> to vector<2x64xf32>
    %214 = arith.negf %213 : vector<2x64xf32>
    %215 = math.exp %214 : vector<2x64xf32>
    %cst_105 = arith.constant 1.000000e+00 : f32
    %216 = vector.broadcast %cst_105 : f32 to vector<2x64xf32>
    %217 = arith.addf %216, %215 : vector<2x64xf32>
    %218 = arith.divf %216, %217 : vector<2x64xf32>
    %219 = vector.extract_strided_slice %200 {offsets = [0, 192], sizes = [2, 64], strides = [1, 1]} : vector<2x256xf32> to vector<2x64xf32>
    %220 = math.tanh %219 : vector<2x64xf32>
    %221 = arith.mulf %212, %132 : vector<2x64xf32>
    %222 = arith.mulf %206, %220 : vector<2x64xf32>
    %223 = arith.addf %221, %222 : vector<2x64xf32>
    %224 = math.tanh %223 : vector<2x64xf32>
    %225 = arith.mulf %218, %224 : vector<2x64xf32>
    %226 = tpu.concatenate %225, %164 in 1 : vector<2x64xf32>, vector<2x64xf32> -> vector<2x128xf32>
    %227 = arith.truncf %226 : vector<2x128xf32> to vector<2x128xbf16>
    %c0_106 = arith.constant 0 : index
    %c0_107 = arith.constant 0 : index
    %228 = vector.load %arg7[%c0_106, %c0_107] : memref<128x256xbf16, #tpu.memory_space<vmem>>, vector<128x256xbf16>
    %cst_108 = arith.constant dense<0.000000e+00> : vector<2x256xf32>
    %229 = tpu.matmul %227, %228, %cst_108 {dimension_numbers = #tpu.dot_dimension_numbers<[1], [0], [0], [1], [0, 0, 1, 1], [], []>} : vector<2x128xbf16>, vector<128x256xbf16>, vector<2x256xf32> -> vector<2x256xf32>
    %230 = arith.addf %229, %8 : vector<2x256xf32>
    %231 = vector.extract_strided_slice %230 {offsets = [0, 0], sizes = [2, 64], strides = [1, 1]} : vector<2x256xf32> to vector<2x64xf32>
    %232 = arith.negf %231 : vector<2x64xf32>
    %233 = math.exp %232 : vector<2x64xf32>
    %cst_109 = arith.constant 1.000000e+00 : f32
    %234 = vector.broadcast %cst_109 : f32 to vector<2x64xf32>
    %235 = arith.addf %234, %233 : vector<2x64xf32>
    %236 = arith.divf %234, %235 : vector<2x64xf32>
    %237 = vector.extract_strided_slice %230 {offsets = [0, 64], sizes = [2, 64], strides = [1, 1]} : vector<2x256xf32> to vector<2x64xf32>
    %238 = arith.negf %237 : vector<2x64xf32>
    %239 = math.exp %238 : vector<2x64xf32>
    %cst_110 = arith.constant 1.000000e+00 : f32
    %240 = vector.broadcast %cst_110 : f32 to vector<2x64xf32>
    %241 = arith.addf %240, %239 : vector<2x64xf32>
    %242 = arith.divf %240, %241 : vector<2x64xf32>
    %243 = vector.extract_strided_slice %230 {offsets = [0, 128], sizes = [2, 64], strides = [1, 1]} : vector<2x256xf32> to vector<2x64xf32>
    %244 = arith.negf %243 : vector<2x64xf32>
    %245 = math.exp %244 : vector<2x64xf32>
    %cst_111 = arith.constant 1.000000e+00 : f32
    %246 = vector.broadcast %cst_111 : f32 to vector<2x64xf32>
    %247 = arith.addf %246, %245 : vector<2x64xf32>
    %248 = arith.divf %246, %247 : vector<2x64xf32>
    %249 = vector.extract_strided_slice %230 {offsets = [0, 192], sizes = [2, 64], strides = [1, 1]} : vector<2x256xf32> to vector<2x64xf32>
    %250 = math.tanh %249 : vector<2x64xf32>
    %251 = arith.mulf %242, %162 : vector<2x64xf32>
    %252 = arith.mulf %236, %250 : vector<2x64xf32>
    %253 = arith.addf %251, %252 : vector<2x64xf32>
    %254 = math.tanh %253 : vector<2x64xf32>
    %255 = arith.mulf %248, %254 : vector<2x64xf32>
    %c2_112 = arith.constant 2 : index
    %c0_113 = arith.constant 0 : index
    %c0_114 = arith.constant 0 : index
    %256 = vector.load %arg12[%c2_112, %c0_113, %c0_114] : memref<8x2x256xf32, #tpu.memory_space<vmem>>, vector<1x2x256xf32>
    %257 = vector.shape_cast %256 : vector<1x2x256xf32> to vector<2x256xf32>
    %258 = arith.truncf %195 : vector<2x64xf32> to vector<2x64xbf16>
    %c0_115 = arith.constant 0 : index
    %c0_116 = arith.constant 0 : index
    %259 = vector.load %arg4[%c0_115, %c0_116] : memref<64x256xbf16, #tpu.memory_space<vmem>>, vector<64x256xbf16>
    %cst_117 = arith.constant dense<0.000000e+00> : vector<2x256xf32>
    %260 = tpu.matmul %258, %259, %cst_117 {dimension_numbers = #tpu.dot_dimension_numbers<[1], [0], [0], [1], [0, 0, 1, 1], [], []>} : vector<2x64xbf16>, vector<64x256xbf16>, vector<2x256xf32> -> vector<2x256xf32>
    %261 = arith.addf %257, %260 : vector<2x256xf32>
    %262 = vector.extract_strided_slice %261 {offsets = [0, 0], sizes = [2, 64], strides = [1, 1]} : vector<2x256xf32> to vector<2x64xf32>
    %263 = arith.negf %262 : vector<2x64xf32>
    %264 = math.exp %263 : vector<2x64xf32>
    %cst_118 = arith.constant 1.000000e+00 : f32
    %265 = vector.broadcast %cst_118 : f32 to vector<2x64xf32>
    %266 = arith.addf %265, %264 : vector<2x64xf32>
    %267 = arith.divf %265, %266 : vector<2x64xf32>
    %268 = vector.extract_strided_slice %261 {offsets = [0, 64], sizes = [2, 64], strides = [1, 1]} : vector<2x256xf32> to vector<2x64xf32>
    %269 = arith.negf %268 : vector<2x64xf32>
    %270 = math.exp %269 : vector<2x64xf32>
    %cst_119 = arith.constant 1.000000e+00 : f32
    %271 = vector.broadcast %cst_119 : f32 to vector<2x64xf32>
    %272 = arith.addf %271, %270 : vector<2x64xf32>
    %273 = arith.divf %271, %272 : vector<2x64xf32>
    %274 = vector.extract_strided_slice %261 {offsets = [0, 128], sizes = [2, 64], strides = [1, 1]} : vector<2x256xf32> to vector<2x64xf32>
    %275 = arith.negf %274 : vector<2x64xf32>
    %276 = math.exp %275 : vector<2x64xf32>
    %cst_120 = arith.constant 1.000000e+00 : f32
    %277 = vector.broadcast %cst_120 : f32 to vector<2x64xf32>
    %278 = arith.addf %277, %276 : vector<2x64xf32>
    %279 = arith.divf %277, %278 : vector<2x64xf32>
    %280 = vector.extract_strided_slice %261 {offsets = [0, 192], sizes = [2, 64], strides = [1, 1]} : vector<2x256xf32> to vector<2x64xf32>
    %281 = math.tanh %280 : vector<2x64xf32>
    %282 = arith.mulf %273, %193 : vector<2x64xf32>
    %283 = arith.mulf %267, %281 : vector<2x64xf32>
    %284 = arith.addf %282, %283 : vector<2x64xf32>
    %285 = math.tanh %284 : vector<2x64xf32>
    %286 = arith.mulf %279, %285 : vector<2x64xf32>
    %287 = tpu.concatenate %286, %225 in 1 : vector<2x64xf32>, vector<2x64xf32> -> vector<2x128xf32>
    %288 = arith.truncf %287 : vector<2x128xf32> to vector<2x128xbf16>
    %c0_121 = arith.constant 0 : index
    %c0_122 = arith.constant 0 : index
    %289 = vector.load %arg5[%c0_121, %c0_122] : memref<128x256xbf16, #tpu.memory_space<vmem>>, vector<128x256xbf16>
    %cst_123 = arith.constant dense<0.000000e+00> : vector<2x256xf32>
    %290 = tpu.matmul %288, %289, %cst_123 {dimension_numbers = #tpu.dot_dimension_numbers<[1], [0], [0], [1], [0, 0, 1, 1], [], []>} : vector<2x128xbf16>, vector<128x256xbf16>, vector<2x256xf32> -> vector<2x256xf32>
    %291 = arith.addf %290, %5 : vector<2x256xf32>
    %292 = vector.extract_strided_slice %291 {offsets = [0, 0], sizes = [2, 64], strides = [1, 1]} : vector<2x256xf32> to vector<2x64xf32>
    %293 = arith.negf %292 : vector<2x64xf32>
    %294 = math.exp %293 : vector<2x64xf32>
    %cst_124 = arith.constant 1.000000e+00 : f32
    %295 = vector.broadcast %cst_124 : f32 to vector<2x64xf32>
    %296 = arith.addf %295, %294 : vector<2x64xf32>
    %297 = arith.divf %295, %296 : vector<2x64xf32>
    %298 = vector.extract_strided_slice %291 {offsets = [0, 64], sizes = [2, 64], strides = [1, 1]} : vector<2x256xf32> to vector<2x64xf32>
    %299 = arith.negf %298 : vector<2x64xf32>
    %300 = math.exp %299 : vector<2x64xf32>
    %cst_125 = arith.constant 1.000000e+00 : f32
    %301 = vector.broadcast %cst_125 : f32 to vector<2x64xf32>
    %302 = arith.addf %301, %300 : vector<2x64xf32>
    %303 = arith.divf %301, %302 : vector<2x64xf32>
    %304 = vector.extract_strided_slice %291 {offsets = [0, 128], sizes = [2, 64], strides = [1, 1]} : vector<2x256xf32> to vector<2x64xf32>
    %305 = arith.negf %304 : vector<2x64xf32>
    %306 = math.exp %305 : vector<2x64xf32>
    %cst_126 = arith.constant 1.000000e+00 : f32
    %307 = vector.broadcast %cst_126 : f32 to vector<2x64xf32>
    %308 = arith.addf %307, %306 : vector<2x64xf32>
    %309 = arith.divf %307, %308 : vector<2x64xf32>
    %310 = vector.extract_strided_slice %291 {offsets = [0, 192], sizes = [2, 64], strides = [1, 1]} : vector<2x256xf32> to vector<2x64xf32>
    %311 = math.tanh %310 : vector<2x64xf32>
    %312 = arith.mulf %303, %223 : vector<2x64xf32>
    %313 = arith.mulf %297, %311 : vector<2x64xf32>
    %314 = arith.addf %312, %313 : vector<2x64xf32>
    %315 = math.tanh %314 : vector<2x64xf32>
    %316 = arith.mulf %309, %315 : vector<2x64xf32>
    %317 = tpu.concatenate %316, %255 in 1 : vector<2x64xf32>, vector<2x64xf32> -> vector<2x128xf32>
    %318 = arith.truncf %317 : vector<2x128xf32> to vector<2x128xbf16>
    %c0_127 = arith.constant 0 : index
    %c0_128 = arith.constant 0 : index
    %319 = vector.load %arg7[%c0_127, %c0_128] : memref<128x256xbf16, #tpu.memory_space<vmem>>, vector<128x256xbf16>
    %cst_129 = arith.constant dense<0.000000e+00> : vector<2x256xf32>
    %320 = tpu.matmul %318, %319, %cst_129 {dimension_numbers = #tpu.dot_dimension_numbers<[1], [0], [0], [1], [0, 0, 1, 1], [], []>} : vector<2x128xbf16>, vector<128x256xbf16>, vector<2x256xf32> -> vector<2x256xf32>
    %321 = arith.addf %320, %8 : vector<2x256xf32>
    %322 = vector.extract_strided_slice %321 {offsets = [0, 0], sizes = [2, 64], strides = [1, 1]} : vector<2x256xf32> to vector<2x64xf32>
    %323 = arith.negf %322 : vector<2x64xf32>
    %324 = math.exp %323 : vector<2x64xf32>
    %cst_130 = arith.constant 1.000000e+00 : f32
    %325 = vector.broadcast %cst_130 : f32 to vector<2x64xf32>
    %326 = arith.addf %325, %324 : vector<2x64xf32>
    %327 = arith.divf %325, %326 : vector<2x64xf32>
    %328 = vector.extract_strided_slice %321 {offsets = [0, 64], sizes = [2, 64], strides = [1, 1]} : vector<2x256xf32> to vector<2x64xf32>
    %329 = arith.negf %328 : vector<2x64xf32>
    %330 = math.exp %329 : vector<2x64xf32>
    %cst_131 = arith.constant 1.000000e+00 : f32
    %331 = vector.broadcast %cst_131 : f32 to vector<2x64xf32>
    %332 = arith.addf %331, %330 : vector<2x64xf32>
    %333 = arith.divf %331, %332 : vector<2x64xf32>
    %334 = vector.extract_strided_slice %321 {offsets = [0, 128], sizes = [2, 64], strides = [1, 1]} : vector<2x256xf32> to vector<2x64xf32>
    %335 = arith.negf %334 : vector<2x64xf32>
    %336 = math.exp %335 : vector<2x64xf32>
    %cst_132 = arith.constant 1.000000e+00 : f32
    %337 = vector.broadcast %cst_132 : f32 to vector<2x64xf32>
    %338 = arith.addf %337, %336 : vector<2x64xf32>
    %339 = arith.divf %337, %338 : vector<2x64xf32>
    %340 = vector.extract_strided_slice %321 {offsets = [0, 192], sizes = [2, 64], strides = [1, 1]} : vector<2x256xf32> to vector<2x64xf32>
    %341 = math.tanh %340 : vector<2x64xf32>
    %342 = arith.mulf %333, %253 : vector<2x64xf32>
    %343 = arith.mulf %327, %341 : vector<2x64xf32>
    %344 = arith.addf %342, %343 : vector<2x64xf32>
    %345 = math.tanh %344 : vector<2x64xf32>
    %346 = arith.mulf %339, %345 : vector<2x64xf32>
    %c3_133 = arith.constant 3 : index
    %c0_134 = arith.constant 0 : index
    %c0_135 = arith.constant 0 : index
    %347 = vector.load %arg12[%c3_133, %c0_134, %c0_135] : memref<8x2x256xf32, #tpu.memory_space<vmem>>, vector<1x2x256xf32>
    %348 = vector.shape_cast %347 : vector<1x2x256xf32> to vector<2x256xf32>
    %349 = arith.truncf %286 : vector<2x64xf32> to vector<2x64xbf16>
    %c0_136 = arith.constant 0 : index
    %c0_137 = arith.constant 0 : index
    %350 = vector.load %arg4[%c0_136, %c0_137] : memref<64x256xbf16, #tpu.memory_space<vmem>>, vector<64x256xbf16>
    %cst_138 = arith.constant dense<0.000000e+00> : vector<2x256xf32>
    %351 = tpu.matmul %349, %350, %cst_138 {dimension_numbers = #tpu.dot_dimension_numbers<[1], [0], [0], [1], [0, 0, 1, 1], [], []>} : vector<2x64xbf16>, vector<64x256xbf16>, vector<2x256xf32> -> vector<2x256xf32>
    %352 = arith.addf %348, %351 : vector<2x256xf32>
    %353 = vector.extract_strided_slice %352 {offsets = [0, 0], sizes = [2, 64], strides = [1, 1]} : vector<2x256xf32> to vector<2x64xf32>
    %354 = arith.negf %353 : vector<2x64xf32>
    %355 = math.exp %354 : vector<2x64xf32>
    %cst_139 = arith.constant 1.000000e+00 : f32
    %356 = vector.broadcast %cst_139 : f32 to vector<2x64xf32>
    %357 = arith.addf %356, %355 : vector<2x64xf32>
    %358 = arith.divf %356, %357 : vector<2x64xf32>
    %359 = vector.extract_strided_slice %352 {offsets = [0, 64], sizes = [2, 64], strides = [1, 1]} : vector<2x256xf32> to vector<2x64xf32>
    %360 = arith.negf %359 : vector<2x64xf32>
    %361 = math.exp %360 : vector<2x64xf32>
    %cst_140 = arith.constant 1.000000e+00 : f32
    %362 = vector.broadcast %cst_140 : f32 to vector<2x64xf32>
    %363 = arith.addf %362, %361 : vector<2x64xf32>
    %364 = arith.divf %362, %363 : vector<2x64xf32>
    %365 = vector.extract_strided_slice %352 {offsets = [0, 128], sizes = [2, 64], strides = [1, 1]} : vector<2x256xf32> to vector<2x64xf32>
    %366 = arith.negf %365 : vector<2x64xf32>
    %367 = math.exp %366 : vector<2x64xf32>
    %cst_141 = arith.constant 1.000000e+00 : f32
    %368 = vector.broadcast %cst_141 : f32 to vector<2x64xf32>
    %369 = arith.addf %368, %367 : vector<2x64xf32>
    %370 = arith.divf %368, %369 : vector<2x64xf32>
    %371 = vector.extract_strided_slice %352 {offsets = [0, 192], sizes = [2, 64], strides = [1, 1]} : vector<2x256xf32> to vector<2x64xf32>
    %372 = math.tanh %371 : vector<2x64xf32>
    %373 = arith.mulf %364, %284 : vector<2x64xf32>
    %374 = arith.mulf %358, %372 : vector<2x64xf32>
    %375 = arith.addf %373, %374 : vector<2x64xf32>
    %376 = math.tanh %375 : vector<2x64xf32>
    %377 = arith.mulf %370, %376 : vector<2x64xf32>
    %378 = tpu.concatenate %377, %316 in 1 : vector<2x64xf32>, vector<2x64xf32> -> vector<2x128xf32>
    %379 = arith.truncf %378 : vector<2x128xf32> to vector<2x128xbf16>
    %c0_142 = arith.constant 0 : index
    %c0_143 = arith.constant 0 : index
    %380 = vector.load %arg5[%c0_142, %c0_143] : memref<128x256xbf16, #tpu.memory_space<vmem>>, vector<128x256xbf16>
    %cst_144 = arith.constant dense<0.000000e+00> : vector<2x256xf32>
    %381 = tpu.matmul %379, %380, %cst_144 {dimension_numbers = #tpu.dot_dimension_numbers<[1], [0], [0], [1], [0, 0, 1, 1], [], []>} : vector<2x128xbf16>, vector<128x256xbf16>, vector<2x256xf32> -> vector<2x256xf32>
    %382 = arith.addf %381, %5 : vector<2x256xf32>
    %383 = vector.extract_strided_slice %382 {offsets = [0, 0], sizes = [2, 64], strides = [1, 1]} : vector<2x256xf32> to vector<2x64xf32>
    %384 = arith.negf %383 : vector<2x64xf32>
    %385 = math.exp %384 : vector<2x64xf32>
    %cst_145 = arith.constant 1.000000e+00 : f32
    %386 = vector.broadcast %cst_145 : f32 to vector<2x64xf32>
    %387 = arith.addf %386, %385 : vector<2x64xf32>
    %388 = arith.divf %386, %387 : vector<2x64xf32>
    %389 = vector.extract_strided_slice %382 {offsets = [0, 64], sizes = [2, 64], strides = [1, 1]} : vector<2x256xf32> to vector<2x64xf32>
    %390 = arith.negf %389 : vector<2x64xf32>
    %391 = math.exp %390 : vector<2x64xf32>
    %cst_146 = arith.constant 1.000000e+00 : f32
    %392 = vector.broadcast %cst_146 : f32 to vector<2x64xf32>
    %393 = arith.addf %392, %391 : vector<2x64xf32>
    %394 = arith.divf %392, %393 : vector<2x64xf32>
    %395 = vector.extract_strided_slice %382 {offsets = [0, 128], sizes = [2, 64], strides = [1, 1]} : vector<2x256xf32> to vector<2x64xf32>
    %396 = arith.negf %395 : vector<2x64xf32>
    %397 = math.exp %396 : vector<2x64xf32>
    %cst_147 = arith.constant 1.000000e+00 : f32
    %398 = vector.broadcast %cst_147 : f32 to vector<2x64xf32>
    %399 = arith.addf %398, %397 : vector<2x64xf32>
    %400 = arith.divf %398, %399 : vector<2x64xf32>
    %401 = vector.extract_strided_slice %382 {offsets = [0, 192], sizes = [2, 64], strides = [1, 1]} : vector<2x256xf32> to vector<2x64xf32>
    %402 = math.tanh %401 : vector<2x64xf32>
    %403 = arith.mulf %394, %314 : vector<2x64xf32>
    %404 = arith.mulf %388, %402 : vector<2x64xf32>
    %405 = arith.addf %403, %404 : vector<2x64xf32>
    %406 = math.tanh %405 : vector<2x64xf32>
    %407 = arith.mulf %400, %406 : vector<2x64xf32>
    %408 = tpu.concatenate %407, %346 in 1 : vector<2x64xf32>, vector<2x64xf32> -> vector<2x128xf32>
    %409 = arith.truncf %408 : vector<2x128xf32> to vector<2x128xbf16>
    %c0_148 = arith.constant 0 : index
    %c0_149 = arith.constant 0 : index
    %410 = vector.load %arg7[%c0_148, %c0_149] : memref<128x256xbf16, #tpu.memory_space<vmem>>, vector<128x256xbf16>
    %cst_150 = arith.constant dense<0.000000e+00> : vector<2x256xf32>
    %411 = tpu.matmul %409, %410, %cst_150 {dimension_numbers = #tpu.dot_dimension_numbers<[1], [0], [0], [1], [0, 0, 1, 1], [], []>} : vector<2x128xbf16>, vector<128x256xbf16>, vector<2x256xf32> -> vector<2x256xf32>
    %412 = arith.addf %411, %8 : vector<2x256xf32>
    %413 = vector.extract_strided_slice %412 {offsets = [0, 0], sizes = [2, 64], strides = [1, 1]} : vector<2x256xf32> to vector<2x64xf32>
    %414 = arith.negf %413 : vector<2x64xf32>
    %415 = math.exp %414 : vector<2x64xf32>
    %cst_151 = arith.constant 1.000000e+00 : f32
    %416 = vector.broadcast %cst_151 : f32 to vector<2x64xf32>
    %417 = arith.addf %416, %415 : vector<2x64xf32>
    %418 = arith.divf %416, %417 : vector<2x64xf32>
    %419 = vector.extract_strided_slice %412 {offsets = [0, 64], sizes = [2, 64], strides = [1, 1]} : vector<2x256xf32> to vector<2x64xf32>
    %420 = arith.negf %419 : vector<2x64xf32>
    %421 = math.exp %420 : vector<2x64xf32>
    %cst_152 = arith.constant 1.000000e+00 : f32
    %422 = vector.broadcast %cst_152 : f32 to vector<2x64xf32>
    %423 = arith.addf %422, %421 : vector<2x64xf32>
    %424 = arith.divf %422, %423 : vector<2x64xf32>
    %425 = vector.extract_strided_slice %412 {offsets = [0, 128], sizes = [2, 64], strides = [1, 1]} : vector<2x256xf32> to vector<2x64xf32>
    %426 = arith.negf %425 : vector<2x64xf32>
    %427 = math.exp %426 : vector<2x64xf32>
    %cst_153 = arith.constant 1.000000e+00 : f32
    %428 = vector.broadcast %cst_153 : f32 to vector<2x64xf32>
    %429 = arith.addf %428, %427 : vector<2x64xf32>
    %430 = arith.divf %428, %429 : vector<2x64xf32>
    %431 = vector.extract_strided_slice %412 {offsets = [0, 192], sizes = [2, 64], strides = [1, 1]} : vector<2x256xf32> to vector<2x64xf32>
    %432 = math.tanh %431 : vector<2x64xf32>
    %433 = arith.mulf %424, %344 : vector<2x64xf32>
    %434 = arith.mulf %418, %432 : vector<2x64xf32>
    %435 = arith.addf %433, %434 : vector<2x64xf32>
    %436 = math.tanh %435 : vector<2x64xf32>
    %437 = arith.mulf %430, %436 : vector<2x64xf32>
    %c4_154 = arith.constant 4 : index
    %c0_155 = arith.constant 0 : index
    %c0_156 = arith.constant 0 : index
    %438 = vector.load %arg12[%c4_154, %c0_155, %c0_156] : memref<8x2x256xf32, #tpu.memory_space<vmem>>, vector<1x2x256xf32>
    %439 = vector.shape_cast %438 : vector<1x2x256xf32> to vector<2x256xf32>
    %440 = arith.truncf %377 : vector<2x64xf32> to vector<2x64xbf16>
    %c0_157 = arith.constant 0 : index
    %c0_158 = arith.constant 0 : index
    %441 = vector.load %arg4[%c0_157, %c0_158] : memref<64x256xbf16, #tpu.memory_space<vmem>>, vector<64x256xbf16>
    %cst_159 = arith.constant dense<0.000000e+00> : vector<2x256xf32>
    %442 = tpu.matmul %440, %441, %cst_159 {dimension_numbers = #tpu.dot_dimension_numbers<[1], [0], [0], [1], [0, 0, 1, 1], [], []>} : vector<2x64xbf16>, vector<64x256xbf16>, vector<2x256xf32> -> vector<2x256xf32>
    %443 = arith.addf %439, %442 : vector<2x256xf32>
    %444 = vector.extract_strided_slice %443 {offsets = [0, 0], sizes = [2, 64], strides = [1, 1]} : vector<2x256xf32> to vector<2x64xf32>
    %445 = arith.negf %444 : vector<2x64xf32>
    %446 = math.exp %445 : vector<2x64xf32>
    %cst_160 = arith.constant 1.000000e+00 : f32
    %447 = vector.broadcast %cst_160 : f32 to vector<2x64xf32>
    %448 = arith.addf %447, %446 : vector<2x64xf32>
    %449 = arith.divf %447, %448 : vector<2x64xf32>
    %450 = vector.extract_strided_slice %443 {offsets = [0, 64], sizes = [2, 64], strides = [1, 1]} : vector<2x256xf32> to vector<2x64xf32>
    %451 = arith.negf %450 : vector<2x64xf32>
    %452 = math.exp %451 : vector<2x64xf32>
    %cst_161 = arith.constant 1.000000e+00 : f32
    %453 = vector.broadcast %cst_161 : f32 to vector<2x64xf32>
    %454 = arith.addf %453, %452 : vector<2x64xf32>
    %455 = arith.divf %453, %454 : vector<2x64xf32>
    %456 = vector.extract_strided_slice %443 {offsets = [0, 128], sizes = [2, 64], strides = [1, 1]} : vector<2x256xf32> to vector<2x64xf32>
    %457 = arith.negf %456 : vector<2x64xf32>
    %458 = math.exp %457 : vector<2x64xf32>
    %cst_162 = arith.constant 1.000000e+00 : f32
    %459 = vector.broadcast %cst_162 : f32 to vector<2x64xf32>
    %460 = arith.addf %459, %458 : vector<2x64xf32>
    %461 = arith.divf %459, %460 : vector<2x64xf32>
    %462 = vector.extract_strided_slice %443 {offsets = [0, 192], sizes = [2, 64], strides = [1, 1]} : vector<2x256xf32> to vector<2x64xf32>
    %463 = math.tanh %462 : vector<2x64xf32>
    %464 = arith.mulf %455, %375 : vector<2x64xf32>
    %465 = arith.mulf %449, %463 : vector<2x64xf32>
    %466 = arith.addf %464, %465 : vector<2x64xf32>
    %467 = math.tanh %466 : vector<2x64xf32>
    %468 = arith.mulf %461, %467 : vector<2x64xf32>
    %469 = tpu.concatenate %468, %407 in 1 : vector<2x64xf32>, vector<2x64xf32> -> vector<2x128xf32>
    %470 = arith.truncf %469 : vector<2x128xf32> to vector<2x128xbf16>
    %c0_163 = arith.constant 0 : index
    %c0_164 = arith.constant 0 : index
    %471 = vector.load %arg5[%c0_163, %c0_164] : memref<128x256xbf16, #tpu.memory_space<vmem>>, vector<128x256xbf16>
    %cst_165 = arith.constant dense<0.000000e+00> : vector<2x256xf32>
    %472 = tpu.matmul %470, %471, %cst_165 {dimension_numbers = #tpu.dot_dimension_numbers<[1], [0], [0], [1], [0, 0, 1, 1], [], []>} : vector<2x128xbf16>, vector<128x256xbf16>, vector<2x256xf32> -> vector<2x256xf32>
    %473 = arith.addf %472, %5 : vector<2x256xf32>
    %474 = vector.extract_strided_slice %473 {offsets = [0, 0], sizes = [2, 64], strides = [1, 1]} : vector<2x256xf32> to vector<2x64xf32>
    %475 = arith.negf %474 : vector<2x64xf32>
    %476 = math.exp %475 : vector<2x64xf32>
    %cst_166 = arith.constant 1.000000e+00 : f32
    %477 = vector.broadcast %cst_166 : f32 to vector<2x64xf32>
    %478 = arith.addf %477, %476 : vector<2x64xf32>
    %479 = arith.divf %477, %478 : vector<2x64xf32>
    %480 = vector.extract_strided_slice %473 {offsets = [0, 64], sizes = [2, 64], strides = [1, 1]} : vector<2x256xf32> to vector<2x64xf32>
    %481 = arith.negf %480 : vector<2x64xf32>
    %482 = math.exp %481 : vector<2x64xf32>
    %cst_167 = arith.constant 1.000000e+00 : f32
    %483 = vector.broadcast %cst_167 : f32 to vector<2x64xf32>
    %484 = arith.addf %483, %482 : vector<2x64xf32>
    %485 = arith.divf %483, %484 : vector<2x64xf32>
    %486 = vector.extract_strided_slice %473 {offsets = [0, 128], sizes = [2, 64], strides = [1, 1]} : vector<2x256xf32> to vector<2x64xf32>
    %487 = arith.negf %486 : vector<2x64xf32>
    %488 = math.exp %487 : vector<2x64xf32>
    %cst_168 = arith.constant 1.000000e+00 : f32
    %489 = vector.broadcast %cst_168 : f32 to vector<2x64xf32>
    %490 = arith.addf %489, %488 : vector<2x64xf32>
    %491 = arith.divf %489, %490 : vector<2x64xf32>
    %492 = vector.extract_strided_slice %473 {offsets = [0, 192], sizes = [2, 64], strides = [1, 1]} : vector<2x256xf32> to vector<2x64xf32>
    %493 = math.tanh %492 : vector<2x64xf32>
    %494 = arith.mulf %485, %405 : vector<2x64xf32>
    %495 = arith.mulf %479, %493 : vector<2x64xf32>
    %496 = arith.addf %494, %495 : vector<2x64xf32>
    %497 = math.tanh %496 : vector<2x64xf32>
    %498 = arith.mulf %491, %497 : vector<2x64xf32>
    %499 = tpu.concatenate %498, %437 in 1 : vector<2x64xf32>, vector<2x64xf32> -> vector<2x128xf32>
    %500 = arith.truncf %499 : vector<2x128xf32> to vector<2x128xbf16>
    %c0_169 = arith.constant 0 : index
    %c0_170 = arith.constant 0 : index
    %501 = vector.load %arg7[%c0_169, %c0_170] : memref<128x256xbf16, #tpu.memory_space<vmem>>, vector<128x256xbf16>
    %cst_171 = arith.constant dense<0.000000e+00> : vector<2x256xf32>
    %502 = tpu.matmul %500, %501, %cst_171 {dimension_numbers = #tpu.dot_dimension_numbers<[1], [0], [0], [1], [0, 0, 1, 1], [], []>} : vector<2x128xbf16>, vector<128x256xbf16>, vector<2x256xf32> -> vector<2x256xf32>
    %503 = arith.addf %502, %8 : vector<2x256xf32>
    %504 = vector.extract_strided_slice %503 {offsets = [0, 0], sizes = [2, 64], strides = [1, 1]} : vector<2x256xf32> to vector<2x64xf32>
    %505 = arith.negf %504 : vector<2x64xf32>
    %506 = math.exp %505 : vector<2x64xf32>
    %cst_172 = arith.constant 1.000000e+00 : f32
    %507 = vector.broadcast %cst_172 : f32 to vector<2x64xf32>
    %508 = arith.addf %507, %506 : vector<2x64xf32>
    %509 = arith.divf %507, %508 : vector<2x64xf32>
    %510 = vector.extract_strided_slice %503 {offsets = [0, 64], sizes = [2, 64], strides = [1, 1]} : vector<2x256xf32> to vector<2x64xf32>
    %511 = arith.negf %510 : vector<2x64xf32>
    %512 = math.exp %511 : vector<2x64xf32>
    %cst_173 = arith.constant 1.000000e+00 : f32
    %513 = vector.broadcast %cst_173 : f32 to vector<2x64xf32>
    %514 = arith.addf %513, %512 : vector<2x64xf32>
    %515 = arith.divf %513, %514 : vector<2x64xf32>
    %516 = vector.extract_strided_slice %503 {offsets = [0, 128], sizes = [2, 64], strides = [1, 1]} : vector<2x256xf32> to vector<2x64xf32>
    %517 = arith.negf %516 : vector<2x64xf32>
    %518 = math.exp %517 : vector<2x64xf32>
    %cst_174 = arith.constant 1.000000e+00 : f32
    %519 = vector.broadcast %cst_174 : f32 to vector<2x64xf32>
    %520 = arith.addf %519, %518 : vector<2x64xf32>
    %521 = arith.divf %519, %520 : vector<2x64xf32>
    %522 = vector.extract_strided_slice %503 {offsets = [0, 192], sizes = [2, 64], strides = [1, 1]} : vector<2x256xf32> to vector<2x64xf32>
    %523 = math.tanh %522 : vector<2x64xf32>
    %524 = arith.mulf %515, %435 : vector<2x64xf32>
    %525 = arith.mulf %509, %523 : vector<2x64xf32>
    %526 = arith.addf %524, %525 : vector<2x64xf32>
    %527 = math.tanh %526 : vector<2x64xf32>
    %528 = arith.mulf %521, %527 : vector<2x64xf32>
    %c5_175 = arith.constant 5 : index
    %c0_176 = arith.constant 0 : index
    %c0_177 = arith.constant 0 : index
    %529 = vector.load %arg12[%c5_175, %c0_176, %c0_177] : memref<8x2x256xf32, #tpu.memory_space<vmem>>, vector<1x2x256xf32>
    %530 = vector.shape_cast %529 : vector<1x2x256xf32> to vector<2x256xf32>
    %531 = arith.truncf %468 : vector<2x64xf32> to vector<2x64xbf16>
    %c0_178 = arith.constant 0 : index
    %c0_179 = arith.constant 0 : index
    %532 = vector.load %arg4[%c0_178, %c0_179] : memref<64x256xbf16, #tpu.memory_space<vmem>>, vector<64x256xbf16>
    %cst_180 = arith.constant dense<0.000000e+00> : vector<2x256xf32>
    %533 = tpu.matmul %531, %532, %cst_180 {dimension_numbers = #tpu.dot_dimension_numbers<[1], [0], [0], [1], [0, 0, 1, 1], [], []>} : vector<2x64xbf16>, vector<64x256xbf16>, vector<2x256xf32> -> vector<2x256xf32>
    %534 = arith.addf %530, %533 : vector<2x256xf32>
    %535 = vector.extract_strided_slice %534 {offsets = [0, 0], sizes = [2, 64], strides = [1, 1]} : vector<2x256xf32> to vector<2x64xf32>
    %536 = arith.negf %535 : vector<2x64xf32>
    %537 = math.exp %536 : vector<2x64xf32>
    %cst_181 = arith.constant 1.000000e+00 : f32
    %538 = vector.broadcast %cst_181 : f32 to vector<2x64xf32>
    %539 = arith.addf %538, %537 : vector<2x64xf32>
    %540 = arith.divf %538, %539 : vector<2x64xf32>
    %541 = vector.extract_strided_slice %534 {offsets = [0, 64], sizes = [2, 64], strides = [1, 1]} : vector<2x256xf32> to vector<2x64xf32>
    %542 = arith.negf %541 : vector<2x64xf32>
    %543 = math.exp %542 : vector<2x64xf32>
    %cst_182 = arith.constant 1.000000e+00 : f32
    %544 = vector.broadcast %cst_182 : f32 to vector<2x64xf32>
    %545 = arith.addf %544, %543 : vector<2x64xf32>
    %546 = arith.divf %544, %545 : vector<2x64xf32>
    %547 = vector.extract_strided_slice %534 {offsets = [0, 128], sizes = [2, 64], strides = [1, 1]} : vector<2x256xf32> to vector<2x64xf32>
    %548 = arith.negf %547 : vector<2x64xf32>
    %549 = math.exp %548 : vector<2x64xf32>
    %cst_183 = arith.constant 1.000000e+00 : f32
    %550 = vector.broadcast %cst_183 : f32 to vector<2x64xf32>
    %551 = arith.addf %550, %549 : vector<2x64xf32>
    %552 = arith.divf %550, %551 : vector<2x64xf32>
    %553 = vector.extract_strided_slice %534 {offsets = [0, 192], sizes = [2, 64], strides = [1, 1]} : vector<2x256xf32> to vector<2x64xf32>
    %554 = math.tanh %553 : vector<2x64xf32>
    %555 = arith.mulf %546, %466 : vector<2x64xf32>
    %556 = arith.mulf %540, %554 : vector<2x64xf32>
    %557 = arith.addf %555, %556 : vector<2x64xf32>
    %558 = math.tanh %557 : vector<2x64xf32>
    %559 = arith.mulf %552, %558 : vector<2x64xf32>
    %560 = tpu.concatenate %559, %498 in 1 : vector<2x64xf32>, vector<2x64xf32> -> vector<2x128xf32>
    %561 = arith.truncf %560 : vector<2x128xf32> to vector<2x128xbf16>
    %c0_184 = arith.constant 0 : index
    %c0_185 = arith.constant 0 : index
    %562 = vector.load %arg5[%c0_184, %c0_185] : memref<128x256xbf16, #tpu.memory_space<vmem>>, vector<128x256xbf16>
    %cst_186 = arith.constant dense<0.000000e+00> : vector<2x256xf32>
    %563 = tpu.matmul %561, %562, %cst_186 {dimension_numbers = #tpu.dot_dimension_numbers<[1], [0], [0], [1], [0, 0, 1, 1], [], []>} : vector<2x128xbf16>, vector<128x256xbf16>, vector<2x256xf32> -> vector<2x256xf32>
    %564 = arith.addf %563, %5 : vector<2x256xf32>
    %565 = vector.extract_strided_slice %564 {offsets = [0, 0], sizes = [2, 64], strides = [1, 1]} : vector<2x256xf32> to vector<2x64xf32>
    %566 = arith.negf %565 : vector<2x64xf32>
    %567 = math.exp %566 : vector<2x64xf32>
    %cst_187 = arith.constant 1.000000e+00 : f32
    %568 = vector.broadcast %cst_187 : f32 to vector<2x64xf32>
    %569 = arith.addf %568, %567 : vector<2x64xf32>
    %570 = arith.divf %568, %569 : vector<2x64xf32>
    %571 = vector.extract_strided_slice %564 {offsets = [0, 64], sizes = [2, 64], strides = [1, 1]} : vector<2x256xf32> to vector<2x64xf32>
    %572 = arith.negf %571 : vector<2x64xf32>
    %573 = math.exp %572 : vector<2x64xf32>
    %cst_188 = arith.constant 1.000000e+00 : f32
    %574 = vector.broadcast %cst_188 : f32 to vector<2x64xf32>
    %575 = arith.addf %574, %573 : vector<2x64xf32>
    %576 = arith.divf %574, %575 : vector<2x64xf32>
    %577 = vector.extract_strided_slice %564 {offsets = [0, 128], sizes = [2, 64], strides = [1, 1]} : vector<2x256xf32> to vector<2x64xf32>
    %578 = arith.negf %577 : vector<2x64xf32>
    %579 = math.exp %578 : vector<2x64xf32>
    %cst_189 = arith.constant 1.000000e+00 : f32
    %580 = vector.broadcast %cst_189 : f32 to vector<2x64xf32>
    %581 = arith.addf %580, %579 : vector<2x64xf32>
    %582 = arith.divf %580, %581 : vector<2x64xf32>
    %583 = vector.extract_strided_slice %564 {offsets = [0, 192], sizes = [2, 64], strides = [1, 1]} : vector<2x256xf32> to vector<2x64xf32>
    %584 = math.tanh %583 : vector<2x64xf32>
    %585 = arith.mulf %576, %496 : vector<2x64xf32>
    %586 = arith.mulf %570, %584 : vector<2x64xf32>
    %587 = arith.addf %585, %586 : vector<2x64xf32>
    %588 = math.tanh %587 : vector<2x64xf32>
    %589 = arith.mulf %582, %588 : vector<2x64xf32>
    %590 = tpu.concatenate %589, %528 in 1 : vector<2x64xf32>, vector<2x64xf32> -> vector<2x128xf32>
    %591 = arith.truncf %590 : vector<2x128xf32> to vector<2x128xbf16>
    %c0_190 = arith.constant 0 : index
    %c0_191 = arith.constant 0 : index
    %592 = vector.load %arg7[%c0_190, %c0_191] : memref<128x256xbf16, #tpu.memory_space<vmem>>, vector<128x256xbf16>
    %cst_192 = arith.constant dense<0.000000e+00> : vector<2x256xf32>
    %593 = tpu.matmul %591, %592, %cst_192 {dimension_numbers = #tpu.dot_dimension_numbers<[1], [0], [0], [1], [0, 0, 1, 1], [], []>} : vector<2x128xbf16>, vector<128x256xbf16>, vector<2x256xf32> -> vector<2x256xf32>
    %594 = arith.addf %593, %8 : vector<2x256xf32>
    %595 = vector.extract_strided_slice %594 {offsets = [0, 0], sizes = [2, 64], strides = [1, 1]} : vector<2x256xf32> to vector<2x64xf32>
    %596 = arith.negf %595 : vector<2x64xf32>
    %597 = math.exp %596 : vector<2x64xf32>
    %cst_193 = arith.constant 1.000000e+00 : f32
    %598 = vector.broadcast %cst_193 : f32 to vector<2x64xf32>
    %599 = arith.addf %598, %597 : vector<2x64xf32>
    %600 = arith.divf %598, %599 : vector<2x64xf32>
    %601 = vector.extract_strided_slice %594 {offsets = [0, 64], sizes = [2, 64], strides = [1, 1]} : vector<2x256xf32> to vector<2x64xf32>
    %602 = arith.negf %601 : vector<2x64xf32>
    %603 = math.exp %602 : vector<2x64xf32>
    %cst_194 = arith.constant 1.000000e+00 : f32
    %604 = vector.broadcast %cst_194 : f32 to vector<2x64xf32>
    %605 = arith.addf %604, %603 : vector<2x64xf32>
    %606 = arith.divf %604, %605 : vector<2x64xf32>
    %607 = vector.extract_strided_slice %594 {offsets = [0, 128], sizes = [2, 64], strides = [1, 1]} : vector<2x256xf32> to vector<2x64xf32>
    %608 = arith.negf %607 : vector<2x64xf32>
    %609 = math.exp %608 : vector<2x64xf32>
    %cst_195 = arith.constant 1.000000e+00 : f32
    %610 = vector.broadcast %cst_195 : f32 to vector<2x64xf32>
    %611 = arith.addf %610, %609 : vector<2x64xf32>
    %612 = arith.divf %610, %611 : vector<2x64xf32>
    %613 = vector.extract_strided_slice %594 {offsets = [0, 192], sizes = [2, 64], strides = [1, 1]} : vector<2x256xf32> to vector<2x64xf32>
    %614 = math.tanh %613 : vector<2x64xf32>
    %615 = arith.mulf %606, %526 : vector<2x64xf32>
    %616 = arith.mulf %600, %614 : vector<2x64xf32>
    %617 = arith.addf %615, %616 : vector<2x64xf32>
    %618 = math.tanh %617 : vector<2x64xf32>
    %619 = arith.mulf %612, %618 : vector<2x64xf32>
    %c6_196 = arith.constant 6 : index
    %c0_197 = arith.constant 0 : index
    %c0_198 = arith.constant 0 : index
    %620 = vector.load %arg12[%c6_196, %c0_197, %c0_198] : memref<8x2x256xf32, #tpu.memory_space<vmem>>, vector<1x2x256xf32>
    %621 = vector.shape_cast %620 : vector<1x2x256xf32> to vector<2x256xf32>
    %622 = arith.truncf %559 : vector<2x64xf32> to vector<2x64xbf16>
    %c0_199 = arith.constant 0 : index
    %c0_200 = arith.constant 0 : index
    %623 = vector.load %arg4[%c0_199, %c0_200] : memref<64x256xbf16, #tpu.memory_space<vmem>>, vector<64x256xbf16>
    %cst_201 = arith.constant dense<0.000000e+00> : vector<2x256xf32>
    %624 = tpu.matmul %622, %623, %cst_201 {dimension_numbers = #tpu.dot_dimension_numbers<[1], [0], [0], [1], [0, 0, 1, 1], [], []>} : vector<2x64xbf16>, vector<64x256xbf16>, vector<2x256xf32> -> vector<2x256xf32>
    %625 = arith.addf %621, %624 : vector<2x256xf32>
    %626 = vector.extract_strided_slice %625 {offsets = [0, 0], sizes = [2, 64], strides = [1, 1]} : vector<2x256xf32> to vector<2x64xf32>
    %627 = arith.negf %626 : vector<2x64xf32>
    %628 = math.exp %627 : vector<2x64xf32>
    %cst_202 = arith.constant 1.000000e+00 : f32
    %629 = vector.broadcast %cst_202 : f32 to vector<2x64xf32>
    %630 = arith.addf %629, %628 : vector<2x64xf32>
    %631 = arith.divf %629, %630 : vector<2x64xf32>
    %632 = vector.extract_strided_slice %625 {offsets = [0, 64], sizes = [2, 64], strides = [1, 1]} : vector<2x256xf32> to vector<2x64xf32>
    %633 = arith.negf %632 : vector<2x64xf32>
    %634 = math.exp %633 : vector<2x64xf32>
    %cst_203 = arith.constant 1.000000e+00 : f32
    %635 = vector.broadcast %cst_203 : f32 to vector<2x64xf32>
    %636 = arith.addf %635, %634 : vector<2x64xf32>
    %637 = arith.divf %635, %636 : vector<2x64xf32>
    %638 = vector.extract_strided_slice %625 {offsets = [0, 128], sizes = [2, 64], strides = [1, 1]} : vector<2x256xf32> to vector<2x64xf32>
    %639 = arith.negf %638 : vector<2x64xf32>
    %640 = math.exp %639 : vector<2x64xf32>
    %cst_204 = arith.constant 1.000000e+00 : f32
    %641 = vector.broadcast %cst_204 : f32 to vector<2x64xf32>
    %642 = arith.addf %641, %640 : vector<2x64xf32>
    %643 = arith.divf %641, %642 : vector<2x64xf32>
    %644 = vector.extract_strided_slice %625 {offsets = [0, 192], sizes = [2, 64], strides = [1, 1]} : vector<2x256xf32> to vector<2x64xf32>
    %645 = math.tanh %644 : vector<2x64xf32>
    %646 = arith.mulf %637, %557 : vector<2x64xf32>
    %647 = arith.mulf %631, %645 : vector<2x64xf32>
    %648 = arith.addf %646, %647 : vector<2x64xf32>
    %649 = math.tanh %648 : vector<2x64xf32>
    %650 = arith.mulf %643, %649 : vector<2x64xf32>
    %651 = tpu.concatenate %650, %589 in 1 : vector<2x64xf32>, vector<2x64xf32> -> vector<2x128xf32>
    %652 = arith.truncf %651 : vector<2x128xf32> to vector<2x128xbf16>
    %c0_205 = arith.constant 0 : index
    %c0_206 = arith.constant 0 : index
    %653 = vector.load %arg5[%c0_205, %c0_206] : memref<128x256xbf16, #tpu.memory_space<vmem>>, vector<128x256xbf16>
    %cst_207 = arith.constant dense<0.000000e+00> : vector<2x256xf32>
    %654 = tpu.matmul %652, %653, %cst_207 {dimension_numbers = #tpu.dot_dimension_numbers<[1], [0], [0], [1], [0, 0, 1, 1], [], []>} : vector<2x128xbf16>, vector<128x256xbf16>, vector<2x256xf32> -> vector<2x256xf32>
    %655 = arith.addf %654, %5 : vector<2x256xf32>
    %656 = vector.extract_strided_slice %655 {offsets = [0, 0], sizes = [2, 64], strides = [1, 1]} : vector<2x256xf32> to vector<2x64xf32>
    %657 = arith.negf %656 : vector<2x64xf32>
    %658 = math.exp %657 : vector<2x64xf32>
    %cst_208 = arith.constant 1.000000e+00 : f32
    %659 = vector.broadcast %cst_208 : f32 to vector<2x64xf32>
    %660 = arith.addf %659, %658 : vector<2x64xf32>
    %661 = arith.divf %659, %660 : vector<2x64xf32>
    %662 = vector.extract_strided_slice %655 {offsets = [0, 64], sizes = [2, 64], strides = [1, 1]} : vector<2x256xf32> to vector<2x64xf32>
    %663 = arith.negf %662 : vector<2x64xf32>
    %664 = math.exp %663 : vector<2x64xf32>
    %cst_209 = arith.constant 1.000000e+00 : f32
    %665 = vector.broadcast %cst_209 : f32 to vector<2x64xf32>
    %666 = arith.addf %665, %664 : vector<2x64xf32>
    %667 = arith.divf %665, %666 : vector<2x64xf32>
    %668 = vector.extract_strided_slice %655 {offsets = [0, 128], sizes = [2, 64], strides = [1, 1]} : vector<2x256xf32> to vector<2x64xf32>
    %669 = arith.negf %668 : vector<2x64xf32>
    %670 = math.exp %669 : vector<2x64xf32>
    %cst_210 = arith.constant 1.000000e+00 : f32
    %671 = vector.broadcast %cst_210 : f32 to vector<2x64xf32>
    %672 = arith.addf %671, %670 : vector<2x64xf32>
    %673 = arith.divf %671, %672 : vector<2x64xf32>
    %674 = vector.extract_strided_slice %655 {offsets = [0, 192], sizes = [2, 64], strides = [1, 1]} : vector<2x256xf32> to vector<2x64xf32>
    %675 = math.tanh %674 : vector<2x64xf32>
    %676 = arith.mulf %667, %587 : vector<2x64xf32>
    %677 = arith.mulf %661, %675 : vector<2x64xf32>
    %678 = arith.addf %676, %677 : vector<2x64xf32>
    %679 = math.tanh %678 : vector<2x64xf32>
    %680 = arith.mulf %673, %679 : vector<2x64xf32>
    %681 = tpu.concatenate %680, %619 in 1 : vector<2x64xf32>, vector<2x64xf32> -> vector<2x128xf32>
    %682 = arith.truncf %681 : vector<2x128xf32> to vector<2x128xbf16>
    %c0_211 = arith.constant 0 : index
    %c0_212 = arith.constant 0 : index
    %683 = vector.load %arg7[%c0_211, %c0_212] : memref<128x256xbf16, #tpu.memory_space<vmem>>, vector<128x256xbf16>
    %cst_213 = arith.constant dense<0.000000e+00> : vector<2x256xf32>
    %684 = tpu.matmul %682, %683, %cst_213 {dimension_numbers = #tpu.dot_dimension_numbers<[1], [0], [0], [1], [0, 0, 1, 1], [], []>} : vector<2x128xbf16>, vector<128x256xbf16>, vector<2x256xf32> -> vector<2x256xf32>
    %685 = arith.addf %684, %8 : vector<2x256xf32>
    %686 = vector.extract_strided_slice %685 {offsets = [0, 0], sizes = [2, 64], strides = [1, 1]} : vector<2x256xf32> to vector<2x64xf32>
    %687 = arith.negf %686 : vector<2x64xf32>
    %688 = math.exp %687 : vector<2x64xf32>
    %cst_214 = arith.constant 1.000000e+00 : f32
    %689 = vector.broadcast %cst_214 : f32 to vector<2x64xf32>
    %690 = arith.addf %689, %688 : vector<2x64xf32>
    %691 = arith.divf %689, %690 : vector<2x64xf32>
    %692 = vector.extract_strided_slice %685 {offsets = [0, 64], sizes = [2, 64], strides = [1, 1]} : vector<2x256xf32> to vector<2x64xf32>
    %693 = arith.negf %692 : vector<2x64xf32>
    %694 = math.exp %693 : vector<2x64xf32>
    %cst_215 = arith.constant 1.000000e+00 : f32
    %695 = vector.broadcast %cst_215 : f32 to vector<2x64xf32>
    %696 = arith.addf %695, %694 : vector<2x64xf32>
    %697 = arith.divf %695, %696 : vector<2x64xf32>
    %698 = vector.extract_strided_slice %685 {offsets = [0, 128], sizes = [2, 64], strides = [1, 1]} : vector<2x256xf32> to vector<2x64xf32>
    %699 = arith.negf %698 : vector<2x64xf32>
    %700 = math.exp %699 : vector<2x64xf32>
    %cst_216 = arith.constant 1.000000e+00 : f32
    %701 = vector.broadcast %cst_216 : f32 to vector<2x64xf32>
    %702 = arith.addf %701, %700 : vector<2x64xf32>
    %703 = arith.divf %701, %702 : vector<2x64xf32>
    %704 = vector.extract_strided_slice %685 {offsets = [0, 192], sizes = [2, 64], strides = [1, 1]} : vector<2x256xf32> to vector<2x64xf32>
    %705 = math.tanh %704 : vector<2x64xf32>
    %706 = arith.mulf %697, %617 : vector<2x64xf32>
    %707 = arith.mulf %691, %705 : vector<2x64xf32>
    %708 = arith.addf %706, %707 : vector<2x64xf32>
    %709 = math.tanh %708 : vector<2x64xf32>
    %710 = arith.mulf %703, %709 : vector<2x64xf32>
    %c7_217 = arith.constant 7 : index
    %c0_218 = arith.constant 0 : index
    %c0_219 = arith.constant 0 : index
    %711 = vector.load %arg12[%c7_217, %c0_218, %c0_219] : memref<8x2x256xf32, #tpu.memory_space<vmem>>, vector<1x2x256xf32>
    %712 = vector.shape_cast %711 : vector<1x2x256xf32> to vector<2x256xf32>
    %713 = arith.truncf %650 : vector<2x64xf32> to vector<2x64xbf16>
    %c0_220 = arith.constant 0 : index
    %c0_221 = arith.constant 0 : index
    %714 = vector.load %arg4[%c0_220, %c0_221] : memref<64x256xbf16, #tpu.memory_space<vmem>>, vector<64x256xbf16>
    %cst_222 = arith.constant dense<0.000000e+00> : vector<2x256xf32>
    %715 = tpu.matmul %713, %714, %cst_222 {dimension_numbers = #tpu.dot_dimension_numbers<[1], [0], [0], [1], [0, 0, 1, 1], [], []>} : vector<2x64xbf16>, vector<64x256xbf16>, vector<2x256xf32> -> vector<2x256xf32>
    %716 = arith.addf %712, %715 : vector<2x256xf32>
    %717 = vector.extract_strided_slice %716 {offsets = [0, 0], sizes = [2, 64], strides = [1, 1]} : vector<2x256xf32> to vector<2x64xf32>
    %718 = arith.negf %717 : vector<2x64xf32>
    %719 = math.exp %718 : vector<2x64xf32>
    %cst_223 = arith.constant 1.000000e+00 : f32
    %720 = vector.broadcast %cst_223 : f32 to vector<2x64xf32>
    %721 = arith.addf %720, %719 : vector<2x64xf32>
    %722 = arith.divf %720, %721 : vector<2x64xf32>
    %723 = vector.extract_strided_slice %716 {offsets = [0, 64], sizes = [2, 64], strides = [1, 1]} : vector<2x256xf32> to vector<2x64xf32>
    %724 = arith.negf %723 : vector<2x64xf32>
    %725 = math.exp %724 : vector<2x64xf32>
    %cst_224 = arith.constant 1.000000e+00 : f32
    %726 = vector.broadcast %cst_224 : f32 to vector<2x64xf32>
    %727 = arith.addf %726, %725 : vector<2x64xf32>
    %728 = arith.divf %726, %727 : vector<2x64xf32>
    %729 = vector.extract_strided_slice %716 {offsets = [0, 128], sizes = [2, 64], strides = [1, 1]} : vector<2x256xf32> to vector<2x64xf32>
    %730 = arith.negf %729 : vector<2x64xf32>
    %731 = math.exp %730 : vector<2x64xf32>
    %cst_225 = arith.constant 1.000000e+00 : f32
    %732 = vector.broadcast %cst_225 : f32 to vector<2x64xf32>
    %733 = arith.addf %732, %731 : vector<2x64xf32>
    %734 = arith.divf %732, %733 : vector<2x64xf32>
    %735 = vector.extract_strided_slice %716 {offsets = [0, 192], sizes = [2, 64], strides = [1, 1]} : vector<2x256xf32> to vector<2x64xf32>
    %736 = math.tanh %735 : vector<2x64xf32>
    %737 = arith.mulf %728, %648 : vector<2x64xf32>
    %738 = arith.mulf %722, %736 : vector<2x64xf32>
    %739 = arith.addf %737, %738 : vector<2x64xf32>
    %740 = math.tanh %739 : vector<2x64xf32>
    %741 = arith.mulf %734, %740 : vector<2x64xf32>
    %742 = tpu.concatenate %741, %680 in 1 : vector<2x64xf32>, vector<2x64xf32> -> vector<2x128xf32>
    %743 = arith.truncf %742 : vector<2x128xf32> to vector<2x128xbf16>
    %c0_226 = arith.constant 0 : index
    %c0_227 = arith.constant 0 : index
    %744 = vector.load %arg5[%c0_226, %c0_227] : memref<128x256xbf16, #tpu.memory_space<vmem>>, vector<128x256xbf16>
    %cst_228 = arith.constant dense<0.000000e+00> : vector<2x256xf32>
    %745 = tpu.matmul %743, %744, %cst_228 {dimension_numbers = #tpu.dot_dimension_numbers<[1], [0], [0], [1], [0, 0, 1, 1], [], []>} : vector<2x128xbf16>, vector<128x256xbf16>, vector<2x256xf32> -> vector<2x256xf32>
    %746 = arith.addf %745, %5 : vector<2x256xf32>
    %747 = vector.extract_strided_slice %746 {offsets = [0, 0], sizes = [2, 64], strides = [1, 1]} : vector<2x256xf32> to vector<2x64xf32>
    %748 = arith.negf %747 : vector<2x64xf32>
    %749 = math.exp %748 : vector<2x64xf32>
    %cst_229 = arith.constant 1.000000e+00 : f32
    %750 = vector.broadcast %cst_229 : f32 to vector<2x64xf32>
    %751 = arith.addf %750, %749 : vector<2x64xf32>
    %752 = arith.divf %750, %751 : vector<2x64xf32>
    %753 = vector.extract_strided_slice %746 {offsets = [0, 64], sizes = [2, 64], strides = [1, 1]} : vector<2x256xf32> to vector<2x64xf32>
    %754 = arith.negf %753 : vector<2x64xf32>
    %755 = math.exp %754 : vector<2x64xf32>
    %cst_230 = arith.constant 1.000000e+00 : f32
    %756 = vector.broadcast %cst_230 : f32 to vector<2x64xf32>
    %757 = arith.addf %756, %755 : vector<2x64xf32>
    %758 = arith.divf %756, %757 : vector<2x64xf32>
    %759 = vector.extract_strided_slice %746 {offsets = [0, 128], sizes = [2, 64], strides = [1, 1]} : vector<2x256xf32> to vector<2x64xf32>
    %760 = arith.negf %759 : vector<2x64xf32>
    %761 = math.exp %760 : vector<2x64xf32>
    %cst_231 = arith.constant 1.000000e+00 : f32
    %762 = vector.broadcast %cst_231 : f32 to vector<2x64xf32>
    %763 = arith.addf %762, %761 : vector<2x64xf32>
    %764 = arith.divf %762, %763 : vector<2x64xf32>
    %765 = vector.extract_strided_slice %746 {offsets = [0, 192], sizes = [2, 64], strides = [1, 1]} : vector<2x256xf32> to vector<2x64xf32>
    %766 = math.tanh %765 : vector<2x64xf32>
    %767 = arith.mulf %758, %678 : vector<2x64xf32>
    %768 = arith.mulf %752, %766 : vector<2x64xf32>
    %769 = arith.addf %767, %768 : vector<2x64xf32>
    %770 = math.tanh %769 : vector<2x64xf32>
    %771 = arith.mulf %764, %770 : vector<2x64xf32>
    %772 = tpu.concatenate %771, %710 in 1 : vector<2x64xf32>, vector<2x64xf32> -> vector<2x128xf32>
    %773 = arith.truncf %772 : vector<2x128xf32> to vector<2x128xbf16>
    %c0_232 = arith.constant 0 : index
    %c0_233 = arith.constant 0 : index
    %774 = vector.load %arg7[%c0_232, %c0_233] : memref<128x256xbf16, #tpu.memory_space<vmem>>, vector<128x256xbf16>
    %cst_234 = arith.constant dense<0.000000e+00> : vector<2x256xf32>
    %775 = tpu.matmul %773, %774, %cst_234 {dimension_numbers = #tpu.dot_dimension_numbers<[1], [0], [0], [1], [0, 0, 1, 1], [], []>} : vector<2x128xbf16>, vector<128x256xbf16>, vector<2x256xf32> -> vector<2x256xf32>
    %776 = arith.addf %775, %8 : vector<2x256xf32>
    %777 = vector.extract_strided_slice %776 {offsets = [0, 0], sizes = [2, 64], strides = [1, 1]} : vector<2x256xf32> to vector<2x64xf32>
    %778 = arith.negf %777 : vector<2x64xf32>
    %779 = math.exp %778 : vector<2x64xf32>
    %cst_235 = arith.constant 1.000000e+00 : f32
    %780 = vector.broadcast %cst_235 : f32 to vector<2x64xf32>
    %781 = arith.addf %780, %779 : vector<2x64xf32>
    %782 = arith.divf %780, %781 : vector<2x64xf32>
    %783 = vector.extract_strided_slice %776 {offsets = [0, 64], sizes = [2, 64], strides = [1, 1]} : vector<2x256xf32> to vector<2x64xf32>
    %784 = arith.negf %783 : vector<2x64xf32>
    %785 = math.exp %784 : vector<2x64xf32>
    %cst_236 = arith.constant 1.000000e+00 : f32
    %786 = vector.broadcast %cst_236 : f32 to vector<2x64xf32>
    %787 = arith.addf %786, %785 : vector<2x64xf32>
    %788 = arith.divf %786, %787 : vector<2x64xf32>
    %789 = vector.extract_strided_slice %776 {offsets = [0, 128], sizes = [2, 64], strides = [1, 1]} : vector<2x256xf32> to vector<2x64xf32>
    %790 = arith.negf %789 : vector<2x64xf32>
    %791 = math.exp %790 : vector<2x64xf32>
    %cst_237 = arith.constant 1.000000e+00 : f32
    %792 = vector.broadcast %cst_237 : f32 to vector<2x64xf32>
    %793 = arith.addf %792, %791 : vector<2x64xf32>
    %794 = arith.divf %792, %793 : vector<2x64xf32>
    %795 = vector.extract_strided_slice %776 {offsets = [0, 192], sizes = [2, 64], strides = [1, 1]} : vector<2x256xf32> to vector<2x64xf32>
    %796 = math.tanh %795 : vector<2x64xf32>
    %797 = arith.mulf %788, %708 : vector<2x64xf32>
    %798 = arith.mulf %782, %796 : vector<2x64xf32>
    %799 = arith.addf %797, %798 : vector<2x64xf32>
    %800 = math.tanh %799 : vector<2x64xf32>
    %801 = arith.mulf %794, %800 : vector<2x64xf32>
    %802 = arith.truncf %801 : vector<2x64xf32> to vector<2x64xbf16>
    %c0_238 = arith.constant 0 : index
    %c0_239 = arith.constant 0 : index
    %803 = vector.load %arg9[%c0_238, %c0_239] : memref<64x128xbf16, #tpu.memory_space<vmem>>, vector<64x128xbf16>
    %cst_240 = arith.constant dense<0.000000e+00> : vector<2x128xf32>
    %804 = tpu.matmul %802, %803, %cst_240 {dimension_numbers = #tpu.dot_dimension_numbers<[1], [0], [0], [1], [0, 0, 1, 1], [], []>} : vector<2x64xbf16>, vector<64x128xbf16>, vector<2x128xf32> -> vector<2x128xf32>
    %c0_241 = arith.constant 0 : index
    %c0_242 = arith.constant 0 : index
    %805 = vector.load %arg10[%c0_241, %c0_242] : memref<1x128xf32, #tpu.memory_space<vmem>>, vector<1x128xf32>
    %806 = vector.broadcast %805 : vector<1x128xf32> to vector<2x128xf32>
    %807 = arith.addf %804, %806 : vector<2x128xf32>
    %808 = math.tanh %807 : vector<2x128xf32>
    %cst_243 = arith.constant 1.000000e+00 : f32
    %809 = vector.broadcast %cst_243 : f32 to vector<2x128xf32>
    %810 = arith.mulf %809, %808 : vector<2x128xf32>
    %811 = tpu.iota {dimensions = array<i32: 1>} : vector<2x128xi32>
    %c5_i32 = arith.constant 5 : i32
    %812 = vector.broadcast %c5_i32 : i32 to vector<2x128xi32>
    %813 = arith.cmpi slt, %811, %812 : vector<2x128xi32>
    %cst_244 = arith.constant -1.000000e+30 : f32
    %814 = vector.broadcast %cst_244 : f32 to vector<2x128xf32>
    %815 = arith.select %813, %810, %814 : vector<2x128xi1>, vector<2x128xf32>
    %cst_245 = arith.constant dense<0xFF800000> : vector<2xf32>
    %816 = vector.multi_reduction <maximumf>, %815, %cst_245 [1] : vector<2x128xf32> to vector<2xf32>
    %817 = vector.shape_cast %816 : vector<2xf32> to vector<2x1xf32>
    %818 = vector.broadcast %817 : vector<2x1xf32> to vector<2x128xf32>
    %819 = arith.subf %815, %818 : vector<2x128xf32>
    %820 = math.exp %819 : vector<2x128xf32>
    %cst_246 = arith.constant dense<0.000000e+00> : vector<2xf32>
    %821 = vector.multi_reduction <add>, %820, %cst_246 [1] : vector<2x128xf32> to vector<2xf32>
    %822 = vector.shape_cast %821 : vector<2xf32> to vector<2x1xf32>
    %823 = tpu.reciprocal %822 {approx = true} : vector<2x1xf32> -> vector<2x1xf32>
    %824 = vector.broadcast %823 : vector<2x1xf32> to vector<2x128xf32>
    %825 = arith.mulf %820, %824 : vector<2x128xf32>
    %c0_247 = arith.constant 0 : index
    %c0_248 = arith.constant 0 : index
    %826 = vector.load %arg11[%c0_247, %c0_248] : memref<2x128xf32, #tpu.memory_space<vmem>>, vector<2x128xf32>
    tpu.vector_store %arg11[%c0_247, %c0_248], %825 {strides = array<i32>} : memref<2x128xf32, #tpu.memory_space<vmem>>, vector<2x128xf32>,
    return
  }
  func.func @transform_0(%arg0: i32) -> (i32, i32, i32) {
    %c0_i32 = arith.constant 0 : i32
    %c0_i32_0 = arith.constant 0 : i32
    %c0_i32_1 = arith.constant 0 : i32
    return %c0_i32, %arg0, %c0_i32_0 : i32, i32, i32
  }
  func.func @transform_1(%arg0: i32) -> (i32, i32) {
    %c0_i32 = arith.constant 0 : i32
    %c0_i32_0 = arith.constant 0 : i32
    %c0_i32_1 = arith.constant 0 : i32
    return %c0_i32, %c0_i32_0 : i32, i32
  }
  func.func @transform_2(%arg0: i32) -> (i32, i32) {
    %c0_i32 = arith.constant 0 : i32
    %c0_i32_0 = arith.constant 0 : i32
    %c0_i32_1 = arith.constant 0 : i32
    return %c0_i32, %c0_i32_0 : i32, i32
  }
  func.func @transform_3(%arg0: i32) -> (i32, i32) {
    %c0_i32 = arith.constant 0 : i32
    %c0_i32_0 = arith.constant 0 : i32
    %c0_i32_1 = arith.constant 0 : i32
    return %c0_i32, %c0_i32_0 : i32, i32
  }
  func.func @transform_4(%arg0: i32) -> (i32, i32) {
    %c0_i32 = arith.constant 0 : i32
    %c0_i32_0 = arith.constant 0 : i32
    %c0_i32_1 = arith.constant 0 : i32
    return %c0_i32, %c0_i32_0 : i32, i32
  }
  func.func @transform_5(%arg0: i32) -> (i32, i32) {
    %c0_i32 = arith.constant 0 : i32
    %c0_i32_0 = arith.constant 0 : i32
    %c0_i32_1 = arith.constant 0 : i32
    return %c0_i32, %c0_i32_0 : i32, i32
  }
  func.func @transform_6(%arg0: i32) -> (i32, i32) {
    %c0_i32 = arith.constant 0 : i32
    %c0_i32_0 = arith.constant 0 : i32
    %c0_i32_1 = arith.constant 0 : i32
    return %c0_i32, %c0_i32_0 : i32, i32
  }
  func.func @transform_7(%arg0: i32) -> (i32, i32) {
    %c0_i32 = arith.constant 0 : i32
    %c0_i32_0 = arith.constant 0 : i32
    %c0_i32_1 = arith.constant 0 : i32
    return %c0_i32, %c0_i32_0 : i32, i32
  }
  func.func @transform_8(%arg0: i32) -> (i32, i32) {
    %c0_i32 = arith.constant 0 : i32
    %c0_i32_0 = arith.constant 0 : i32
    %c0_i32_1 = arith.constant 0 : i32
    return %c0_i32, %c0_i32_0 : i32, i32
  }
  func.func @transform_9(%arg0: i32) -> (i32, i32) {
    %c0_i32 = arith.constant 0 : i32
    %c0_i32_0 = arith.constant 0 : i32
    %c0_i32_1 = arith.constant 0 : i32
    return %c0_i32, %c0_i32_0 : i32, i32
  }
  func.func @transform_10(%arg0: i32) -> (i32, i32) {
    %c0_i32 = arith.constant 0 : i32
    %c0_i32_0 = arith.constant 0 : i32
    return %arg0, %c0_i32 : i32, i32
  }
}

</mosaic_0001>

<bundles_post_ra>
// kernel: tpu_custom_call.1
= control target key start
LH: loop header
LB: loop body
LE: loop exit
PB: predicated region body
PF: predicated region fallthrough
CT: control target
= control target key end

     0   :  { %15 = vsyncpa [#allocation4], 0  ;;  %s4842_s0 = inlined_call_operand.hbm [shape: bf16[8,2,16], index: 0, kind: input, shape index: {}]   ;;  %s4843_s1 = inlined_call_operand.hbm [shape: bf16[16,256], index: 1, kind: input, shape index: {}]   ;;  %s4844_s2 = inlined_call_operand.vmem [shape: f32[1,256], index: 2, kind: input, shape index: {}]   ;;  %s4845_s3 = inlined_call_operand.hbm [shape: bf16[64,256], index: 3, kind: input, shape index: {}]   ;;  %s4846_s4 = inlined_call_operand.hbm [shape: bf16[128,256], index: 4, kind: input, shape index: {}]   ;;  %s4847_s5 = inlined_call_operand.vmem [shape: f32[1,256], index: 5, kind: input, shape index: {}]   ;;  %s4848_s6 = inlined_call_operand.hbm [shape: bf16[128,256], index: 6, kind: input, shape index: {}]   ;;  %s4849_s7 = inlined_call_operand.vmem [shape: f32[1,256], index: 7, kind: input, shape index: {}]   ;;  %s4850_s8 = inlined_call_operand.hbm [shape: bf16[64,128], index: 8, kind: input, shape index: {}]   ;;  %s4851_s9 = inlined_call_operand.vmem [shape: f32[1,128], index: 9, kind: input, shape index: {}]   ;;  %s4852_s10 = inlined_call_operand.hbm [shape: f32[2,128], index: 10, kind: output, shape index: {}]  }
   0x1   :  { %16 = vsyncpa [#allocation7], 0 }
   0x2   :  { %17 = vsyncpa [#allocation10], 0 }
   0x3   :  { %18 = vsyncpa [#allocation13], 0 }
   0x4   :  { %19 = vsyncpa [#allocation5], 0  ;;  %s3783_s13 = smov [#allocation6]   ;;  %s3619_s17 = scalar_lea.hbm %s4843_s1, 256 }
   0x5   :  { %s37_s14 = sshll.u32 %s3783_s13, 4  ;;  %p3620_p0 = scmp.ne.s32.totalorder %s4843_s1, %s3619_s17  ;;  %s38_s14 = int_to_ptr.vmem [resolvable:$true] %s37_s14 }
   0x6   :  { %p3623_p1 = scmp.lt.u32.totalorder %s3619_s17, %s4843_s1 }
   0x8   :  { %p3625_p2 = pnand %p3623_p1, %p3620_p0 }
   0xa   :  { %3628 = shalt.err (!%p3625_p2)
}
   0xb   :  { %s3629_s22 = scalar_lea.vmem %s38_s14, 256  ;;  %p3634_p4 = scmp.lt.s32.totalorder %s38_s14, %s38_s14 }
   0xc   :  { %p3630_p3 = scmp.ne.s32.totalorder %s38_s14, %s3629_s22  ;;  %p3635_p5 = scmp.lt.s32.totalorder %s3629_s22, %s3629_s22 }
   0xe   :  { %p3636_p6 = por %p3635_p5, %p3634_p4 }
  0x10   :  { %p3637_p7 = pnand %p3636_p6, %p3630_p3 }
  0x12   :  { %3640 = shalt.err (!%p3637_p7)
}
  0x13   :  { %s3784_s23 = smov 128   ;;  %s3785_s24 = smov 8  }
  0x14   :  { %43 = dma.hbm_to_vmem [thread:$0]  %s4843_s1, 256, %s38_s14, [#allocation7], %s3784_s23, %s3784_s23, %s3785_s24  }
  0x15   :  { %s3786_s27 = smov [#allocation9]   ;;  %s3787_s29 = smov [#allocation3]  }
  0x16   :  { %s63_s28 = sshll.u32 %s3786_s27, 4  ;;  %s25_s30 = sshll.u32 %s3787_s29, 4  ;;  %s64_s28 = int_to_ptr.vmem [resolvable:$true] %s63_s28  ;;  %s26_s30 = int_to_ptr.vmem [resolvable:$true] %s25_s30 }
  0x17   :  { %s3641_s13 = scalar_lea.hbm %s4846_s4, 2048 }
  0x18   :  { %p3642_p8 = scmp.ne.s32.totalorder %s4846_s4, %s3641_s13  ;;  %p3645_p9 = scmp.lt.u32.totalorder %s3641_s13, %s4846_s4 }
  0x1a   :  { %p3647_p10 = pnand %p3645_p9, %p3642_p8 }
  0x1c   :  { %3650 = shalt.err (!%p3647_p10)
}
  0x1d   :  { %s3651_s1 = scalar_lea.vmem %s64_s28, 2048  ;;  %p3656_p12 = scmp.lt.s32.totalorder %s64_s28, %s64_s28 }
  0x1e   :  { %p3652_p11 = scmp.ne.s32.totalorder %s64_s28, %s3651_s1  ;;  %p3657_p13 = scmp.lt.s32.totalorder %s3651_s1, %s3651_s1 }
  0x20   :  { %p3658_p0 = por %p3657_p13, %p3656_p12 }
  0x22   :  { %p3659_p1 = pnand %p3658_p0, %p3652_p11 }
  0x24   :  { %3662 = shalt.err (!%p3659_p1)
}
  0x25   :  { %69 = dma.hbm_to_vmem [thread:$0]  %s4846_s4, 2048, %s64_s28, [#allocation10], %s3784_s23, %s3784_s23, %s3785_s24  }
  0x26   :  { %s3663_s22 = scalar_lea.hbm %s4842_s0, 128 }
  0x27   :  { %p3664_p2 = scmp.ne.s32.totalorder %s4842_s0, %s3663_s22  ;;  %p3667_p3 = scmp.lt.u32.totalorder %s3663_s22, %s4842_s0 }
  0x29   :  { %p3669_p4 = pnand %p3667_p3, %p3664_p2 }
  0x2b   :  { %3672 = shalt.err (!%p3669_p4)
}
  0x2c   :  { %s3673_s11 = scalar_lea.vmem %s26_s30, 128  ;;  %p3678_p6 = scmp.lt.s32.totalorder %s26_s30, %s26_s30 }
  0x2d   :  { %p3674_p5 = scmp.ne.s32.totalorder %s26_s30, %s3673_s11  ;;  %p3679_p7 = scmp.lt.s32.totalorder %s3673_s11, %s3673_s11 }
  0x2f   :  { %p3680_p8 = por %p3679_p7, %p3678_p6 }
  0x31   :  { %p3681_p9 = pnand %p3680_p8, %p3674_p5 }
  0x33   :  { %3684 = shalt.err (!%p3681_p9)
}
  0x34   :  { %s3788_s4 = smov 16   ;;  %s3789_s28 = smov 1  }
  0x35   :  { %31 = dma.hbm_to_vmem [thread:$0]  %s4842_s0, 128, %s26_s30, [#allocation4], %s3788_s4, %s3788_s4, %s3789_s28  }
  0x36   :  { %s3790_s15 = smov [#allocation8]   ;;  %s3791_s17 = smov [#allocation11]  }
  0x37   :  { %s51_s16 = sshll.u32 %s3790_s15, 4  ;;  %s77_s18 = sshll.u32 %s3791_s17, 4  ;;  %s52_s16 = int_to_ptr.vmem [resolvable:$true] %s51_s16  ;;  %s78_s18 = int_to_ptr.vmem [resolvable:$true] %s77_s18 }
  0x38   :  { %s3685_s19 = scalar_lea.hbm %s4845_s3, 1024 }
  0x39   :  { %p3686_p10 = scmp.ne.s32.totalorder %s4845_s3, %s3685_s19  ;;  %p3689_p11 = scmp.lt.u32.totalorder %s3685_s19, %s4845_s3 }
  0x3b   :  { %p3691_p12 = pnand %p3689_p11, %p3686_p10 }
  0x3d   :  { %3694 = shalt.err (!%p3691_p12)
}
  0x3e   :  { %s3695_s0 = scalar_lea.vmem %s52_s16, 1024  ;;  %p3700_p0 = scmp.lt.s32.totalorder %s52_s16, %s52_s16 }
  0x3f   :  { %p3696_p13 = scmp.ne.s32.totalorder %s52_s16, %s3695_s0  ;;  %p3701_p1 = scmp.lt.s32.totalorder %s3695_s0, %s3695_s0 }
  0x41   :  { %p3702_p2 = por %p3701_p1, %p3700_p0 }
  0x43   :  { %p3703_p3 = pnand %p3702_p2, %p3696_p13 }
  0x45   :  { %3706 = shalt.err (!%p3703_p3)
}
  0x46   :  { %57 = dma.hbm_to_vmem [thread:$0]  %s4845_s3, 1024, %s52_s16, [#allocation7], %s3784_s23, %s3784_s23, %s3785_s24  }
  0x47   :  { %s3707_s11 = scalar_lea.hbm %s4848_s6, 2048 }
  0x48   :  { %p3708_p4 = scmp.ne.s32.totalorder %s4848_s6, %s3707_s11  ;;  %p3711_p5 = scmp.lt.u32.totalorder %s3707_s11, %s4848_s6 }
  0x4a   :  { %p3713_p6 = pnand %p3711_p5, %p3708_p4 }
  0x4c   :  { %3716 = shalt.err (!%p3713_p6)
}
  0x4d   :  { %s3717_s15 = scalar_lea.vmem %s78_s18, 2048  ;;  %p3722_p8 = scmp.lt.s32.totalorder %s78_s18, %s78_s18 }
  0x4e   :  { %p3718_p7 = scmp.ne.s32.totalorder %s78_s18, %s3717_s15  ;;  %p3723_p9 = scmp.lt.s32.totalorder %s3717_s15, %s3717_s15 }
  0x50   :  { %p3724_p10 = por %p3723_p9, %p3722_p8 }
  0x52   :  { %p3725_p11 = pnand %p3724_p10, %p3718_p7 }
  0x54   :  { %3728 = shalt.err (!%p3725_p11)
}
  0x55   :  { %83 = dma.hbm_to_vmem [thread:$0]  %s4848_s6, 2048, %s78_s18, [#allocation10], %s3784_s23, %s3784_s23, %s3785_s24  }
  0x56   :  { %s3792_s17 = smov [#allocation12]   ;;  %s3729_s20 = scalar_lea.hbm %s4850_s8, 512 }
  0x57   :  { %s91_s1 = sshll.u32 %s3792_s17, 4  ;;  %p3730_p12 = scmp.ne.s32.totalorder %s4850_s8, %s3729_s20  ;;  %s92_s1 = int_to_ptr.vmem [resolvable:$true] %s91_s1 }
  0x58   :  { %p3733_p13 = scmp.lt.u32.totalorder %s3729_s20, %s4850_s8 }
  0x5a   :  { %p3735_p0 = pnand %p3733_p13, %p3730_p12 }
  0x5c   :  { %3738 = shalt.err (!%p3735_p0)
}
  0x5d   :  { %s3739_s30 = scalar_lea.vmem %s92_s1, 512  ;;  %p3744_p2 = scmp.lt.s32.totalorder %s92_s1, %s92_s1 }
  0x5e   :  { %p3740_p1 = scmp.ne.s32.totalorder %s92_s1, %s3739_s30  ;;  %p3745_p3 = scmp.lt.s32.totalorder %s3739_s30, %s3739_s30 }
  0x60   :  { %p3746_p4 = por %p3745_p3, %p3744_p2 }
  0x62   :  { %p3747_p5 = pnand %p3746_p4, %p3740_p1 }
  0x64   :  { %3750 = shalt.err (!%p3747_p5)
}
  0x65   :  { %s3793_s6 = smov 64   ;;  %s3794_s23 = smov 4  }
  0x66   :  { %97 = dma.hbm_to_vmem [thread:$0]  %s4850_s8, 512, %s92_s1, [#allocation13], %s3793_s6, %s3793_s6, %s3794_s23  }
  0x67   :  { %3773 = dma.done.wait [#allocation4], 128  }
  0x68   :  { %3774 = vsyncadd [#allocation4], 4294967168 }
  0x69   :  { %3775 = dma.done.wait [#allocation7], 1280  }
  0x6a   :  { %3776 = vsyncadd [#allocation7], 4294966016 }
  0x6b   :  { %3777 = dma.done.wait [#allocation10], 4096  }
  0x6c   :  { %3778 = vsyncadd [#allocation10], 4294963200 }
  0x6d   :  { %3779 = dma.done.wait [#allocation13], 512  }
  0x6e   :  { %3780 = vsyncadd [#allocation13], 4294966784  ;;  %v4854_v0 = vmov 0   ;;  %v3943_v1 = vld [vmem:[#allocation6 + $0x4] ss:$8 sps:$4 sm:$0xff]   ;;  %vm168_vm0 = vcmask 130048   ;;  %v4853_v15 = vlaneseq }
  0x6f   :  { %345 = vmatprep.mubr.bf16.mxu0 %v4854_v0  ;;  %204 = vmatprep.mubr.bf16.mxu1 %v4854_v0  ;;  %v3945_v2 = vld [vmem:[#allocation6] ss:$8 sps:$4 sm:$0xff]   ;;  %v297_v3 = vld [vmem:[#allocation3 + $0x2] sm:$0x1]  ;;  %v155_v4 = vld [vmem:[#allocation3] sm:$0x1] }
  0x70   :  { %313 = vmatprep.subr.bf16.mxu0 %v3943_v1  ;;  %172 = vmatprep.subr.bf16.mxu1 %v3943_v1  ;;  %v439_v5 = vld [vmem:[#allocation3 + $0x4] sm:$0x1]  ;;  %v581_v7 = vld [vmem:[#allocation3 + $0x6] sm:$0x1]  ;;  %v3967_v8 = vld [vmem:[#allocation8] ss:$8 sps:$4 sm:$0xff]  }
  0x71   :  { %314 = vmatpush1.bf16.msra.mxu0 %v3945_v2  ;;  %173 = vmatpush1.bf16.msra.mxu1 %v3945_v2  ;;  %v3961_v6 = vld [vmem:[#allocation8 + $0x4] ss:$8 sps:$4 sm:$0xff]   ;;  %v3969_v9 = vld [vmem:[#allocation8 + $0x14] ss:$8 sps:$4 sm:$0xff]   ;;  %v3973_v10 = vld [vmem:[#allocation8 + $0x10] ss:$8 sps:$4 sm:$0xff]  }
  0x72   :  { %455 = vmatprep.subr.bf16.mxu0 %v3943_v1  ;;  %242 = vmatprep.subr.bf16.mxu1 %v3943_v1  ;;  %v3977_v11 = vld [vmem:[#allocation8 + $0x24] ss:$8 sps:$4 sm:$0xff]   ;;  %v3980_v12 = vld [vmem:[#allocation8 + $0x20] ss:$8 sps:$4 sm:$0xff]   ;;  %v3983_v13 = vld [vmem:[#allocation8 + $0x34] ss:$8 sps:$4 sm:$0xff]  }
  0x73   :  { %v3986_v14 = vld [vmem:[#allocation8 + $0x30] ss:$8 sps:$4 sm:$0xff]   ;;  %v122_v16 = vshrl.u32 %v4853_v15, 7  ;;  %v119_v18 = vld [vmem:[%s4844_s2] sm:$0x3]  ;;  %vm771_vm1 = vcmask 523264  }
  0x74   :  { %3043 = vmatmul.mubr.msk.bf16.vlgmr.msra.gmra.mrb[0].mxu0 %vm168_vm0, %v297_v3  ;;  %3035 = vmatmul.mubr.msk.bf16.vlgmr.msra.gmra.mrb[0].mxu1 %vm168_vm0, %v155_v4  ;;  %v3796_v50 = vmov 1983009808   ;;  %vm4100_vm2 = vmpackc.low %vm771_vm1, %vm771_vm1  ;;  %vm3798_vm3 = vmmov 0   ;;  %vm3002_vm5 = vcmask 1041408  }
  0x75   :  { %456 = vmatpush1.bf16.msra.mxu0 %v3945_v2  ;;  %487 = vmatprep.mubr.bf16.mxu0 %v4854_v0  ;;  %v3993_v17 = vsub.s32 0, %v122_v16  ;;  %v3998_v19 = vsub.s32 1, %v122_v16  ;;  %v820_v51 = vunpack.c.l.s4 %v3796_v50 }
  0x76   :  { %597 = vmatprep.subr.bf16.mxu0 %v3943_v1  ;;  %243 = vmatpush1.bf16.msra.mxu1 %v3945_v2 }
  0x77   :  { %274 = vmatprep.mubr.bf16.mxu1 %v4854_v0  ;;  %384 = vmatprep.subr.bf16.mxu1 %v3943_v1  ;;  %v4001_v20 = vrot.slane %v119_v18, %v3993_v17  ;;  %v4004_v21 = vrot.slane %v119_v18, %v3998_v19  ;;  %v821_v52 = vunpack.c.0.s8 %v820_v51 }
  0x79   :  { %v4014_v54 = vsub.s32 %v821_v52, %v122_v16 }
  0x7c   :  { %3051 = vmatmul.mubr.msk.bf16.vlgmr.msra.gmra.mrb[4].mxu0 %vm168_vm0, %v439_v5 }
  0x7d   :  { %598 = vmatpush1.bf16.msra.mxu0 %v3945_v2  ;;  %629 = vmatprep.mubr.bf16.mxu0 %v4854_v0 }
  0x7e   :  { %775 = vmatprep.subr.bf16.mxu0 %v3961_v6 }
  0x84   :  { %3059 = vmatmul.mubr.msk.bf16.vlgmr.msra.gmra.mrb[8].mxu0 %vm168_vm0, %v581_v7 }
  0x85   :  { %776 = vmatpush1.bf16.msra.mxu0 %v3967_v8  ;;  %807 = vmatprep.mubr.bf16.mxu0 %v4854_v0 }
  0x86   :  { %777 = vmatprep.subr.bf16.mxu0 %v3969_v9 }
  0x89   :  { %778 = vmatpush1.bf16.msra.mxu0 %v3973_v10 }
  0x8a   :  { %779 = vmatprep.subr.bf16.mxu0 %v3977_v11 }
  0x8d   :  { %780 = vmatpush1.bf16.msra.mxu0 %v3980_v12 }
  0x8e   :  { %781 = vmatprep.subr.bf16.mxu0 %v3983_v13 }
  0x91   :  { %782 = vmatpush1.bf16.msra.mxu0 %v3986_v14 }
  0x94   :  { %808 = vmatmul.mubr.bf16.vlgmr.msra.gmra.mrb[12].mxu0 %v4854_v0 }
  0x95   :  { %1160 = vmatprep.mubr.bf16.mxu0 %v4854_v0 }
 0x147   :  { %v347_v22 = vpop.f32.mrb[0].mxu0  ;;  %v206_v23 = vpop.f32.mrb[0].mxu1 }
 0x148   :  { %v348_v24 = vadd.f32 %v347_v22, %v4001_v20  ;;  %v349_v25 = vpop.f32.mrb[1].mxu0  ;;  %v207_v26 = vadd.f32 %v206_v23, %v4001_v20  ;;  %v208_v27 = vpop.f32.mrb[1].mxu1  ;;  %v226_v22 = vld [vmem:[#allocation3 + $0x1] sm:$0x1]  ;;  %v368_v23 = vld [vmem:[#allocation3 + $0x3] sm:$0x1] }
 0x149   :  { %v350_v28 = vadd.f32 %v349_v25, %v4004_v21  ;;  %v351_v29 = vpop.f32.mrb[2].mxu0  ;;  %v209_v30 = vadd.f32 %v208_v27, %v4004_v21  ;;  %v210_v31 = vpop.f32.mrb[2].mxu1  ;;  %3039 = vmatmul.mubr.msk.bf16.vlgmr.msra.gmra.mrb[4].mxu1 %vm168_vm0, %v226_v22  ;;  %v4031_v25 = vld [vmem:[#allocation9 + $0x4] ss:$8 sps:$4 sm:$0xff]   ;;  %v4037_v27 = vld [vmem:[#allocation9] ss:$8 sps:$4 sm:$0xff]  }
 0x14a   :  { %v352_v32 = vpop.f32.mrb[3].mxu0  ;;  %v211_v33 = vpop.f32.mrb[3].mxu1  ;;  %385 = vmatpush1.bf16.msra.mxu1 %v3945_v2  ;;  %416 = vmatprep.mubr.bf16.mxu1 %v4854_v0  ;;  %v4050_v29 = vld [vmem:[#allocation9 + $0x20] ss:$8 sps:$4 sm:$0xff]   ;;  %v4056_v31 = vld [vmem:[#allocation9 + $0x30] ss:$8 sps:$4 sm:$0xff]  }
 0x14b   :  { %v356_v34 = vcombine.low %v348_v24, %v350_v28  ;;  %v215_v35 = vcombine.low %v207_v26, %v209_v30  ;;  %526 = vmatprep.subr.bf16.mxu1 %v3943_v1  ;;  %v510_v24 = vld [vmem:[#allocation3 + $0x5] sm:$0x1]  ;;  %v652_v26 = vld [vmem:[#allocation3 + $0x7] sm:$0x1]  ;;  %v4039_v28 = vld [vmem:[#allocation9 + $0x14] ss:$8 sps:$4 sm:$0xff]  }
 0x14c   :  { %v4053_v30 = vld [vmem:[#allocation9 + $0x34] ss:$8 sps:$4 sm:$0xff]   ;;  %v4059_v32 = vld [vmem:[#allocation9 + $0x44] ss:$8 sps:$4 sm:$0xff]   ;;  %v4062_v33 = vld [vmem:[#allocation9 + $0x40] ss:$8 sps:$4 sm:$0xff]  }
 0x14d   :  { %3044 = vst.sshfl [vmem:[#allocation2 + $0x8] sm:$0x33 pattern:$0x76325410] %v356_v34  ;;  %v4065_v34 = vld [vmem:[#allocation9 + $0x54] ss:$8 sps:$4 sm:$0xff]  }
 0x14e   :  { %3036 = vst.sshfl [vmem:[#allocation2] sm:$0x33 pattern:$0x76325410] %v215_v35  ;;  %v4068_v35 = vld [vmem:[#allocation9 + $0x50] ss:$8 sps:$4 sm:$0xff]  }
 0x14f   :  { %v489_v36 = vpop.f32.mrb[4].mxu0 }
 0x150   :  { %v490_v37 = vadd.f32 %v489_v36, %v4001_v20  ;;  %v491_v38 = vpop.f32.mrb[5].mxu0  ;;  %v4071_v36 = vld [vmem:[#allocation9 + $0x64] ss:$8 sps:$4 sm:$0xff]  }
 0x151   :  { %v492_v39 = vadd.f32 %v491_v38, %v4004_v21  ;;  %v493_v40 = vpop.f32.mrb[6].mxu0  ;;  %3047 = vmatmul.mubr.msk.bf16.vlgmr.msra.gmra.mrb[8].mxu1 %vm168_vm0, %v368_v23  ;;  %v4077_v38 = vld [vmem:[#allocation9 + $0x74] ss:$8 sps:$4 sm:$0xff]  }
 0x152   :  { %v494_v41 = vpop.f32.mrb[7].mxu0  ;;  %527 = vmatpush1.bf16.msra.mxu1 %v3945_v2  ;;  %558 = vmatprep.mubr.bf16.mxu1 %v4854_v0  ;;  %v4081_v40 = vld [vmem:[#allocation9 + $0x70] ss:$8 sps:$4 sm:$0xff]  }
 0x153   :  { %v498_v42 = vcombine.low %v490_v37, %v492_v39  ;;  %668 = vmatprep.subr.bf16.mxu1 %v3943_v1  ;;  %v4043_v1 = vld [vmem:[#allocation9 + $0x10] ss:$8 sps:$4 sm:$0xff]   ;;  %v4074_v37 = vld [vmem:[#allocation9 + $0x60] ss:$8 sps:$4 sm:$0xff]  }
 0x155   :  { %3052 = vst.sshfl [vmem:[#allocation2 + $0x10] sm:$0x33 pattern:$0x76325410] %v498_v42  ;;  %v722_v59 = vld [vmem:[#allocation2] sm:$0xf] }
 0x157   :  { %v631_v43 = vpop.f32.mrb[8].mxu0 }
 0x158   :  { %v632_v44 = vadd.f32 %v631_v43, %v4001_v20  ;;  %v633_v45 = vpop.f32.mrb[9].mxu0 }
 0x159   :  { %v634_v46 = vadd.f32 %v633_v45, %v4004_v21  ;;  %v635_v47 = vpop.f32.mrb[10].mxu0  ;;  %3055 = vmatmul.mubr.msk.bf16.vlgmr.msra.gmra.mrb[12].mxu1 %vm168_vm0, %v510_v24 }
 0x15a   :  { %v636_v48 = vpop.f32.mrb[11].mxu0  ;;  %669 = vmatpush1.bf16.msra.mxu1 %v3945_v2  ;;  %700 = vmatprep.mubr.bf16.mxu1 %v4854_v0  ;;  %v4047_v2 = vld [vmem:[#allocation9 + $0x24] ss:$8 sps:$4 sm:$0xff]  }
 0x15b   :  { %v640_v49 = vcombine.low %v632_v44, %v634_v46  ;;  %959 = vmatprep.subr.bf16.mxu1 %v4031_v25 }
 0x15d   :  { %3060 = vst.sshfl [vmem:[#allocation2 + $0x18] sm:$0x33 pattern:$0x76325410] %v640_v49 }
 0x161   :  { %3063 = vmatmul.mubr.msk.bf16.vlgmr.msra.gmra.mrb[16].mxu1 %vm168_vm0, %v652_v26 }
 0x162   :  { %960 = vmatpush1.bf16.msra.mxu1 %v4037_v27  ;;  %991 = vmatprep.mubr.bf16.mxu1 %v4854_v0 }
 0x163   :  { %961 = vmatprep.subr.bf16.mxu1 %v4039_v28 }
 0x166   :  { %962 = vmatpush1.bf16.msra.mxu1 %v4043_v1 }
 0x167   :  { %v809_v53 = vpop.f32.mrb[12].mxu0  ;;  %963 = vmatprep.subr.bf16.mxu1 %v4047_v2 }
 0x168   :  { %v811_v55 = vpop.f32.mrb[13].mxu0 }
 0x169   :  { %v818_v56 = vcombine.low %v809_v53, %v811_v55  ;;  %v813_v57 = vpop.f32.mrb[14].mxu0 }
 0x16a   :  { %v814_v58 = vpop.f32.mrb[15].mxu0  ;;  %964 = vmatpush1.bf16.msra.mxu1 %v4050_v29 }
 0x16b   :  { %v825_v60 = vrot.slane %v818_v56, %v4014_v54  ;;  %965 = vmatprep.subr.bf16.mxu1 %v4053_v30 }
 0x16d   :  { %v4017_v61 = vadd.f32 %v825_v60, %v722_v59 }
 0x16e   :  { %966 = vmatpush1.bf16.msra.mxu1 %v4056_v31 }
 0x16f   :  { %843 = vrot.lane.b32.xlu0 %v4017_v61, %s3793_s6  ;;  %v3073_v62 = vmul.f32 -1.442695, %v4017_v61  ;;  %967 = vmatprep.subr.bf16.mxu1 %v4059_v32  ;;  %v835_v44 = vrot.slane %v4017_v61, 2 }
 0x171   :  { %3273 = vpow2.f32 %v3073_v62  ;;  %v3074_v45 = vmul.f32 -1.442695, %v835_v44 }
 0x172   :  { %968 = vmatpush1.bf16.msra.mxu1 %v4062_v33 }
 0x173   :  { %969 = vmatprep.subr.bf16.mxu1 %v4065_v34 }
 0x176   :  { %970 = vmatpush1.bf16.msra.mxu1 %v4068_v35 }
 0x177   :  { %971 = vmatprep.subr.bf16.mxu1 %v4071_v36 }
 0x17a   :  { %972 = vmatpush1.bf16.msra.mxu1 %v4074_v37 }
 0x17b   :  { %v3274_v63 = vpop.eup %3273  ;;  %973 = vmatprep.subr.bf16.mxu1 %v4077_v38 }
 0x17c   :  { %v831_v3 = vadd.f32 1.0, %v3274_v63 }
 0x17e   :  { %3275 = vrcp.f32 %v831_v3  ;;  %974 = vmatpush1.bf16.msra.mxu1 %v4081_v40 }
 0x17f   :  { %1204 = vmatprep.subr.bf16.mxu1 %v3961_v6 }
 0x188   :  { %v3276_v7 = vpop.eup %3275 }
 0x189   :  { %v848_v39 = vmul.f32 0.0, %v3276_v7 }
 0x1e1   :  { %v844_v4 = vpop.permute.xlu0 %843 }
 0x1e2   :  { %v845_v5 = vrot.slane %v844_v4, 2 }
 0x1e4   :  { %3277 = vtanh.f32 %v845_v5 }
 0x1ee   :  { %v3278_v16 = vpop.eup %3277 }
 0x1ef   :  { %v849_v18 = vmul.f32 %v3278_v16, %v3276_v7 }
 0x1f1   :  { %851 = vrot.lane.b32.xlu0 %v849_v18, %s3793_s6 }
 0x21c   :  { %v276_v46 = vpop.f32.mrb[4].mxu1 }
 0x21d   :  { %v277_v47 = vadd.f32 %v276_v46, %v4001_v20  ;;  %v278_v48 = vpop.f32.mrb[5].mxu1 }
 0x21e   :  { %v279_v49 = vadd.f32 %v278_v48, %v4004_v21  ;;  %v280_v50 = vpop.f32.mrb[6].mxu1 }
 0x21f   :  { %v281_v51 = vpop.f32.mrb[7].mxu1 }
 0x220   :  { %v285_v52 = vcombine.low %v277_v47, %v279_v49 }
 0x222   :  { %3040 = vst.sshfl [vmem:[#allocation2 + $0x4] sm:$0x33 pattern:$0x76325410] %v285_v52 }
 0x224   :  { %v418_v53 = vpop.f32.mrb[8].mxu1 }
 0x225   :  { %v419_v55 = vadd.f32 %v418_v53, %v4001_v20  ;;  %v420_v56 = vpop.f32.mrb[9].mxu1 }
 0x226   :  { %v421_v57 = vadd.f32 %v420_v56, %v4004_v21  ;;  %v422_v58 = vpop.f32.mrb[10].mxu1 }
 0x227   :  { %v423_v59 = vpop.f32.mrb[11].mxu1 }
 0x228   :  { %v427_v60 = vcombine.low %v419_v55, %v421_v57 }
 0x22a   :  { %3048 = vst.sshfl [vmem:[#allocation2 + $0xc] sm:$0x33 pattern:$0x76325410] %v427_v60 }
 0x22c   :  { %v560_v63 = vpop.f32.mrb[12].mxu1 }
 0x22d   :  { %v561_v3 = vadd.f32 %v560_v63, %v4001_v20  ;;  %v562_v4 = vpop.f32.mrb[13].mxu1 }
 0x22e   :  { %v563_v5 = vadd.f32 %v562_v4, %v4004_v21  ;;  %v564_v7 = vpop.f32.mrb[14].mxu1 }
 0x22f   :  { %v565_v16 = vpop.f32.mrb[15].mxu1 }
 0x230   :  { %v569_v18 = vcombine.low %v561_v3, %v563_v5 }
 0x232   :  { %3056 = vst.sshfl [vmem:[#allocation2 + $0x14] sm:$0x33 pattern:$0x76325410] %v569_v18 }
 0x234   :  { %v702_v22 = vpop.f32.mrb[16].mxu1 }
 0x235   :  { %v703_v23 = vadd.f32 %v702_v22, %v4001_v20  ;;  %v704_v24 = vpop.f32.mrb[17].mxu1  ;;  %v131_v20 = vld [vmem:[%s4847_s5] sm:$0x3] }
 0x236   :  { %v705_v26 = vadd.f32 %v704_v24, %v4004_v21  ;;  %v4120_v21 = vrot.slane %v131_v20, %v3998_v19  ;;  %v4133_v3 = vrot.slane %v131_v20, %v3993_v17  ;;  %v4141_v20 = vld [vmem:[#allocation11] ss:$8 sps:$4 sm:$0xff]  }
 0x238   :  { %4862 = vst [vmem:[#allocation20_spill] sm:$0xff] %v4120_v21 }
 0x263   :  { %v852_v41 = vpop.permute.xlu0 %851 }
 0x264   :  { %v4083_v42 = vadd.f32 %v852_v41, %v848_v39  ;;  %v706_v39 = vpop.f32.mrb[18].mxu1 }
 0x265   :  { %v707_v41 = vpop.f32.mrb[19].mxu1 }
 0x266   :  { %3279 = vtanh.f32 %v4083_v42 }
 0x267   :  { %3281 = vpow2.f32 %v3074_v45 }
 0x270   :  { %v3280_v43 = vpop.eup %3279 }
 0x271   :  { %857 = vrot.lane.b32.xlu1 %v3280_v43, %s3793_s6  ;;  %v3282_v61 = vpop.eup %3281  ;;  %v711_v43 = vcombine.low %v703_v23, %v705_v26 }
 0x272   :  { %v840_v62 = vadd.f32 1.0, %v3282_v61 }
 0x273   :  { %3064 = vst.sshfl [vmem:[#allocation2 + $0x1c] sm:$0x33 pattern:$0x76325410] %v711_v43 }
 0x274   :  { %3283 = vrcp.f32 %v840_v62  ;;  %v1199_v62 = vld [vmem:[#allocation2 + $0x4] sm:$0xf] }
 0x27e   :  { %v3284_v44 = vpop.eup %3283 }
 0x2e3   :  { %v858_v45 = vpop.permute.xlu1 %857 }
 0x2e4   :  { %v860_v46 = vmul.f32 %v3284_v44, %v858_v45 }
 0x2e6   :  { %v3092_v48 = vpack.c.bf16 %v860_v46, %v860_v46 }
 0x2e8   :  { %3093 = vmatmul.mubr.msk.bf16.vlgmr.msra.gmra.mrb[20].mxu1 %vm4100_vm2, %v3092_v48 }
 0x2e9   :  { %1205 = vmatpush1.bf16.msra.mxu1 %v3967_v8  ;;  %1236 = vmatprep.mubr.bf16.mxu1 %v4854_v0 }
 0x2ea   :  { %1206 = vmatprep.subr.bf16.mxu1 %v3969_v9 }
 0x2ed   :  { %1207 = vmatpush1.bf16.msra.mxu1 %v3973_v10 }
 0x2ee   :  { %1208 = vmatprep.subr.bf16.mxu1 %v3977_v11 }
 0x2f1   :  { %1209 = vmatpush1.bf16.msra.mxu1 %v3980_v12 }
 0x2f2   :  { %1210 = vmatprep.subr.bf16.mxu1 %v3983_v13 }
 0x2f5   :  { %1211 = vmatpush1.bf16.msra.mxu1 %v3986_v14 }
 0x2f8   :  { %3117 = vmatmul.mubr.msk.bf16.vlgmr.msra.gmra.mrb[24].mxu1 %vm771_vm1, %v3092_v48  ;;  %v4139_v48 = vld [vmem:[#allocation11 + $0x4] ss:$8 sps:$4 sm:$0xff]  }
 0x2f9   :  { %1405 = vmatprep.mubr.bf16.mxu1 %v4854_v0  ;;  %1128 = vmatprep.subr.bf16.mxu0 %v4139_v48 }
 0x2fa   :  { %1373 = vmatprep.subr.bf16.mxu1 %v4139_v48  ;;  %1129 = vmatpush1.bf16.msra.mxu0 %v4141_v20 }
 0x2fb   :  { %1374 = vmatpush1.bf16.msra.mxu1 %v4141_v20 }
 0x3bb   :  { %v993_v49 = vpop.f32.mrb[20].mxu1 }
 0x3bc   :  { %v995_v50 = vpop.f32.mrb[21].mxu1  ;;  %v994_v4 = vadd.f32 %v993_v49, %v4133_v3  ;;  %v4143_v49 = vld [vmem:[#allocation11 + $0x14] ss:$8 sps:$4 sm:$0xff]  }
 0x3bd   :  { %v4123_v51 = vadd.f32 %v995_v50, %v4120_v21  ;;  %v997_v52 = vpop.f32.mrb[22].mxu1  ;;  %v4148_v50 = vld [vmem:[#allocation11 + $0x10] ss:$8 sps:$4 sm:$0xff]   ;;  %1130 = vmatprep.subr.bf16.mxu0 %v4143_v49  ;;  %1375 = vmatprep.subr.bf16.mxu1 %v4143_v49 }
 0x3be   :  { %v998_v53 = vpop.f32.mrb[23].mxu1  ;;  %v3094_v5 = vmul.f32 -1.442695, %v994_v4  ;;  %v4152_v52 = vld [vmem:[#allocation11 + $0x24] ss:$8 sps:$4 sm:$0xff]   ;;  %1131 = vmatpush1.bf16.msra.mxu0 %v4148_v50  ;;  %1376 = vmatpush1.bf16.msra.mxu1 %v4148_v50 }
 0x3bf   :  { %3285 = vtanh.f32 %v4123_v51  ;;  %v4156_v53 = vld [vmem:[#allocation11 + $0x20] ss:$8 sps:$4 sm:$0xff]   ;;  %1132 = vmatprep.subr.bf16.mxu0 %v4152_v52  ;;  %1377 = vmatprep.subr.bf16.mxu1 %v4152_v52 }
 0x3c0   :  { %3287 = vpow2.f32 %v3094_v5 }
 0x3c2   :  { %1133 = vmatpush1.bf16.msra.mxu0 %v4156_v53  ;;  %1378 = vmatpush1.bf16.msra.mxu1 %v4156_v53 }
 0x3c9   :  { %v3286_v55 = vpop.eup %3285 }
 0x3ca   :  { %1015 = vrot.lane.b32.xlu1 %v3286_v55, %s3793_s6  ;;  %v3288_v7 = vpop.eup %3287  ;;  %v4160_v55 = vld [vmem:[#allocation11 + $0x34] ss:$8 sps:$4 sm:$0xff]  }
 0x3cb   :  { %v1238_v56 = vpop.f32.mrb[24].mxu1  ;;  %v1003_v16 = vadd.f32 1.0, %v3288_v7  ;;  %1134 = vmatprep.subr.bf16.mxu0 %v4160_v55  ;;  %1379 = vmatprep.subr.bf16.mxu1 %v4160_v55  ;;  %v4195_v7 = vld [vmem:[#allocation11 + $0x74] ss:$8 sps:$4 sm:$0xff]  }
 0x3cc   :  { %v1240_v57 = vpop.f32.mrb[25].mxu1 }
 0x3cd   :  { %v1247_v58 = vcombine.low %v1238_v56, %v1240_v57  ;;  %v1242_v59 = vpop.f32.mrb[26].mxu1  ;;  %3289 = vrcp.f32 %v1003_v16  ;;  %v4164_v56 = vld [vmem:[#allocation11 + $0x30] ss:$8 sps:$4 sm:$0xff]   ;;  %v4168_v57 = vld [vmem:[#allocation11 + $0x44] ss:$8 sps:$4 sm:$0xff]  }
 0x3ce   :  { %v1243_v60 = vpop.f32.mrb[27].mxu1  ;;  %1135 = vmatpush1.bf16.msra.mxu0 %v4164_v56  ;;  %1380 = vmatpush1.bf16.msra.mxu1 %v4164_v56  ;;  %v4176_v59 = vld [vmem:[#allocation11 + $0x54] ss:$8 sps:$4 sm:$0xff]  }
 0x3cf   :  { %v1254_v61 = vrot.slane %v1247_v58, %v4014_v54  ;;  %v4172_v58 = vld [vmem:[#allocation11 + $0x40] ss:$8 sps:$4 sm:$0xff]   ;;  %1136 = vmatprep.subr.bf16.mxu0 %v4168_v57  ;;  %1381 = vmatprep.subr.bf16.mxu1 %v4168_v57  ;;  %v4180_v60 = vld [vmem:[#allocation11 + $0x50] ss:$8 sps:$4 sm:$0xff]  }
 0x3d1   :  { %v4128_v63 = vadd.f32 %v1254_v61, %v1199_v62  ;;  %v4184_v61 = vld [vmem:[#allocation11 + $0x64] ss:$8 sps:$4 sm:$0xff]   ;;  %v4188_v62 = vld [vmem:[#allocation11 + $0x60] ss:$8 sps:$4 sm:$0xff]  }
 0x3d2   :  { %1137 = vmatpush1.bf16.msra.mxu0 %v4172_v58  ;;  %1382 = vmatpush1.bf16.msra.mxu1 %v4172_v58 }
 0x3d3   :  { %1272 = vrot.lane.b32.xlu0 %v4128_v63, %s3793_s6  ;;  %v3118_v18 = vmul.f32 -1.442695, %v4128_v63  ;;  %1138 = vmatprep.subr.bf16.mxu0 %v4176_v59 }
 0x3d4   :  { %1383 = vmatprep.subr.bf16.mxu1 %v4176_v59 }
 0x3d5   :  { %3291 = vpow2.f32 %v3118_v18  ;;  %v4199_v18 = vld [vmem:[#allocation11 + $0x70] ss:$8 sps:$4 sm:$0xff]  }
 0x3d6   :  { %1139 = vmatpush1.bf16.msra.mxu0 %v4180_v60  ;;  %1384 = vmatpush1.bf16.msra.mxu1 %v4180_v60 }
 0x3d7   :  { %v3290_v22 = vpop.eup %3289  ;;  %1140 = vmatprep.subr.bf16.mxu0 %v4184_v61  ;;  %1385 = vmatprep.subr.bf16.mxu1 %v4184_v61 }
 0x3d8   :  { %v1013_v4 = vmul.f32 0.0, %v3290_v22 }
 0x3da   :  { %1141 = vmatpush1.bf16.msra.mxu0 %v4188_v62  ;;  %1386 = vmatpush1.bf16.msra.mxu1 %v4188_v62 }
 0x3db   :  { %1142 = vmatprep.subr.bf16.mxu0 %v4195_v7  ;;  %1387 = vmatprep.subr.bf16.mxu1 %v4195_v7 }
 0x3de   :  { %1143 = vmatpush1.bf16.msra.mxu0 %v4199_v18  ;;  %1388 = vmatpush1.bf16.msra.mxu1 %v4199_v18 }
 0x3df   :  { %v3292_v26 = vpop.eup %3291  ;;  %1296 = vmatprep.subr.bf16.mxu0 %v4031_v25  ;;  %1541 = vmatprep.subr.bf16.mxu1 %v4031_v25 }
 0x3e0   :  { %v1260_v39 = vadd.f32 1.0, %v3292_v26 }
 0x3e2   :  { %3293 = vrcp.f32 %v1260_v39 }
 0x3ec   :  { %v3294_v44 = vpop.eup %3293 }
 0x43c   :  { %v1016_v23 = vpop.permute.xlu1 %1015 }
 0x43d   :  { %v1018_v24 = vmul.f32 %v3290_v22, %v1016_v23  ;;  %v1277_v23 = vmul.f32 %v3294_v44, %v4083_v42  ;;  %v1264_v42 = vrot.slane %v4128_v63, 2  ;;  %v143_v63 = vld [vmem:[%s4849_s7] sm:$0x3] }
 0x43f   :  { %1020 = vrot.lane.b32.xlu1 %v1018_v24, %s3793_s6  ;;  %v3119_v47 = vmul.f32 -1.442695, %v1264_v42 }
 0x445   :  { %v1273_v41 = vpop.permute.xlu0 %1272 }
 0x446   :  { %v1274_v43 = vrot.slane %v1273_v41, 2  ;;  %v3095_v41 = vmul.f32 -1.442695, %v4123_v51 }
 0x448   :  { %3295 = vtanh.f32 %v1274_v43 }
 0x452   :  { %v3296_v45 = vpop.eup %3295 }
 0x453   :  { %v1278_v46 = vmul.f32 %v3296_v45, %v3294_v44 }
 0x455   :  { %1280 = vrot.lane.b32.xlu0 %v1278_v46, %s3793_s6 }
 0x4b1   :  { %v1021_v5 = vpop.permute.xlu1 %1020 }
 0x4b2   :  { %v4197_v16 = vadd.f32 %v1021_v5, %v1013_v4 }
 0x4b4   :  { %3297 = vtanh.f32 %v4197_v16 }
 0x4be   :  { %v3298_v22 = vpop.eup %3297 }
 0x4bf   :  { %1026 = vrot.lane.b32.xlu1 %v3298_v22, %s3793_s6 }
 0x4c7   :  { %v1281_v24 = vpop.permute.xlu0 %1280 }
 0x4c8   :  { %v4210_v26 = vadd.f32 %v1281_v24, %v1277_v23 }
 0x4ca   :  { %3299 = vtanh.f32 %v4210_v26 }
 0x4cb   :  { %3301 = vpow2.f32 %v3095_v41 }
 0x4d4   :  { %v3300_v39 = vpop.eup %3299 }
 0x4d5   :  { %1286 = vrot.lane.b32.xlu0 %v3300_v39, %s3793_s6  ;;  %v3302_v43 = vpop.eup %3301 }
 0x4d6   :  { %v1009_v45 = vadd.f32 1.0, %v3302_v43 }
 0x4d8   :  { %3303 = vrcp.f32 %v1009_v45 }
 0x4d9   :  { %3305 = vpow2.f32 %v3119_v47 }
 0x4e2   :  { %v3304_v46 = vpop.eup %3303 }
 0x4e3   :  { %v3306_v51 = vpop.eup %3305 }
 0x4e4   :  { %v1269_v44 = vadd.f32 1.0, %v3306_v51 }
 0x4e6   :  { %3307 = vrcp.f32 %v1269_v44  ;;  %v4273_v44 = vrot.slane %v143_v63, %v3993_v17 }
 0x4e8   :  { %4863 = vst [vmem:[#allocation21_spill] sm:$0xff] %v4273_v44 }
 0x4f0   :  { %v3308_v24 = vpop.eup %3307 }
 0x531   :  { %v1027_v4 = vpop.permute.xlu1 %1026 }
 0x532   :  { %v1029_v5 = vmul.f32 %v3304_v46, %v1027_v4  ;;  %v4268_v46 = vrot.slane %v143_v63, %v3998_v19 }
 0x534   :  { %v3113_v22 = vpack.c.bf16 %v1029_v5, %v1029_v5  ;;  %1291 = vrot.lane.b32.xlu1 %v1029_v5, %s3793_s6 }
 0x536   :  { %3114 = vmatmul.mubr.msk.bf16.vlgmr.msra.gmra.mrb[16].mxu0 %vm4100_vm2, %v3113_v22 }
 0x537   :  { %1297 = vmatpush1.bf16.msra.mxu0 %v4037_v27  ;;  %1328 = vmatprep.mubr.bf16.mxu0 %v4854_v0 }
 0x538   :  { %1298 = vmatprep.subr.bf16.mxu0 %v4039_v28 }
 0x53b   :  { %1299 = vmatpush1.bf16.msra.mxu0 %v4043_v1 }
 0x53c   :  { %1300 = vmatprep.subr.bf16.mxu0 %v4047_v2 }
 0x53f   :  { %1301 = vmatpush1.bf16.msra.mxu0 %v4050_v29 }
 0x540   :  { %1302 = vmatprep.subr.bf16.mxu0 %v4053_v30 }
 0x543   :  { %1303 = vmatpush1.bf16.msra.mxu0 %v4056_v31 }
 0x544   :  { %1304 = vmatprep.subr.bf16.mxu0 %v4059_v32 }
 0x547   :  { %1305 = vmatpush1.bf16.msra.mxu0 %v4062_v33  ;;  %v1287_v23 = vpop.permute.xlu0 %1286 }
 0x548   :  { %1306 = vmatprep.subr.bf16.mxu0 %v4065_v34  ;;  %v1289_v39 = vmul.f32 %v3308_v24, %v1287_v23 }
 0x54b   :  { %1307 = vmatpush1.bf16.msra.mxu0 %v4068_v35 }
 0x54c   :  { %1308 = vmatprep.subr.bf16.mxu0 %v4071_v36 }
 0x54f   :  { %1309 = vmatpush1.bf16.msra.mxu0 %v4074_v37 }
 0x550   :  { %1310 = vmatprep.subr.bf16.mxu0 %v4077_v38 }
 0x553   :  { %1311 = vmatpush1.bf16.msra.mxu0 %v4081_v40 }
 0x554   :  { %1449 = vmatprep.subr.bf16.mxu0 %v3961_v6  ;;  %v1445_v6 = vpack.c.bf16 %v1289_v39, %v1289_v39 }
 0x5a6   :  { %v1292_v41 = vpop.permute.xlu1 %1291 }
 0x5a7   :  { %v1294_v43 = vsel %vm771_vm1, %v1289_v39, %v1292_v41 }
 0x5a8   :  { %v1295_v45 = vpack.c.bf16 %v1294_v43, %v1294_v43 }
 0x5aa   :  { %1329 = vmatmul.mubr.bf16.vlgmr.msra.gmra.mrb[20].mxu0 %v1295_v45 }
 0x5ab   :  { %1450 = vmatpush1.bf16.msra.mxu0 %v3967_v8  ;;  %1481 = vmatprep.mubr.bf16.mxu0 %v4854_v0 }
 0x5ac   :  { %1451 = vmatprep.subr.bf16.mxu0 %v3969_v9 }
 0x5af   :  { %1452 = vmatpush1.bf16.msra.mxu0 %v3973_v10 }
 0x5b0   :  { %1453 = vmatprep.subr.bf16.mxu0 %v3977_v11 }
 0x5b3   :  { %1454 = vmatpush1.bf16.msra.mxu0 %v3980_v12 }
 0x5b4   :  { %1455 = vmatprep.subr.bf16.mxu0 %v3983_v13 }
 0x5b7   :  { %1456 = vmatpush1.bf16.msra.mxu0 %v3986_v14 }
 0x5b8   :  { %1618 = vmatprep.subr.bf16.mxu0 %v4139_v48 }
 0x5ba   :  { %3124 = vmatmul.mubr.msk.bf16.vlgmr.msra.gmra.mrb[24].mxu0 %vm771_vm1, %v1445_v6 }
 0x5bb   :  { %1619 = vmatpush1.bf16.msra.mxu0 %v4141_v20  ;;  %1650 = vmatprep.mubr.bf16.mxu0 %v4854_v0 }
 0x5bc   :  { %1620 = vmatprep.subr.bf16.mxu0 %v4143_v49 }
 0x5bf   :  { %1621 = vmatpush1.bf16.msra.mxu0 %v4148_v50 }
 0x5c0   :  { %1622 = vmatprep.subr.bf16.mxu0 %v4152_v52 }
 0x5c3   :  { %1623 = vmatpush1.bf16.msra.mxu0 %v4156_v53 }
 0x5c4   :  { %1624 = vmatprep.subr.bf16.mxu0 %v4160_v55 }
 0x5c7   :  { %1625 = vmatpush1.bf16.msra.mxu0 %v4164_v56 }
 0x5c8   :  { %1626 = vmatprep.subr.bf16.mxu0 %v4168_v57 }
 0x5cb   :  { %1627 = vmatpush1.bf16.msra.mxu0 %v4172_v58 }
 0x5cc   :  { %1628 = vmatprep.subr.bf16.mxu0 %v4176_v59 }
 0x5cf   :  { %1629 = vmatpush1.bf16.msra.mxu0 %v4180_v60 }
 0x5d0   :  { %1630 = vmatprep.subr.bf16.mxu0 %v4184_v61 }
 0x5d3   :  { %1631 = vmatpush1.bf16.msra.mxu0 %v4188_v62 }
 0x5d4   :  { %1632 = vmatprep.subr.bf16.mxu0 %v4195_v7 }
 0x5d7   :  { %1633 = vmatpush1.bf16.msra.mxu0 %v4199_v18 }
 0x5d8   :  { %1786 = vmatprep.subr.bf16.mxu0 %v4031_v25 }
 0x609   :  { %v1162_v4 = vpop.f32.mrb[16].mxu0 }
 0x60a   :  { %v1164_v5 = vpop.f32.mrb[17].mxu0  ;;  %v1163_v23 = vadd.f32 %v1162_v4, %v4273_v44 }
 0x60b   :  { %v1165_v22 = vadd.f32 %v1164_v5, %v4268_v46  ;;  %v1166_v42 = vpop.f32.mrb[18].mxu0 }
 0x60c   :  { %v1167_v47 = vpop.f32.mrb[19].mxu0  ;;  %v3115_v24 = vmul.f32 -1.442695, %v1163_v23 }
 0x60d   :  { %3309 = vtanh.f32 %v1165_v22 }
 0x60e   :  { %3311 = vpow2.f32 %v3115_v24 }
 0x617   :  { %v3310_v51 = vpop.eup %3309 }
 0x618   :  { %1184 = vrot.lane.b32.xlu0 %v3310_v51, %s3793_s6  ;;  %v3312_v39 = vpop.eup %3311 }
 0x619   :  { %v1172_v19 = vadd.f32 1.0, %v3312_v39 }
 0x61b   :  { %3313 = vrcp.f32 %v1172_v19 }
 0x625   :  { %v3314_v42 = vpop.eup %3313 }
 0x67d   :  { %v1330_v41 = vpop.f32.mrb[20].mxu0 }
 0x67e   :  { %v1332_v43 = vpop.f32.mrb[21].mxu0 }
 0x67f   :  { %v4277_v45 = vadd.f32 %v1332_v43, %v4120_v21  ;;  %v1334_v6 = vpop.f32.mrb[22].mxu0 }
 0x680   :  { %v1335_v5 = vpop.f32.mrb[23].mxu0  ;;  %v1444_v6 = vld [vmem:[#allocation2 + $0x8] sm:$0xf] }
 0x681   :  { %3315 = vtanh.f32 %v4277_v45  ;;  %v1331_v5 = vadd.f32 %v1330_v41, %v4133_v3 }
 0x68a   :  { %v1185_v47 = vpop.permute.xlu0 %1184 }
 0x68b   :  { %v3316_v17 = vpop.eup %3315  ;;  %v1187_v63 = vmul.f32 %v3314_v42, %v1185_v47  ;;  %v3120_v47 = vmul.f32 -1.442695, %v1331_v5 }
 0x68c   :  { %1352 = vrot.lane.b32.xlu1 %v3316_v17, %s3793_s6 }
 0x68d   :  { %v1483_v4 = vpop.f32.mrb[24].mxu0  ;;  %1189 = vrot.lane.b32.xlu0 %v1187_v63, %s3793_s6  ;;  %3317 = vpow2.f32 %v3120_v47 }
 0x68e   :  { %v1485_v51 = vpop.f32.mrb[25].mxu0 }
 0x68f   :  { %v1492_v23 = vcombine.low %v1483_v4, %v1485_v51  ;;  %v1487_v24 = vpop.f32.mrb[26].mxu0 }
 0x690   :  { %v1488_v39 = vpop.f32.mrb[27].mxu0  ;;  %v1182_v24 = vmul.f32 0.0, %v3314_v42 }
 0x691   :  { %v1499_v43 = vrot.slane %v1492_v23, %v4014_v54 }
 0x693   :  { %v4283_v19 = vadd.f32 %v1499_v43, %v1444_v6 }
 0x695   :  { %1517 = vrot.lane.b32.xlu1 %v4283_v19, %s3793_s6  ;;  %v3125_v63 = vmul.f32 -1.442695, %v4283_v19 }
 0x697   :  { %v3318_v17 = vpop.eup %3317 }
 0x698   :  { %v1340_v15 = vadd.f32 1.0, %v3318_v17 }
 0x69a   :  { %3319 = vrcp.f32 %v1340_v15 }
 0x69b   :  { %3321 = vpow2.f32 %v3125_v63 }
 0x6a4   :  { %v3320_v4 = vpop.eup %3319 }
 0x6a5   :  { %v3322_v6 = vpop.eup %3321 }
 0x6a6   :  { %v1505_v41 = vadd.f32 1.0, %v3322_v6 }
 0x6fe   :  { %v1353_v51 = vpop.permute.xlu1 %1352 }
 0x6ff   :  { %v1355_v23 = vmul.f32 %v3320_v4, %v1353_v51  ;;  %v1190_v39 = vpop.permute.xlu0 %1189  ;;  %v3116_v51 = vmul.f32 -1.442695, %v1165_v22 }
 0x700   :  { %v4289_v43 = vadd.f32 %v1190_v39, %v1182_v24  ;;  %v1350_v39 = vmul.f32 %v3320_v4, %v4197_v16  ;;  %v3121_v16 = vmul.f32 -1.442695, %v4277_v45 }
 0x701   :  { %1357 = vrot.lane.b32.xlu0 %v1355_v23, %s3793_s6 }
 0x702   :  { %3323 = vtanh.f32 %v4289_v43 }
 0x703   :  { %3325 = vrcp.f32 %v1505_v41 }
 0x707   :  { %v1518_v5 = vpop.permute.xlu1 %1517 }
 0x708   :  { %v1519_v47 = vrot.slane %v1518_v5, 2 }
 0x70a   :  { %3327 = vtanh.f32 %v1519_v47 }
 0x70b   :  { %3329 = vpow2.f32 %v3116_v51 }
 0x70c   :  { %v3324_v15 = vpop.eup %3323 }
 0x70d   :  { %1195 = vrot.lane.b32.xlu1 %v3324_v15, %s3793_s6  ;;  %v3326_v17 = vpop.eup %3325 }
 0x70e   :  { %v1522_v22 = vmul.f32 %v3326_v17, %v4210_v26 }
 0x714   :  { %v3328_v63 = vpop.eup %3327 }
 0x715   :  { %v1523_v42 = vmul.f32 %v3328_v63, %v3326_v17  ;;  %v3330_v24 = vpop.eup %3329 }
 0x716   :  { %v1178_v23 = vadd.f32 1.0, %v3330_v24 }
 0x717   :  { %1525 = vrot.lane.b32.xlu0 %v1523_v42, %s3793_s6 }
 0x718   :  { %3331 = vrcp.f32 %v1178_v23 }
 0x722   :  { %v3332_v41 = vpop.eup %3331 }
 0x773   :  { %v1358_v0 = vpop.permute.xlu0 %1357 }
 0x774   :  { %v4296_v6 = vadd.f32 %v1358_v0, %v1350_v39 }
 0x776   :  { %3333 = vtanh.f32 %v4296_v6 }
 0x77f   :  { %v1196_v5 = vpop.permute.xlu1 %1195 }
 0x780   :  { %v3334_v47 = vpop.eup %3333  ;;  %v1198_v15 = vmul.f32 %v3332_v41, %v1196_v5  ;;  %v4864_v5 = vmov 0  }
 0x781   :  { %1363 = vrot.lane.b32.xlu1 %v3334_v47, %s3793_s6 }
 0x782   :  { %1368 = vrot.lane.b32.xlu0 %v1198_v15, %s3793_s6 }
 0x789   :  { %v1526_v63 = vpop.permute.xlu0 %1525 }
 0x78a   :  { %v4302_v42 = vadd.f32 %v1526_v63, %v1522_v22 }
 0x78c   :  { %3335 = vtanh.f32 %v4302_v42 }
 0x78d   :  { %3337 = vpow2.f32 %v3121_v16 }
 0x796   :  { %v3336_v0 = vpop.eup %3335 }
 0x797   :  { %1531 = vrot.lane.b32.xlu1 %v3336_v0, %s3793_s6  ;;  %v3338_v4 = vpop.eup %3337 }
 0x798   :  { %v1346_v51 = vadd.f32 1.0, %v3338_v4 }
 0x79a   :  { %3339 = vrcp.f32 %v1346_v51 }
 0x7a4   :  { %v3340_v24 = vpop.eup %3339 }
 0x7f3   :  { %v1364_v23 = vpop.permute.xlu1 %1363 }
 0x7f4   :  { %v1366_v39 = vmul.f32 %v3340_v24, %v1364_v23  ;;  %v1369_v41 = vpop.permute.xlu0 %1368 }
 0x7f6   :  { %v1371_v26 = vsel %vm771_vm1, %v1366_v39, %v1369_v41  ;;  %1536 = vrot.lane.b32.xlu0 %v1366_v39, %s3793_s6 }
 0x7f7   :  { %v1372_v17 = vpack.c.bf16 %v1371_v26, %v1371_v26 }
 0x7f9   :  { %1406 = vmatmul.mubr.bf16.vlgmr.msra.gmra.mrb[28].mxu1 %v1372_v17 }
 0x7fa   :  { %1542 = vmatpush1.bf16.msra.mxu1 %v4037_v27  ;;  %1573 = vmatprep.mubr.bf16.mxu1 %v4864_v5  ;;  %v4325_v27 = vld [vmem:[#allocation8 + $0x4] ss:$8 sps:$4 sm:$0xff]  }
 0x7fb   :  { %1543 = vmatprep.subr.bf16.mxu1 %v4039_v28  ;;  %v1509_v28 = vrot.slane %v4283_v19, 2 }
 0x7fe   :  { %1544 = vmatpush1.bf16.msra.mxu1 %v4043_v1  ;;  %v3126_v1 = vmul.f32 -1.442695, %v1509_v28 }
 0x7ff   :  { %1545 = vmatprep.subr.bf16.mxu1 %v4047_v2 }
 0x800   :  { %3341 = vpow2.f32 %v3126_v1 }
 0x802   :  { %1546 = vmatpush1.bf16.msra.mxu1 %v4050_v29 }
 0x803   :  { %1547 = vmatprep.subr.bf16.mxu1 %v4053_v30 }
 0x806   :  { %1548 = vmatpush1.bf16.msra.mxu1 %v4056_v31 }
 0x807   :  { %1549 = vmatprep.subr.bf16.mxu1 %v4059_v32 }
 0x809   :  { %v1532_v30 = vpop.permute.xlu1 %1531 }
 0x80a   :  { %1550 = vmatpush1.bf16.msra.mxu1 %v4062_v33  ;;  %v3342_v2 = vpop.eup %3341 }
 0x80b   :  { %1551 = vmatprep.subr.bf16.mxu1 %v4065_v34  ;;  %v1514_v29 = vadd.f32 1.0, %v3342_v2  ;;  %v1689_v2 = vld [vmem:[#allocation2 + $0xc] sm:$0xf] }
 0x80d   :  { %3343 = vrcp.f32 %v1514_v29 }
 0x80e   :  { %1552 = vmatpush1.bf16.msra.mxu1 %v4068_v35 }
 0x80f   :  { %1553 = vmatprep.subr.bf16.mxu1 %v4071_v36 }
 0x812   :  { %1554 = vmatpush1.bf16.msra.mxu1 %v4074_v37 }
 0x813   :  { %1555 = vmatprep.subr.bf16.mxu1 %v4077_v38 }
 0x816   :  { %1556 = vmatpush1.bf16.msra.mxu1 %v4081_v40 }
 0x817   :  { %1694 = vmatprep.subr.bf16.mxu1 %v4325_v27  ;;  %v3344_v31 = vpop.eup %3343 }
 0x818   :  { %v1534_v32 = vmul.f32 %v3344_v31, %v1532_v30 }
 0x81a   :  { %v1690_v45 = vpack.c.bf16 %v1534_v32, %v1534_v32 }
 0x868   :  { %v1537_v33 = vpop.permute.xlu0 %1536 }
 0x869   :  { %v1539_v34 = vsel %vm771_vm1, %v1534_v32, %v1537_v33 }
 0x86a   :  { %v1540_v35 = vpack.c.bf16 %v1539_v34, %v1539_v34 }
 0x86c   :  { %1574 = vmatmul.mubr.bf16.vlgmr.msra.gmra.mrb[32].mxu1 %v1540_v35 }
 0x86d   :  { %1695 = vmatpush1.bf16.msra.mxu1 %v3967_v8  ;;  %1726 = vmatprep.mubr.bf16.mxu1 %v4864_v5 }
 0x86e   :  { %1696 = vmatprep.subr.bf16.mxu1 %v3969_v9 }
 0x871   :  { %1697 = vmatpush1.bf16.msra.mxu1 %v3973_v10 }
 0x872   :  { %1698 = vmatprep.subr.bf16.mxu1 %v3977_v11 }
 0x875   :  { %1699 = vmatpush1.bf16.msra.mxu1 %v3980_v12 }
 0x876   :  { %1700 = vmatprep.subr.bf16.mxu1 %v3983_v13 }
 0x879   :  { %1701 = vmatpush1.bf16.msra.mxu1 %v3986_v14 }
 0x87a   :  { %1863 = vmatprep.subr.bf16.mxu1 %v4139_v48 }
 0x87c   :  { %3131 = vmatmul.mubr.msk.bf16.vlgmr.msra.gmra.mrb[36].mxu1 %vm771_vm1, %v1690_v45 }
 0x87d   :  { %1864 = vmatpush1.bf16.msra.mxu1 %v4141_v20  ;;  %1895 = vmatprep.mubr.bf16.mxu1 %v4864_v5 }
 0x87e   :  { %1865 = vmatprep.subr.bf16.mxu1 %v4143_v49 }
 0x881   :  { %1866 = vmatpush1.bf16.msra.mxu1 %v4148_v50 }
 0x882   :  { %1867 = vmatprep.subr.bf16.mxu1 %v4152_v52 }
 0x885   :  { %1868 = vmatpush1.bf16.msra.mxu1 %v4156_v53 }
 0x886   :  { %1869 = vmatprep.subr.bf16.mxu1 %v4160_v55 }
 0x889   :  { %1870 = vmatpush1.bf16.msra.mxu1 %v4164_v56 }
 0x88a   :  { %1871 = vmatprep.subr.bf16.mxu1 %v4168_v57 }
 0x88d   :  { %1872 = vmatpush1.bf16.msra.mxu1 %v4172_v58 }
 0x88e   :  { %1873 = vmatprep.subr.bf16.mxu1 %v4176_v59 }
 0x891   :  { %1874 = vmatpush1.bf16.msra.mxu1 %v4180_v60 }
 0x892   :  { %1875 = vmatprep.subr.bf16.mxu1 %v4184_v61 }
 0x895   :  { %1876 = vmatpush1.bf16.msra.mxu1 %v4188_v62 }
 0x896   :  { %1877 = vmatprep.subr.bf16.mxu1 %v4195_v7 }
 0x899   :  { %1878 = vmatpush1.bf16.msra.mxu1 %v4199_v18 }
 0x89a   :  { %2031 = vmatprep.subr.bf16.mxu1 %v4031_v25 }
 0x8cc   :  { %v1407_v8 = vpop.f32.mrb[28].mxu1 }
 0x8cd   :  { %v1409_v9 = vpop.f32.mrb[29].mxu1  ;;  %v1408_v14 = vadd.f32 %v1407_v8, %v4273_v44 }
 0x8ce   :  { %v1410_v10 = vadd.f32 %v1409_v9, %v4268_v46  ;;  %v1411_v11 = vpop.f32.mrb[30].mxu1 }
 0x8cf   :  { %v1412_v12 = vpop.f32.mrb[31].mxu1  ;;  %v3122_v19 = vmul.f32 -1.442695, %v1408_v14 }
 0x8d0   :  { %3345 = vtanh.f32 %v1410_v10 }
 0x8d1   :  { %3347 = vpow2.f32 %v3122_v19 }
 0x8da   :  { %v3346_v13 = vpop.eup %3345 }
 0x8db   :  { %1429 = vrot.lane.b32.xlu1 %v3346_v13, %s3793_s6  ;;  %v3348_v47 = vpop.eup %3347 }
 0x8dc   :  { %v1417_v15 = vadd.f32 1.0, %v3348_v47 }
 0x8de   :  { %3349 = vrcp.f32 %v1417_v15 }
 0x8e8   :  { %v3350_v4 = vpop.eup %3349 }
 0x8e9   :  { %v1427_v9 = vmul.f32 %v3350_v4, %v4289_v43  ;;  %v3123_v43 = vmul.f32 -1.442695, %v1410_v10 }
 0x93f   :  { %v1575_v22 = vpop.f32.mrb[32].mxu1 }
 0x940   :  { %v1577_v63 = vpop.f32.mrb[33].mxu1  ;;  %v1576_v30 = vadd.f32 %v1575_v22, %v4133_v3 }
 0x941   :  { %v4361_v25 = vadd.f32 %v1577_v63, %v4120_v21  ;;  %v1579_v0 = vpop.f32.mrb[34].mxu1 }
 0x942   :  { %v1580_v16 = vpop.f32.mrb[35].mxu1  ;;  %v3127_v31 = vmul.f32 -1.442695, %v1576_v30 }
 0x943   :  { %3351 = vtanh.f32 %v4361_v25 }
 0x944   :  { %3353 = vpow2.f32 %v3127_v31 }
 0x94d   :  { %v3352_v51 = vpop.eup %3351  ;;  %v1430_v24 = vpop.permute.xlu1 %1429 }
 0x94e   :  { %v1432_v23 = vmul.f32 %v3350_v4, %v1430_v24  ;;  %1597 = vrot.lane.b32.xlu0 %v3352_v51, %s3793_s6  ;;  %v3354_v32 = vpop.eup %3353 }
 0x94f   :  { %v1728_v39 = vpop.f32.mrb[36].mxu1  ;;  %v1585_v33 = vadd.f32 1.0, %v3354_v32 }
 0x950   :  { %v1730_v41 = vpop.f32.mrb[37].mxu1  ;;  %1434 = vrot.lane.b32.xlu1 %v1432_v23, %s3793_s6 }
 0x951   :  { %v1737_v26 = vcombine.low %v1728_v39, %v1730_v41  ;;  %v1732_v17 = vpop.f32.mrb[38].mxu1  ;;  %3355 = vrcp.f32 %v1585_v33 }
 0x952   :  { %v1733_v28 = vpop.f32.mrb[39].mxu1 }
 0x953   :  { %v1744_v1 = vrot.slane %v1737_v26, %v4014_v54 }
 0x955   :  { %v4367_v29 = vadd.f32 %v1744_v1, %v1689_v2  ;;  %v3128_v2 = vmul.f32 -1.442695, %v4361_v25  ;;  %v4398_v25 = vld [vmem:[#allocation9 + $0x14] ss:$8 sps:$4 sm:$0xff]  }
 0x957   :  { %1762 = vrot.lane.b32.xlu0 %v4367_v29, %s3793_s6  ;;  %v3132_v34 = vmul.f32 -1.442695, %v4367_v29 }
 0x959   :  { %3357 = vpow2.f32 %v3132_v34 }
 0x95b   :  { %v3356_v35 = vpop.eup %3355 }
 0x95c   :  { %v1595_v51 = vmul.f32 %v3356_v35, %v4296_v6 }
 0x963   :  { %v3358_v13 = vpop.eup %3357 }
 0x964   :  { %v1750_v14 = vadd.f32 1.0, %v3358_v13  ;;  %v4407_v13 = vld [vmem:[#allocation9 + $0x20] ss:$8 sps:$4 sm:$0xff]  }
 0x9c0   :  { %v1598_v45 = vpop.permute.xlu0 %1597 }
 0x9c1   :  { %v1600_v8 = vmul.f32 %v3356_v35, %v1598_v45 }
 0x9c2   :  { %v1435_v11 = vpop.permute.xlu1 %1434 }
 0x9c3   :  { %v4374_v12 = vadd.f32 %v1435_v11, %v1427_v9  ;;  %1602 = vrot.lane.b32.xlu1 %v1600_v8, %s3793_s6  ;;  %v4394_v8 = vld [vmem:[#allocation9] ss:$8 sps:$4 sm:$0xff]   ;;  %v4401_v9 = vld [vmem:[#allocation9 + $0x10] ss:$8 sps:$4 sm:$0xff]   ;;  %v4404_v11 = vld [vmem:[#allocation9 + $0x24] ss:$8 sps:$4 sm:$0xff]  }
 0x9c5   :  { %3359 = vtanh.f32 %v4374_v12 }
 0x9c6   :  { %3361 = vrcp.f32 %v1750_v14  ;;  %v4410_v14 = vld [vmem:[#allocation9 + $0x34] ss:$8 sps:$4 sm:$0xff]  }
 0x9c9   :  { %v1763_v19 = vpop.permute.xlu0 %1762 }
 0x9ca   :  { %v1764_v47 = vrot.slane %v1763_v19, 2  ;;  %v4413_v19 = vld [vmem:[#allocation9 + $0x30] ss:$8 sps:$4 sm:$0xff]  }
 0x9cc   :  { %3363 = vtanh.f32 %v1764_v47  ;;  %v4416_v47 = vld [vmem:[#allocation9 + $0x44] ss:$8 sps:$4 sm:$0xff]  }
 0x9cd   :  { %3365 = vpow2.f32 %v3123_v43 }
 0x9cf   :  { %v3360_v15 = vpop.eup %3359 }
 0x9d0   :  { %1440 = vrot.lane.b32.xlu0 %v3360_v15, %s3793_s6  ;;  %v3362_v22 = vpop.eup %3361  ;;  %v4419_v15 = vld [vmem:[#allocation9 + $0x40] ss:$8 sps:$4 sm:$0xff]  }
 0x9d1   :  { %v1767_v10 = vmul.f32 %v3362_v22, %v4302_v42 }
 0x9d6   :  { %v3364_v63 = vpop.eup %3363 }
 0x9d7   :  { %v1768_v0 = vmul.f32 %v3364_v63, %v3362_v22  ;;  %v3366_v16 = vpop.eup %3365  ;;  %v4422_v22 = vld [vmem:[#allocation9 + $0x54] ss:$8 sps:$4 sm:$0xff]   ;;  %v4425_v63 = vld [vmem:[#allocation9 + $0x50] ss:$8 sps:$4 sm:$0xff]  }
 0x9d8   :  { %v1423_v4 = vadd.f32 1.0, %v3366_v16 }
 0x9d9   :  { %1770 = vrot.lane.b32.xlu1 %v1768_v0, %s3793_s6  ;;  %v1754_v0 = vrot.slane %v4367_v29, 2  ;;  %v4442_v29 = vld [vmem:[#allocation8 + $0x10] ss:$8 sps:$4 sm:$0xff]  }
 0x9da   :  { %3367 = vrcp.f32 %v1423_v4 }
 0x9db   :  { %v3133_v43 = vmul.f32 -1.442695, %v1754_v0 }
 0x9e4   :  { %v3368_v39 = vpop.eup %3367 }
 0xa35   :  { %v1603_v24 = vpop.permute.xlu1 %1602 }
 0xa36   :  { %v4381_v23 = vadd.f32 %v1603_v24, %v1595_v51 }
 0xa38   :  { %3369 = vtanh.f32 %v4381_v23 }
 0xa42   :  { %v3370_v41 = vpop.eup %3369  ;;  %v1441_v26 = vpop.permute.xlu0 %1440 }
 0xa43   :  { %v1443_v17 = vmul.f32 %v3368_v39, %v1441_v26  ;;  %1608 = vrot.lane.b32.xlu0 %v3370_v41, %s3793_s6  ;;  %v4445_v26 = vld [vmem:[#allocation8 + $0x24] ss:$8 sps:$4 sm:$0xff]  }
 0xa45   :  { %1613 = vrot.lane.b32.xlu1 %v1443_v17, %s3793_s6  ;;  %v4448_v17 = vld [vmem:[#allocation8 + $0x20] ss:$8 sps:$4 sm:$0xff]  }
 0xa4b   :  { %v1771_v28 = vpop.permute.xlu1 %1770 }
 0xa4c   :  { %v4387_v1 = vadd.f32 %v1771_v28, %v1767_v10  ;;  %v4451_v10 = vld [vmem:[#allocation8 + $0x34] ss:$8 sps:$4 sm:$0xff]   ;;  %v4454_v28 = vld [vmem:[#allocation8 + $0x30] ss:$8 sps:$4 sm:$0xff]  }
 0xa4e   :  { %3371 = vtanh.f32 %v4387_v1 }
 0xa4f   :  { %3373 = vpow2.f32 %v3128_v2 }
 0xa58   :  { %v3372_v6 = vpop.eup %3371 }
 0xa59   :  { %1776 = vrot.lane.b32.xlu0 %v3372_v6, %s3793_s6  ;;  %v3374_v30 = vpop.eup %3373 }
 0xa5a   :  { %v1591_v31 = vadd.f32 1.0, %v3374_v30 }
 0xa5c   :  { %3375 = vrcp.f32 %v1591_v31 }
 0xa5d   :  { %3377 = vpow2.f32 %v3133_v43  ;;  %v1934_v43 = vld [vmem:[#allocation2 + $0x10] sm:$0xf] }
 0xa66   :  { %v3376_v32 = vpop.eup %3375 }
 0xa67   :  { %v3378_v16 = vpop.eup %3377 }
 0xa68   :  { %v1759_v4 = vadd.f32 1.0, %v3378_v16 }
 0xa6a   :  { %3379 = vrcp.f32 %v1759_v4 }
 0xa74   :  { %v3380_v24 = vpop.eup %3379 }
 0xab5   :  { %v1609_v33 = vpop.permute.xlu0 %1608 }
 0xab6   :  { %v1611_v34 = vmul.f32 %v3376_v32, %v1609_v33 }
 0xab7   :  { %v1614_v35 = vpop.permute.xlu1 %1613 }
 0xab8   :  { %v1616_v42 = vsel %vm771_vm1, %v1611_v34, %v1614_v35  ;;  %1781 = vrot.lane.b32.xlu1 %v1611_v34, %s3793_s6 }
 0xab9   :  { %v1617_v45 = vpack.c.bf16 %v1616_v42, %v1616_v42 }
 0xabb   :  { %1651 = vmatmul.mubr.bf16.vlgmr.msra.gmra.mrb[28].mxu0 %v1617_v45 }
 0xabc   :  { %1787 = vmatpush1.bf16.msra.mxu0 %v4394_v8  ;;  %1818 = vmatprep.mubr.bf16.mxu0 %v4864_v5 }
 0xabd   :  { %1788 = vmatprep.subr.bf16.mxu0 %v4398_v25 }
 0xac0   :  { %1789 = vmatpush1.bf16.msra.mxu0 %v4401_v9 }
 0xac1   :  { %1790 = vmatprep.subr.bf16.mxu0 %v4404_v11 }
 0xac4   :  { %1791 = vmatpush1.bf16.msra.mxu0 %v4407_v13 }
 0xac5   :  { %1792 = vmatprep.subr.bf16.mxu0 %v4410_v14 }
 0xac8   :  { %1793 = vmatpush1.bf16.msra.mxu0 %v4413_v19 }
 0xac9   :  { %1794 = vmatprep.subr.bf16.mxu0 %v4416_v47 }
 0xacb   :  { %v1777_v51 = vpop.permute.xlu0 %1776 }
 0xacc   :  { %1795 = vmatpush1.bf16.msra.mxu0 %v4419_v15  ;;  %v1779_v39 = vmul.f32 %v3380_v24, %v1777_v51 }
 0xacd   :  { %1796 = vmatprep.subr.bf16.mxu0 %v4422_v22 }
 0xace   :  { %v1935_v6 = vpack.c.bf16 %v1779_v39, %v1779_v39 }
 0xad0   :  { %1797 = vmatpush1.bf16.msra.mxu0 %v4425_v63 }
 0xad1   :  { %1798 = vmatprep.subr.bf16.mxu0 %v4071_v36 }
 0xad4   :  { %1799 = vmatpush1.bf16.msra.mxu0 %v4074_v37 }
 0xad5   :  { %1800 = vmatprep.subr.bf16.mxu0 %v4077_v38  ;;  %v4435_v38 = vld [vmem:[#allocation8] ss:$8 sps:$4 sm:$0xff]  }
 0xad8   :  { %1801 = vmatpush1.bf16.msra.mxu0 %v4081_v40  ;;  %v4439_v40 = vld [vmem:[#allocation8 + $0x14] ss:$8 sps:$4 sm:$0xff]  }
 0xad9   :  { %1939 = vmatprep.subr.bf16.mxu0 %v4325_v27 }
 0xb2a   :  { %v1782_v41 = vpop.permute.xlu1 %1781 }
 0xb2b   :  { %v1784_v36 = vsel %vm771_vm1, %v1779_v39, %v1782_v41 }
 0xb2c   :  { %v1785_v37 = vpack.c.bf16 %v1784_v36, %v1784_v36 }
 0xb2e   :  { %1819 = vmatmul.mubr.bf16.vlgmr.msra.gmra.mrb[32].mxu0 %v1785_v37 }
 0xb2f   :  { %1940 = vmatpush1.bf16.msra.mxu0 %v4435_v38  ;;  %1971 = vmatprep.mubr.bf16.mxu0 %v4864_v5 }
 0xb30   :  { %1941 = vmatprep.subr.bf16.mxu0 %v4439_v40 }
 0xb33   :  { %1942 = vmatpush1.bf16.msra.mxu0 %v4442_v29 }
 0xb34   :  { %1943 = vmatprep.subr.bf16.mxu0 %v4445_v26 }
 0xb37   :  { %1944 = vmatpush1.bf16.msra.mxu0 %v4448_v17 }
 0xb38   :  { %1945 = vmatprep.subr.bf16.mxu0 %v4451_v10 }
 0xb3b   :  { %1946 = vmatpush1.bf16.msra.mxu0 %v4454_v28 }
 0xb3c   :  { %2108 = vmatprep.subr.bf16.mxu0 %v4139_v48  ;;  %v4475_v48 = vld [vmem:[#allocation9 + $0x4] ss:$8 sps:$4 sm:$0xff]  }
 0xb3e   :  { %3138 = vmatmul.mubr.msk.bf16.vlgmr.msra.gmra.mrb[36].mxu0 %vm771_vm1, %v1935_v6 }
 0xb3f   :  { %2109 = vmatpush1.bf16.msra.mxu0 %v4141_v20  ;;  %2140 = vmatprep.mubr.bf16.mxu0 %v4864_v5 }
 0xb40   :  { %2110 = vmatprep.subr.bf16.mxu0 %v4143_v49 }
 0xb43   :  { %2111 = vmatpush1.bf16.msra.mxu0 %v4148_v50 }
 0xb44   :  { %2112 = vmatprep.subr.bf16.mxu0 %v4152_v52 }
 0xb47   :  { %2113 = vmatpush1.bf16.msra.mxu0 %v4156_v53 }
 0xb48   :  { %2114 = vmatprep.subr.bf16.mxu0 %v4160_v55 }
 0xb4b   :  { %2115 = vmatpush1.bf16.msra.mxu0 %v4164_v56 }
 0xb4c   :  { %2116 = vmatprep.subr.bf16.mxu0 %v4168_v57 }
 0xb4f   :  { %2117 = vmatpush1.bf16.msra.mxu0 %v4172_v58 }
 0xb50   :  { %2118 = vmatprep.subr.bf16.mxu0 %v4176_v59 }
 0xb53   :  { %2119 = vmatpush1.bf16.msra.mxu0 %v4180_v60 }
 0xb54   :  { %2120 = vmatprep.subr.bf16.mxu0 %v4184_v61 }
 0xb57   :  { %2121 = vmatpush1.bf16.msra.mxu0 %v4188_v62 }
 0xb58   :  { %2122 = vmatprep.subr.bf16.mxu0 %v4195_v7 }
 0xb5b   :  { %2123 = vmatpush1.bf16.msra.mxu0 %v4199_v18 }
 0xb5c   :  { %2276 = vmatprep.subr.bf16.mxu0 %v4475_v48 }
 0xb8e   :  { %v1652_v20 = vpop.f32.mrb[28].mxu0 }
 0xb8f   :  { %v1654_v49 = vpop.f32.mrb[29].mxu0  ;;  %v1653_v56 = vadd.f32 %v1652_v20, %v4273_v44 }
 0xb90   :  { %v1655_v50 = vadd.f32 %v1654_v49, %v4268_v46  ;;  %v1656_v52 = vpop.f32.mrb[30].mxu0 }
 0xb91   :  { %v1657_v53 = vpop.f32.mrb[31].mxu0  ;;  %v3129_v57 = vmul.f32 -1.442695, %v1653_v56 }
 0xb92   :  { %3381 = vtanh.f32 %v1655_v50 }
 0xb93   :  { %3383 = vpow2.f32 %v3129_v57 }
 0xb9c   :  { %v3382_v55 = vpop.eup %3381 }
 0xb9d   :  { %1674 = vrot.lane.b32.xlu0 %v3382_v55, %s3793_s6  ;;  %v3384_v58 = vpop.eup %3383 }
 0xb9e   :  { %v1662_v59 = vadd.f32 1.0, %v3384_v58 }
 0xba0   :  { %3385 = vrcp.f32 %v1662_v59 }
 0xbaa   :  { %v3386_v2 = vpop.eup %3385 }
 0xbab   :  { %v1672_v20 = vmul.f32 %v3386_v2, %v4374_v12  ;;  %v3130_v12 = vmul.f32 -1.442695, %v1655_v50 }
 0xc01   :  { %v1820_v60 = vpop.f32.mrb[32].mxu0 }
 0xc02   :  { %v1822_v61 = vpop.f32.mrb[33].mxu0  ;;  %v1821_v4 = vadd.f32 %v1820_v60, %v4133_v3 }
 0xc03   :  { %v4482_v62 = vadd.f32 %v1822_v61, %v4120_v21  ;;  %v1824_v7 = vpop.f32.mrb[34].mxu0 }
 0xc04   :  { %v1825_v18 = vpop.f32.mrb[35].mxu0  ;;  %v3134_v51 = vmul.f32 -1.442695, %v1821_v4 }
 0xc05   :  { %3387 = vtanh.f32 %v4482_v62 }
 0xc06   :  { %3389 = vpow2.f32 %v3134_v51 }
 0xc0f   :  { %v3388_v30 = vpop.eup %3387  ;;  %v1675_v31 = vpop.permute.xlu0 %1674 }
 0xc10   :  { %v1677_v32 = vmul.f32 %v3386_v2, %v1675_v31  ;;  %1842 = vrot.lane.b32.xlu1 %v3388_v30, %s3793_s6  ;;  %v3390_v24 = vpop.eup %3389 }
 0xc11   :  { %v1973_v33 = vpop.f32.mrb[36].mxu0  ;;  %v1830_v39 = vadd.f32 1.0, %v3390_v24 }
 0xc12   :  { %v1975_v34 = vpop.f32.mrb[37].mxu0  ;;  %1679 = vrot.lane.b32.xlu0 %v1677_v32, %s3793_s6 }
 0xc13   :  { %v1982_v35 = vcombine.low %v1973_v33, %v1975_v34  ;;  %v1977_v42 = vpop.f32.mrb[38].mxu0  ;;  %3391 = vrcp.f32 %v1830_v39 }
 0xc14   :  { %v1978_v45 = vpop.f32.mrb[39].mxu0 }
 0xc15   :  { %v1989_v0 = vrot.slane %v1982_v35, %v4014_v54 }
 0xc17   :  { %v4488_v16 = vadd.f32 %v1989_v0, %v1934_v43  ;;  %v3135_v0 = vmul.f32 -1.442695, %v4482_v62  ;;  %v4527_v62 = vld [vmem:[#allocation9 + $0x64] ss:$8 sps:$4 sm:$0xff]  }
 0xc19   :  { %2007 = vrot.lane.b32.xlu1 %v4488_v16, %s3793_s6  ;;  %v3139_v41 = vmul.f32 -1.442695, %v4488_v16 }
 0xc1b   :  { %3393 = vpow2.f32 %v3139_v41 }
 0xc1d   :  { %v3392_v36 = vpop.eup %3391 }
 0xc1e   :  { %v1840_v2 = vmul.f32 %v3392_v36, %v4381_v23 }
 0xc25   :  { %v3394_v53 = vpop.eup %3393 }
 0xc26   :  { %v1995_v55 = vadd.f32 1.0, %v3394_v53 }
 0xc82   :  { %v1843_v37 = vpop.permute.xlu1 %1842 }
 0xc83   :  { %v1845_v6 = vmul.f32 %v3392_v36, %v1843_v37  ;;  %v4530_v37 = vld [vmem:[#allocation9 + $0x60] ss:$8 sps:$4 sm:$0xff]  }
 0xc84   :  { %v1680_v49 = vpop.permute.xlu0 %1679 }
 0xc85   :  { %v4495_v52 = vadd.f32 %v1680_v49, %v1672_v20  ;;  %1847 = vrot.lane.b32.xlu0 %v1845_v6, %s3793_s6  ;;  %v4533_v6 = vld [vmem:[#allocation9 + $0x74] ss:$8 sps:$4 sm:$0xff]   ;;  %v4536_v20 = vld [vmem:[#allocation9 + $0x70] ss:$8 sps:$4 sm:$0xff]   ;;  %v1999_v49 = vrot.slane %v4488_v16, 2 }
 0xc87   :  { %3395 = vtanh.f32 %v4495_v52  ;;  %v3140_v53 = vmul.f32 -1.442695, %v1999_v49 }
 0xc88   :  { %3397 = vrcp.f32 %v1995_v55 }
 0xc8b   :  { %v2008_v56 = vpop.permute.xlu1 %2007 }
 0xc8c   :  { %v2009_v57 = vrot.slane %v2008_v56, 2 }
 0xc8e   :  { %3399 = vtanh.f32 %v2009_v57 }
 0xc8f   :  { %3401 = vpow2.f32 %v3130_v12 }
 0xc91   :  { %v3396_v58 = vpop.eup %3395 }
 0xc92   :  { %1685 = vrot.lane.b32.xlu1 %v3396_v58, %s3793_s6  ;;  %v3398_v59 = vpop.eup %3397 }
 0xc93   :  { %v2012_v50 = vmul.f32 %v3398_v59, %v4387_v1 }
 0xc98   :  { %v3400_v60 = vpop.eup %3399 }
 0xc99   :  { %v2013_v61 = vmul.f32 %v3400_v60, %v3398_v59  ;;  %v3402_v7 = vpop.eup %3401 }
 0xc9a   :  { %v1668_v18 = vadd.f32 1.0, %v3402_v7  ;;  %v4550_v7 = vld [vmem:[#allocation11 + $0x4] ss:$8 sps:$4 sm:$0xff]  }
 0xc9b   :  { %2015 = vrot.lane.b32.xlu0 %v2013_v61, %s3793_s6 }
 0xc9c   :  { %3403 = vrcp.f32 %v1668_v18  ;;  %v4554_v18 = vld [vmem:[#allocation11] ss:$8 sps:$4 sm:$0xff]  }
 0xca6   :  { %v3404_v32 = vpop.eup %3403 }
 0xcf7   :  { %v1848_v30 = vpop.permute.xlu0 %1847 }
 0xcf8   :  { %v4502_v31 = vadd.f32 %v1848_v30, %v1840_v2  ;;  %v4558_v2 = vld [vmem:[#allocation11 + $0x14] ss:$8 sps:$4 sm:$0xff]   ;;  %v4561_v30 = vld [vmem:[#allocation11 + $0x10] ss:$8 sps:$4 sm:$0xff]  }
 0xcfa   :  { %3405 = vtanh.f32 %v4502_v31 }
 0xd04   :  { %v3406_v33 = vpop.eup %3405  ;;  %v1686_v34 = vpop.permute.xlu1 %1685 }
 0xd05   :  { %v1688_v35 = vmul.f32 %v3404_v32, %v1686_v34  ;;  %1853 = vrot.lane.b32.xlu1 %v3406_v33, %s3793_s6  ;;  %v4564_v32 = vld [vmem:[#allocation11 + $0x24] ss:$8 sps:$4 sm:$0xff]   ;;  %v4567_v33 = vld [vmem:[#allocation11 + $0x20] ss:$8 sps:$4 sm:$0xff]   ;;  %v4570_v34 = vld [vmem:[#allocation11 + $0x34] ss:$8 sps:$4 sm:$0xff]  }
 0xd07   :  { %1858 = vrot.lane.b32.xlu0 %v1688_v35, %s3793_s6  ;;  %v4573_v35 = vld [vmem:[#allocation11 + $0x30] ss:$8 sps:$4 sm:$0xff]  }
 0xd0d   :  { %v2016_v42 = vpop.permute.xlu0 %2015 }
 0xd0e   :  { %v4508_v45 = vadd.f32 %v2016_v42, %v2012_v50  ;;  %v4576_v50 = vld [vmem:[#allocation11 + $0x44] ss:$8 sps:$4 sm:$0xff]   ;;  %v4579_v42 = vld [vmem:[#allocation11 + $0x40] ss:$8 sps:$4 sm:$0xff]  }
 0xd10   :  { %3407 = vtanh.f32 %v4508_v45 }
 0xd11   :  { %3409 = vpow2.f32 %v3135_v0  ;;  %v4585_v0 = vld [vmem:[#allocation11 + $0x50] ss:$8 sps:$4 sm:$0xff]  }
 0xd1a   :  { %v3408_v23 = vpop.eup %3407 }
 0xd1b   :  { %2021 = vrot.lane.b32.xlu1 %v3408_v23, %s3793_s6  ;;  %v3410_v43 = vpop.eup %3409  ;;  %v4582_v23 = vld [vmem:[#allocation11 + $0x54] ss:$8 sps:$4 sm:$0xff]  }
 0xd1c   :  { %v1836_v4 = vadd.f32 1.0, %v3410_v43  ;;  %v4588_v43 = vld [vmem:[#allocation11 + $0x64] ss:$8 sps:$4 sm:$0xff]  }
 0xd1e   :  { %3411 = vrcp.f32 %v1836_v4  ;;  %v4591_v4 = vld [vmem:[#allocation11 + $0x60] ss:$8 sps:$4 sm:$0xff]  }
 0xd1f   :  { %3413 = vpow2.f32 %v3140_v53 }
 0xd28   :  { %v3412_v51 = vpop.eup %3411 }
 0xd29   :  { %v3414_v55 = vpop.eup %3413 }
 0xd2a   :  { %v2004_v56 = vadd.f32 1.0, %v3414_v55 }
 0xd2c   :  { %3415 = vrcp.f32 %v2004_v56 }
 0xd36   :  { %v3416_v58 = vpop.eup %3415 }
 0xd77   :  { %v1854_v24 = vpop.permute.xlu1 %1853 }
 0xd78   :  { %v1856_v39 = vmul.f32 %v3412_v51, %v1854_v24  ;;  %v4594_v51 = vld [vmem:[#allocation11 + $0x74] ss:$8 sps:$4 sm:$0xff]   ;;  %v4597_v24 = vld [vmem:[#allocation11 + $0x70] ss:$8 sps:$4 sm:$0xff]  }
 0xd79   :  { %v1859_v41 = vpop.permute.xlu0 %1858 }
 0xd7a   :  { %v1861_v1 = vsel %vm771_vm1, %v1856_v39, %v1859_v41  ;;  %2026 = vrot.lane.b32.xlu0 %v1856_v39, %s3793_s6 }
 0xd7b   :  { %v1862_v36 = vpack.c.bf16 %v1861_v1, %v1861_v1 }
 0xd7d   :  { %1896 = vmatmul.mubr.bf16.vlgmr.msra.gmra.mrb[40].mxu1 %v1862_v36 }
 0xd7e   :  { %2032 = vmatpush1.bf16.msra.mxu1 %v4394_v8  ;;  %2063 = vmatprep.mubr.bf16.mxu1 %v4864_v5 }
 0xd7f   :  { %2033 = vmatprep.subr.bf16.mxu1 %v4398_v25 }
 0xd82   :  { %2034 = vmatpush1.bf16.msra.mxu1 %v4401_v9 }
 0xd83   :  { %2035 = vmatprep.subr.bf16.mxu1 %v4404_v11 }
 0xd86   :  { %2036 = vmatpush1.bf16.msra.mxu1 %v4407_v13 }
 0xd87   :  { %2037 = vmatprep.subr.bf16.mxu1 %v4410_v14 }
 0xd8a   :  { %2038 = vmatpush1.bf16.msra.mxu1 %v4413_v19 }
 0xd8b   :  { %2039 = vmatprep.subr.bf16.mxu1 %v4416_v47 }
 0xd8d   :  { %v2022_v57 = vpop.permute.xlu1 %2021 }
 0xd8e   :  { %2040 = vmatpush1.bf16.msra.mxu1 %v4419_v15  ;;  %v2024_v59 = vmul.f32 %v3416_v58, %v2022_v57 }
 0xd8f   :  { %2041 = vmatprep.subr.bf16.mxu1 %v4422_v22 }
 0xd90   :  { %v2180_v16 = vpack.c.bf16 %v2024_v59, %v2024_v59 }
 0xd92   :  { %2042 = vmatpush1.bf16.msra.mxu1 %v4425_v63 }
 0xd93   :  { %2043 = vmatprep.subr.bf16.mxu1 %v4527_v62 }
 0xd96   :  { %2044 = vmatpush1.bf16.msra.mxu1 %v4530_v37 }
 0xd97   :  { %2045 = vmatprep.subr.bf16.mxu1 %v4533_v6 }
 0xd9a   :  { %2046 = vmatpush1.bf16.msra.mxu1 %v4536_v20 }
 0xd9b   :  { %2184 = vmatprep.subr.bf16.mxu1 %v4325_v27 }
 0xdec   :  { %v2027_v60 = vpop.permute.xlu0 %2026 }
 0xded   :  { %v2029_v61 = vsel %vm771_vm1, %v2024_v59, %v2027_v60 }
 0xdee   :  { %v2030_v12 = vpack.c.bf16 %v2029_v61, %v2029_v61 }
 0xdf0   :  { %2064 = vmatmul.mubr.bf16.vlgmr.msra.gmra.mrb[44].mxu1 %v2030_v12 }
 0xdf1   :  { %2185 = vmatpush1.bf16.msra.mxu1 %v4435_v38  ;;  %2216 = vmatprep.mubr.bf16.mxu1 %v4864_v5 }
 0xdf2   :  { %2186 = vmatprep.subr.bf16.mxu1 %v4439_v40 }
 0xdf5   :  { %2187 = vmatpush1.bf16.msra.mxu1 %v4442_v29 }
 0xdf6   :  { %2188 = vmatprep.subr.bf16.mxu1 %v4445_v26 }
 0xdf9   :  { %2189 = vmatpush1.bf16.msra.mxu1 %v4448_v17 }
 0xdfa   :  { %2190 = vmatprep.subr.bf16.mxu1 %v4451_v10 }
 0xdfd   :  { %2191 = vmatpush1.bf16.msra.mxu1 %v4454_v28 }
 0xdfe   :  { %2353 = vmatprep.subr.bf16.mxu1 %v4550_v7 }
 0xe00   :  { %3145 = vmatmul.mubr.msk.bf16.vlgmr.msra.gmra.mrb[48].mxu1 %vm771_vm1, %v2180_v16 }
 0xe01   :  { %2354 = vmatpush1.bf16.msra.mxu1 %v4554_v18  ;;  %2385 = vmatprep.mubr.bf16.mxu1 %v4864_v5 }
 0xe02   :  { %2355 = vmatprep.subr.bf16.mxu1 %v4558_v2 }
 0xe05   :  { %2356 = vmatpush1.bf16.msra.mxu1 %v4561_v30 }
 0xe06   :  { %2357 = vmatprep.subr.bf16.mxu1 %v4564_v32 }
 0xe09   :  { %2358 = vmatpush1.bf16.msra.mxu1 %v4567_v33 }
 0xe0a   :  { %2359 = vmatprep.subr.bf16.mxu1 %v4570_v34 }
 0xe0d   :  { %2360 = vmatpush1.bf16.msra.mxu1 %v4573_v35 }
 0xe0e   :  { %2361 = vmatprep.subr.bf16.mxu1 %v4576_v50 }
 0xe11   :  { %2362 = vmatpush1.bf16.msra.mxu1 %v4579_v42 }
 0xe12   :  { %2363 = vmatprep.subr.bf16.mxu1 %v4582_v23 }
 0xe15   :  { %2364 = vmatpush1.bf16.msra.mxu1 %v4585_v0 }
 0xe16   :  { %2365 = vmatprep.subr.bf16.mxu1 %v4588_v43 }
 0xe19   :  { %2366 = vmatpush1.bf16.msra.mxu1 %v4591_v4 }
 0xe1a   :  { %2367 = vmatprep.subr.bf16.mxu1 %v4594_v51 }
 0xe1d   :  { %2368 = vmatpush1.bf16.msra.mxu1 %v4597_v24 }
 0xe1e   :  { %2521 = vmatprep.subr.bf16.mxu1 %v4475_v48 }
 0xe50   :  { %v1897_v39 = vpop.f32.mrb[40].mxu1 }
 0xe51   :  { %v1899_v41 = vpop.f32.mrb[41].mxu1  ;;  %v1898_v55 = vadd.f32 %v1897_v39, %v4273_v44 }
 0xe52   :  { %v1900_v1 = vadd.f32 %v1899_v41, %v4268_v46  ;;  %v1901_v36 = vpop.f32.mrb[42].mxu1 }
 0xe53   :  { %v1902_v49 = vpop.f32.mrb[43].mxu1  ;;  %v3136_v56 = vmul.f32 -1.442695, %v1898_v55 }
 0xe54   :  { %3417 = vtanh.f32 %v1900_v1 }
 0xe55   :  { %3419 = vpow2.f32 %v3136_v56 }
 0xe5e   :  { %v3418_v53 = vpop.eup %3417 }
 0xe5f   :  { %1919 = vrot.lane.b32.xlu1 %v3418_v53, %s3793_s6  ;;  %v3420_v57 = vpop.eup %3419 }
 0xe60   :  { %v1907_v58 = vadd.f32 1.0, %v3420_v57 }
 0xe62   :  { %3421 = vrcp.f32 %v1907_v58 }
 0xe6c   :  { %v3422_v41 = vpop.eup %3421 }
 0xec3   :  { %v2065_v59 = vpop.f32.mrb[44].mxu1 }
 0xec4   :  { %v2067_v60 = vpop.f32.mrb[45].mxu1 }
 0xec5   :  { %v4605_v61 = vadd.f32 %v2067_v60, %v4120_v21  ;;  %v2069_v12 = vpop.f32.mrb[46].mxu1 }
 0xec6   :  { %v2070_v16 = vpop.f32.mrb[47].mxu1  ;;  %v2179_v12 = vld [vmem:[#allocation2 + $0x14] sm:$0xf] }
 0xec7   :  { %3423 = vtanh.f32 %v4605_v61  ;;  %v2066_v16 = vadd.f32 %v2065_v59, %v4133_v3 }
 0xed1   :  { %v3424_v36 = vpop.eup %3423  ;;  %v1920_v49 = vpop.permute.xlu1 %1919 }
 0xed2   :  { %v1922_v53 = vmul.f32 %v3422_v41, %v1920_v49  ;;  %2087 = vrot.lane.b32.xlu0 %v3424_v36, %s3793_s6  ;;  %v3141_v49 = vmul.f32 -1.442695, %v2066_v16 }
 0xed3   :  { %v2218_v39 = vpop.f32.mrb[48].mxu1 }
 0xed4   :  { %v2220_v55 = vpop.f32.mrb[49].mxu1  ;;  %1924 = vrot.lane.b32.xlu1 %v1922_v53, %s3793_s6  ;;  %3425 = vpow2.f32 %v3141_v49 }
 0xed5   :  { %v2227_v56 = vcombine.low %v2218_v39, %v2220_v55  ;;  %v2222_v57 = vpop.f32.mrb[50].mxu1 }
 0xed6   :  { %v2223_v44 = vpop.f32.mrb[51].mxu1 }
 0xed7   :  { %v2234_v60 = vrot.slane %v2227_v56, %v4014_v54  ;;  %v1917_v56 = vmul.f32 %v3422_v41, %v4495_v52  ;;  %v3137_v52 = vmul.f32 -1.442695, %v1900_v1 }
 0xed9   :  { %v4611_v58 = vadd.f32 %v2234_v60, %v2179_v12 }
 0xedb   :  { %2252 = vrot.lane.b32.xlu0 %v4611_v58, %s3793_s6  ;;  %v3146_v53 = vmul.f32 -1.442695, %v4611_v58 }
 0xede   :  { %v3426_v36 = vpop.eup %3425 }
 0xedf   :  { %v2075_v21 = vadd.f32 1.0, %v3426_v36 }
 0xee1   :  { %3427 = vrcp.f32 %v2075_v21 }
 0xee2   :  { %3429 = vpow2.f32 %v3146_v53 }
 0xeeb   :  { %v3428_v39 = vpop.eup %3427 }
 0xeec   :  { %v3430_v12 = vpop.eup %3429 }
 0xeed   :  { %v2240_v59 = vadd.f32 1.0, %v3430_v12 }
 0xf44   :  { %v2088_v44 = vpop.permute.xlu0 %2087 }
 0xf45   :  { %v2090_v55 = vmul.f32 %v3428_v39, %v2088_v44 }
 0xf46   :  { %v1925_v57 = vpop.permute.xlu1 %1924 }
 0xf47   :  { %v4618_v60 = vadd.f32 %v1925_v57, %v1917_v56  ;;  %2092 = vrot.lane.b32.xlu1 %v2090_v55, %s3793_s6  ;;  %v2085_v56 = vmul.f32 %v3428_v39, %v4502_v31  ;;  %v3142_v39 = vmul.f32 -1.442695, %v4605_v61  ;;  %v2244_v61 = vrot.slane %v4611_v58, 2 }
 0xf49   :  { %3431 = vtanh.f32 %v4618_v60 }
 0xf4a   :  { %3433 = vrcp.f32 %v2240_v59 }
 0xf4d   :  { %v2253_v16 = vpop.permute.xlu0 %2252 }
 0xf4e   :  { %v2254_v49 = vrot.slane %v2253_v16, 2 }
 0xf50   :  { %3435 = vtanh.f32 %v2254_v49 }
 0xf51   :  { %3437 = vpow2.f32 %v3137_v52 }
 0xf53   :  { %v3432_v21 = vpop.eup %3431 }
 0xf54   :  { %1930 = vrot.lane.b32.xlu0 %v3432_v21, %s3793_s6  ;;  %v3434_v36 = vpop.eup %3433 }
 0xf55   :  { %v2257_v1 = vmul.f32 %v3434_v36, %v4508_v45 }
 0xf5a   :  { %v3436_v53 = vpop.eup %3435 }
 0xf5b   :  { %v2258_v44 = vmul.f32 %v3436_v53, %v3434_v36  ;;  %v3438_v41 = vpop.eup %3437 }
 0xf5c   :  { %v1913_v55 = vadd.f32 1.0, %v3438_v41 }
 0xf5d   :  { %2260 = vrot.lane.b32.xlu1 %v2258_v44, %s3793_s6 }
 0xf5e   :  { %3439 = vrcp.f32 %v1913_v55 }
 0xf68   :  { %v3440_v59 = vpop.eup %3439 }
 0xfb9   :  { %v2093_v57 = vpop.permute.xlu1 %2092 }
 0xfba   :  { %v4625_v12 = vadd.f32 %v2093_v57, %v2085_v56 }
 0xfbc   :  { %3441 = vtanh.f32 %v4625_v12 }
 0xfc6   :  { %v3442_v16 = vpop.eup %3441  ;;  %v1931_v49 = vpop.permute.xlu0 %1930 }
 0xfc7   :  { %v1933_v21 = vmul.f32 %v3440_v59, %v1931_v49  ;;  %2098 = vrot.lane.b32.xlu0 %v3442_v16, %s3793_s6  ;;  %v3147_v16 = vmul.f32 -1.442695, %v2244_v61 }
 0xfc9   :  { %2103 = vrot.lane.b32.xlu1 %v1933_v21, %s3793_s6 }
 0xfcf   :  { %v2261_v53 = vpop.permute.xlu1 %2260 }
 0xfd0   :  { %v4631_v44 = vadd.f32 %v2261_v53, %v2257_v1 }
 0xfd2   :  { %3443 = vtanh.f32 %v4631_v44 }
 0xfd3   :  { %3445 = vpow2.f32 %v3142_v39 }
 0xfdc   :  { %v3444_v31 = vpop.eup %3443 }
 0xfdd   :  { %2266 = vrot.lane.b32.xlu0 %v3444_v31, %s3793_s6  ;;  %v3446_v52 = vpop.eup %3445 }
 0xfde   :  { %v2081_v41 = vadd.f32 1.0, %v3446_v52 }
 0xfe0   :  { %3447 = vrcp.f32 %v2081_v41 }
 0xfe1   :  { %3449 = vpow2.f32 %v3147_v16 }
 0xfea   :  { %v3448_v55 = vpop.eup %3447 }
 0xfeb   :  { %v3450_v49 = vpop.eup %3449 }
 0xfec   :  { %v2249_v21 = vadd.f32 1.0, %v3450_v49 }
 0xfee   :  { %3451 = vrcp.f32 %v2249_v21 }
 0xff8   :  { %v3452_v53 = vpop.eup %3451 }
0x1039   :  { %v2099_v56 = vpop.permute.xlu0 %2098 }
0x103a   :  { %v2101_v57 = vmul.f32 %v3448_v55, %v2099_v56 }
0x103b   :  { %v2104_v59 = vpop.permute.xlu1 %2103 }
0x103c   :  { %v2106_v45 = vsel %vm771_vm1, %v2101_v57, %v2104_v59  ;;  %2271 = vrot.lane.b32.xlu1 %v2101_v57, %s3793_s6 }
0x103d   :  { %v2107_v36 = vpack.c.bf16 %v2106_v45, %v2106_v45 }
0x103f   :  { %2141 = vmatmul.mubr.bf16.vlgmr.msra.gmra.mrb[40].mxu0 %v2107_v36  ;;  %v4865_v36 = vld [vmem:[#allocation21_spill] sm:$0xff] }
0x1040   :  { %2277 = vmatpush1.bf16.msra.mxu0 %v4394_v8  ;;  %2308 = vmatprep.mubr.bf16.mxu0 %v4864_v5 }
0x1041   :  { %2278 = vmatprep.subr.bf16.mxu0 %v4398_v25 }
0x1044   :  { %2279 = vmatpush1.bf16.msra.mxu0 %v4401_v9 }
0x1045   :  { %2280 = vmatprep.subr.bf16.mxu0 %v4404_v11 }
0x1048   :  { %2281 = vmatpush1.bf16.msra.mxu0 %v4407_v13 }
0x1049   :  { %2282 = vmatprep.subr.bf16.mxu0 %v4410_v14 }
0x104c   :  { %2283 = vmatpush1.bf16.msra.mxu0 %v4413_v19 }
0x104d   :  { %2284 = vmatprep.subr.bf16.mxu0 %v4416_v47 }
0x104f   :  { %v2267_v1 = vpop.permute.xlu0 %2266 }
0x1050   :  { %2285 = vmatpush1.bf16.msra.mxu0 %v4419_v15  ;;  %v2269_v31 = vmul.f32 %v3452_v53, %v2267_v1 }
0x1051   :  { %2286 = vmatprep.subr.bf16.mxu0 %v4422_v22 }
0x1054   :  { %2287 = vmatpush1.bf16.msra.mxu0 %v4425_v63 }
0x1055   :  { %2288 = vmatprep.subr.bf16.mxu0 %v4527_v62 }
0x1058   :  { %2289 = vmatpush1.bf16.msra.mxu0 %v4530_v37 }
0x1059   :  { %2290 = vmatprep.subr.bf16.mxu0 %v4533_v6 }
0x105c   :  { %2291 = vmatpush1.bf16.msra.mxu0 %v4536_v20 }
0x105d   :  { %2429 = vmatprep.subr.bf16.mxu0 %v4325_v27  ;;  %v2425_v27 = vpack.c.bf16 %v2269_v31, %v2269_v31 }
0x10ae   :  { %v2272_v39 = vpop.permute.xlu1 %2271 }
0x10af   :  { %v2274_v52 = vsel %vm771_vm1, %v2269_v31, %v2272_v39  ;;  %v4866_v31 = vld [vmem:[#allocation20_spill] sm:$0xff] }
0x10b0   :  { %v2275_v41 = vpack.c.bf16 %v2274_v52, %v2274_v52 }
0x10b2   :  { %2309 = vmatmul.mubr.bf16.vlgmr.msra.gmra.mrb[44].mxu0 %v2275_v41 }
0x10b3   :  { %2430 = vmatpush1.bf16.msra.mxu0 %v4435_v38  ;;  %2461 = vmatprep.mubr.bf16.mxu0 %v4864_v5 }
0x10b4   :  { %2431 = vmatprep.subr.bf16.mxu0 %v4439_v40 }
0x10b7   :  { %2432 = vmatpush1.bf16.msra.mxu0 %v4442_v29 }
0x10b8   :  { %2433 = vmatprep.subr.bf16.mxu0 %v4445_v26 }
0x10bb   :  { %2434 = vmatpush1.bf16.msra.mxu0 %v4448_v17 }
0x10bc   :  { %2435 = vmatprep.subr.bf16.mxu0 %v4451_v10 }
0x10bf   :  { %2436 = vmatpush1.bf16.msra.mxu0 %v4454_v28 }
0x10c0   :  { %2598 = vmatprep.subr.bf16.mxu0 %v4550_v7 }
0x10c2   :  { %3152 = vmatmul.mubr.msk.bf16.vlgmr.msra.gmra.mrb[48].mxu0 %vm771_vm1, %v2425_v27 }
0x10c3   :  { %2599 = vmatpush1.bf16.msra.mxu0 %v4554_v18  ;;  %2630 = vmatprep.mubr.bf16.mxu0 %v4864_v5 }
0x10c4   :  { %2600 = vmatprep.subr.bf16.mxu0 %v4558_v2 }
0x10c7   :  { %2601 = vmatpush1.bf16.msra.mxu0 %v4561_v30 }
0x10c8   :  { %2602 = vmatprep.subr.bf16.mxu0 %v4564_v32 }
0x10cb   :  { %2603 = vmatpush1.bf16.msra.mxu0 %v4567_v33 }
0x10cc   :  { %2604 = vmatprep.subr.bf16.mxu0 %v4570_v34 }
0x10cf   :  { %2605 = vmatpush1.bf16.msra.mxu0 %v4573_v35 }
0x10d0   :  { %2606 = vmatprep.subr.bf16.mxu0 %v4576_v50 }
0x10d3   :  { %2607 = vmatpush1.bf16.msra.mxu0 %v4579_v42 }
0x10d4   :  { %2608 = vmatprep.subr.bf16.mxu0 %v4582_v23 }
0x10d7   :  { %2609 = vmatpush1.bf16.msra.mxu0 %v4585_v0 }
0x10d8   :  { %2610 = vmatprep.subr.bf16.mxu0 %v4588_v43 }
0x10db   :  { %2611 = vmatpush1.bf16.msra.mxu0 %v4591_v4 }
0x10dc   :  { %2612 = vmatprep.subr.bf16.mxu0 %v4594_v51 }
0x10df   :  { %2613 = vmatpush1.bf16.msra.mxu0 %v4597_v24 }
0x10e0   :  { %2766 = vmatprep.subr.bf16.mxu0 %v4475_v48 }
0x1112   :  { %v2142_v58 = vpop.f32.mrb[40].mxu0 }
0x1113   :  { %v2144_v55 = vpop.f32.mrb[41].mxu0  ;;  %v2143_v61 = vadd.f32 %v2142_v58, %v4865_v36 }
0x1114   :  { %v2145_v56 = vadd.f32 %v2144_v55, %v4268_v46  ;;  %v2146_v57 = vpop.f32.mrb[42].mxu0 }
0x1115   :  { %v2147_v59 = vpop.f32.mrb[43].mxu0  ;;  %v3143_v16 = vmul.f32 -1.442695, %v2143_v61 }
0x1116   :  { %3453 = vtanh.f32 %v2145_v56 }
0x1117   :  { %3455 = vpow2.f32 %v3143_v16 }
0x1120   :  { %v3454_v45 = vpop.eup %3453 }
0x1121   :  { %2164 = vrot.lane.b32.xlu0 %v3454_v45, %s3793_s6  ;;  %v3456_v49 = vpop.eup %3455 }
0x1122   :  { %v2152_v21 = vadd.f32 1.0, %v3456_v49 }
0x1124   :  { %3457 = vrcp.f32 %v2152_v21 }
0x112e   :  { %v3458_v41 = vpop.eup %3457 }
0x1185   :  { %v2310_v1 = vpop.f32.mrb[44].mxu0 }
0x1186   :  { %v2312_v53 = vpop.f32.mrb[45].mxu0 }
0x1187   :  { %v4688_v48 = vadd.f32 %v2312_v53, %v4866_v31  ;;  %v2314_v39 = vpop.f32.mrb[46].mxu0  ;;  %v2424_v53 = vld [vmem:[#allocation2 + $0x18] sm:$0xf] }
0x1188   :  { %v2315_v52 = vpop.f32.mrb[47].mxu0  ;;  %v2311_v39 = vadd.f32 %v2310_v1, %v4133_v3 }
0x1189   :  { %3459 = vtanh.f32 %v4688_v48 }
0x118a   :  { %v3148_v52 = vmul.f32 -1.442695, %v2311_v39 }
0x118c   :  { %3461 = vpow2.f32 %v3148_v52 }
0x1193   :  { %v3460_v27 = vpop.eup %3459  ;;  %v2165_v55 = vpop.permute.xlu0 %2164 }
0x1194   :  { %v2167_v57 = vmul.f32 %v3458_v41, %v2165_v55  ;;  %2332 = vrot.lane.b32.xlu1 %v3460_v27, %s3793_s6 }
0x1195   :  { %v2463_v58 = vpop.f32.mrb[48].mxu0 }
0x1196   :  { %v2465_v59 = vpop.f32.mrb[49].mxu0  ;;  %2169 = vrot.lane.b32.xlu0 %v2167_v57, %s3793_s6  ;;  %v3462_v27 = vpop.eup %3461 }
0x1197   :  { %v2472_v45 = vcombine.low %v2463_v58, %v2465_v59  ;;  %v2467_v61 = vpop.f32.mrb[50].mxu0  ;;  %v2320_v55 = vadd.f32 1.0, %v3462_v27 }
0x1198   :  { %v2468_v16 = vpop.f32.mrb[51].mxu0 }
0x1199   :  { %v2479_v49 = vrot.slane %v2472_v45, %v4014_v54  ;;  %3463 = vrcp.f32 %v2320_v55  ;;  %v2162_v45 = vmul.f32 %v3458_v41, %v4618_v60  ;;  %v3144_v60 = vmul.f32 -1.442695, %v2145_v56 }
0x119b   :  { %v4694_v21 = vadd.f32 %v2479_v49, %v2424_v53 }
0x119d   :  { %2497 = vrot.lane.b32.xlu1 %v4694_v21, %s3793_s6  ;;  %v3153_v57 = vmul.f32 -1.442695, %v4694_v21 }
0x119f   :  { %3465 = vpow2.f32 %v3153_v57 }
0x11a3   :  { %v3464_v58 = vpop.eup %3463 }
0x11a9   :  { %v3466_v53 = vpop.eup %3465 }
0x11aa   :  { %v2485_v1 = vadd.f32 1.0, %v3466_v53 }
0x1206   :  { %v2333_v59 = vpop.permute.xlu1 %2332 }
0x1207   :  { %v2335_v61 = vmul.f32 %v3464_v58, %v2333_v59 }
0x1208   :  { %v2170_v16 = vpop.permute.xlu0 %2169 }
0x1209   :  { %v4701_v49 = vadd.f32 %v2170_v16, %v2162_v45  ;;  %2337 = vrot.lane.b32.xlu0 %v2335_v61, %s3793_s6  ;;  %v2330_v45 = vmul.f32 %v3464_v58, %v4625_v12  ;;  %v3149_v58 = vmul.f32 -1.442695, %v4688_v48 }
0x120b   :  { %3467 = vtanh.f32 %v4701_v49 }
0x120c   :  { %3469 = vrcp.f32 %v2485_v1 }
0x120f   :  { %v2498_v39 = vpop.permute.xlu1 %2497 }
0x1210   :  { %v2499_v52 = vrot.slane %v2498_v39, 2 }
0x1212   :  { %3471 = vtanh.f32 %v2499_v52 }
0x1213   :  { %3473 = vpow2.f32 %v3144_v60 }
0x1215   :  { %v3468_v27 = vpop.eup %3467 }
0x1216   :  { %2175 = vrot.lane.b32.xlu1 %v3468_v27, %s3793_s6  ;;  %v3470_v55 = vpop.eup %3469 }
0x1217   :  { %v2502_v56 = vmul.f32 %v3470_v55, %v4631_v44 }
0x121c   :  { %v3472_v57 = vpop.eup %3471 }
0x121d   :  { %v2503_v59 = vmul.f32 %v3472_v57, %v3470_v55  ;;  %v3474_v41 = vpop.eup %3473 }
0x121e   :  { %v2158_v61 = vadd.f32 1.0, %v3474_v41 }
0x121f   :  { %2505 = vrot.lane.b32.xlu0 %v2503_v59, %s3793_s6 }
0x1220   :  { %3475 = vrcp.f32 %v2158_v61 }
0x122a   :  { %v3476_v1 = vpop.eup %3475 }
0x127b   :  { %v2338_v16 = vpop.permute.xlu0 %2337 }
0x127c   :  { %v4708_v53 = vadd.f32 %v2338_v16, %v2330_v45 }
0x127e   :  { %3477 = vtanh.f32 %v4708_v53 }
0x1288   :  { %v3478_v39 = vpop.eup %3477  ;;  %v2176_v52 = vpop.permute.xlu1 %2175 }
0x1289   :  { %v2178_v27 = vmul.f32 %v3476_v1, %v2176_v52  ;;  %2343 = vrot.lane.b32.xlu1 %v3478_v39, %s3793_s6  ;;  %v2669_v52 = vld [vmem:[#allocation2 + $0x1c] sm:$0xf] }
0x128b   :  { %2348 = vrot.lane.b32.xlu0 %v2178_v27, %s3793_s6 }
0x1291   :  { %v2506_v57 = vpop.permute.xlu0 %2505 }
0x1292   :  { %v4714_v59 = vadd.f32 %v2506_v57, %v2502_v56 }
0x1294   :  { %3479 = vtanh.f32 %v4714_v59 }
0x1295   :  { %3481 = vpow2.f32 %v3149_v58 }
0x129e   :  { %v3480_v12 = vpop.eup %3479 }
0x129f   :  { %2511 = vrot.lane.b32.xlu1 %v3480_v12, %s3793_s6  ;;  %v3482_v60 = vpop.eup %3481 }
0x12a0   :  { %v2326_v41 = vadd.f32 1.0, %v3482_v60 }
0x12a2   :  { %3483 = vrcp.f32 %v2326_v41 }
0x12ac   :  { %v3484_v61 = vpop.eup %3483 }
0x12fb   :  { %v2344_v45 = vpop.permute.xlu1 %2343 }
0x12fc   :  { %v2346_v16 = vmul.f32 %v3484_v61, %v2344_v45 }
0x12fd   :  { %v2349_v1 = vpop.permute.xlu0 %2348 }
0x12fe   :  { %v2351_v44 = vsel %vm771_vm1, %v2346_v16, %v2349_v1  ;;  %2516 = vrot.lane.b32.xlu0 %v2346_v16, %s3793_s6 }
0x12ff   :  { %v2352_v55 = vpack.c.bf16 %v2351_v44, %v2351_v44 }
0x1301   :  { %2386 = vmatmul.mubr.bf16.vlgmr.msra.gmra.mrb[52].mxu1 %v2352_v55 }
0x1302   :  { %2522 = vmatpush1.bf16.msra.mxu1 %v4394_v8  ;;  %2553 = vmatprep.mubr.bf16.mxu1 %v4864_v5  ;;  %v3607_v8 = vld [vmem:[#allocation8 + $0x4] ss:$8 sps:$4 sm:$0xff]  }
0x1303   :  { %2523 = vmatprep.subr.bf16.mxu1 %v4398_v25  ;;  %v2489_v25 = vrot.slane %v4694_v21, 2 }
0x1306   :  { %2524 = vmatpush1.bf16.msra.mxu1 %v4401_v9  ;;  %v3154_v9 = vmul.f32 -1.442695, %v2489_v25 }
0x1307   :  { %2525 = vmatprep.subr.bf16.mxu1 %v4404_v11 }
0x1308   :  { %3485 = vpow2.f32 %v3154_v9 }
0x130a   :  { %2526 = vmatpush1.bf16.msra.mxu1 %v4407_v13 }
0x130b   :  { %2527 = vmatprep.subr.bf16.mxu1 %v4410_v14 }
0x130e   :  { %2528 = vmatpush1.bf16.msra.mxu1 %v4413_v19 }
0x130f   :  { %2529 = vmatprep.subr.bf16.mxu1 %v4416_v47 }
0x1311   :  { %v2512_v14 = vpop.permute.xlu1 %2511 }
0x1312   :  { %2530 = vmatpush1.bf16.msra.mxu1 %v4419_v15  ;;  %v3486_v11 = vpop.eup %3485 }
0x1313   :  { %2531 = vmatprep.subr.bf16.mxu1 %v4422_v22  ;;  %v2494_v13 = vadd.f32 1.0, %v3486_v11 }
0x1315   :  { %3487 = vrcp.f32 %v2494_v13 }
0x1316   :  { %2532 = vmatpush1.bf16.msra.mxu1 %v4425_v63 }
0x1317   :  { %2533 = vmatprep.subr.bf16.mxu1 %v4527_v62 }
0x131a   :  { %2534 = vmatpush1.bf16.msra.mxu1 %v4530_v37 }
0x131b   :  { %2535 = vmatprep.subr.bf16.mxu1 %v4533_v6 }
0x131e   :  { %2536 = vmatpush1.bf16.msra.mxu1 %v4536_v20 }
0x131f   :  { %2674 = vmatprep.subr.bf16.mxu1 %v3607_v8  ;;  %v3488_v19 = vpop.eup %3487 }
0x1320   :  { %v2514_v47 = vmul.f32 %v3488_v19, %v2512_v14 }
0x1322   :  { %v2670_v48 = vpack.c.bf16 %v2514_v47, %v2514_v47 }
0x1370   :  { %v2517_v15 = vpop.permute.xlu0 %2516 }
0x1371   :  { %v2519_v22 = vsel %vm771_vm1, %v2514_v47, %v2517_v15 }
0x1372   :  { %v2520_v63 = vpack.c.bf16 %v2519_v22, %v2519_v22 }
0x1374   :  { %2554 = vmatmul.mubr.bf16.vlgmr.msra.gmra.mrb[56].mxu1 %v2520_v63 }
0x1375   :  { %2675 = vmatpush1.bf16.msra.mxu1 %v4435_v38  ;;  %2706 = vmatprep.mubr.bf16.mxu1 %v4864_v5 }
0x1376   :  { %2676 = vmatprep.subr.bf16.mxu1 %v4439_v40 }
0x1379   :  { %2677 = vmatpush1.bf16.msra.mxu1 %v4442_v29 }
0x137a   :  { %2678 = vmatprep.subr.bf16.mxu1 %v4445_v26 }
0x137d   :  { %2679 = vmatpush1.bf16.msra.mxu1 %v4448_v17 }
0x137e   :  { %2680 = vmatprep.subr.bf16.mxu1 %v4451_v10 }
0x1381   :  { %2681 = vmatpush1.bf16.msra.mxu1 %v4454_v28 }
0x1382   :  { %2843 = vmatprep.subr.bf16.mxu1 %v4550_v7 }
0x1384   :  { %3159 = vmatmul.mubr.msk.bf16.vlgmr.msra.gmra.mrb[60].mxu1 %vm771_vm1, %v2670_v48 }
0x1385   :  { %2844 = vmatpush1.bf16.msra.mxu1 %v4554_v18  ;;  %2875 = vmatprep.mubr.bf16.mxu1 %v4864_v5 }
0x1386   :  { %2845 = vmatprep.subr.bf16.mxu1 %v4558_v2 }
0x1389   :  { %2846 = vmatpush1.bf16.msra.mxu1 %v4561_v30 }
0x138a   :  { %2847 = vmatprep.subr.bf16.mxu1 %v4564_v32 }
0x138d   :  { %2848 = vmatpush1.bf16.msra.mxu1 %v4567_v33 }
0x138e   :  { %2849 = vmatprep.subr.bf16.mxu1 %v4570_v34 }
0x1391   :  { %2850 = vmatpush1.bf16.msra.mxu1 %v4573_v35 }
0x1392   :  { %2851 = vmatprep.subr.bf16.mxu1 %v4576_v50 }
0x1395   :  { %2852 = vmatpush1.bf16.msra.mxu1 %v4579_v42 }
0x1396   :  { %2853 = vmatprep.subr.bf16.mxu1 %v4582_v23 }
0x1399   :  { %2854 = vmatpush1.bf16.msra.mxu1 %v4585_v0 }
0x139a   :  { %2855 = vmatprep.subr.bf16.mxu1 %v4588_v43 }
0x139d   :  { %2856 = vmatpush1.bf16.msra.mxu1 %v4591_v4 }
0x139e   :  { %2857 = vmatprep.subr.bf16.mxu1 %v4594_v51 }
0x13a1   :  { %2858 = vmatpush1.bf16.msra.mxu1 %v4597_v24 }
0x13d4   :  { %v2387_v38 = vpop.f32.mrb[52].mxu1 }
0x13d5   :  { %v2389_v40 = vpop.f32.mrb[53].mxu1  ;;  %v2388_v28 = vadd.f32 %v2387_v38, %v4865_v36 }
0x13d6   :  { %v2390_v29 = vadd.f32 %v2389_v40, %v4268_v46  ;;  %v2391_v26 = vpop.f32.mrb[54].mxu1 }
0x13d7   :  { %v2392_v17 = vpop.f32.mrb[55].mxu1  ;;  %v3150_v7 = vmul.f32 -1.442695, %v2388_v28 }
0x13d8   :  { %3489 = vtanh.f32 %v2390_v29 }
0x13d9   :  { %3491 = vpow2.f32 %v3150_v7 }
0x13e2   :  { %v3490_v10 = vpop.eup %3489 }
0x13e3   :  { %2409 = vrot.lane.b32.xlu1 %v3490_v10, %s3793_s6  ;;  %v3492_v18 = vpop.eup %3491 }
0x13e4   :  { %v2397_v2 = vadd.f32 1.0, %v3492_v18 }
0x13e6   :  { %3493 = vrcp.f32 %v2397_v2 }
0x13f0   :  { %v3494_v50 = vpop.eup %3493 }
0x1447   :  { %v2555_v30 = vpop.f32.mrb[56].mxu1 }
0x1448   :  { %v2557_v32 = vpop.f32.mrb[57].mxu1  ;;  %v2556_v56 = vadd.f32 %v2555_v30, %v4133_v3 }
0x1449   :  { %v4769_v33 = vadd.f32 %v2557_v32, %v4866_v31  ;;  %v2559_v34 = vpop.f32.mrb[58].mxu1 }
0x144a   :  { %v2560_v35 = vpop.f32.mrb[59].mxu1  ;;  %v3155_v57 = vmul.f32 -1.442695, %v2556_v56 }
0x144b   :  { %3495 = vtanh.f32 %v4769_v33  ;;  %v3156_v28 = vmul.f32 -1.442695, %v4769_v33  ;;  %v3610_v33 = vld [vmem:[#allocation9 + $0x10] ss:$8 sps:$4 sm:$0xff]  }
0x144c   :  { %3497 = vpow2.f32 %v3155_v57 }
0x1455   :  { %v3496_v42 = vpop.eup %3495  ;;  %v2410_v23 = vpop.permute.xlu1 %2409 }
0x1456   :  { %v2412_v0 = vmul.f32 %v3494_v50, %v2410_v23  ;;  %2577 = vrot.lane.b32.xlu0 %v3496_v42, %s3793_s6  ;;  %v3498_v12 = vpop.eup %3497  ;;  %v3609_v42 = vld [vmem:[#allocation9 + $0x14] ss:$8 sps:$4 sm:$0xff]   ;;  %v3611_v23 = vld [vmem:[#allocation9 + $0x24] ss:$8 sps:$4 sm:$0xff]  }
0x1457   :  { %v2708_v43 = vpop.f32.mrb[60].mxu1  ;;  %v2565_v58 = vadd.f32 1.0, %v3498_v12 }
0x1458   :  { %v2710_v4 = vpop.f32.mrb[61].mxu1  ;;  %2414 = vrot.lane.b32.xlu1 %v2412_v0, %s3793_s6  ;;  %v3612_v0 = vld [vmem:[#allocation9 + $0x20] ss:$8 sps:$4 sm:$0xff]  }
0x1459   :  { %v2717_v51 = vcombine.low %v2708_v43, %v2710_v4  ;;  %v2712_v24 = vpop.f32.mrb[62].mxu1  ;;  %3499 = vrcp.f32 %v2565_v58  ;;  %v3613_v43 = vld [vmem:[#allocation9 + $0x34] ss:$8 sps:$4 sm:$0xff]   ;;  %v3614_v4 = vld [vmem:[#allocation9 + $0x30] ss:$8 sps:$4 sm:$0xff]  }
0x145a   :  { %v2713_v21 = vpop.f32.mrb[63].mxu1  ;;  %v3616_v24 = vld [vmem:[#allocation9 + $0x40] ss:$8 sps:$4 sm:$0xff]  }
0x145b   :  { %v2724_v39 = vrot.slane %v2717_v51, %v4014_v54  ;;  %v2407_v54 = vmul.f32 %v3494_v50, %v4701_v49  ;;  %v3151_v49 = vmul.f32 -1.442695, %v2390_v29  ;;  %v3608_v50 = vld [vmem:[#allocation9] ss:$8 sps:$4 sm:$0xff]   ;;  %v3615_v51 = vld [vmem:[#allocation9 + $0x44] ss:$8 sps:$4 sm:$0xff]  }
0x145c   :  { %v3617_v21 = vld [vmem:[#allocation9 + $0x54] ss:$8 sps:$4 sm:$0xff]  }
0x145d   :  { %v4775_v27 = vadd.f32 %v2724_v39, %v2669_v52  ;;  %v3618_v39 = vld [vmem:[#allocation9 + $0x50] ss:$8 sps:$4 sm:$0xff]  }
0x145f   :  { %2742 = vrot.lane.b32.xlu0 %v4775_v27, %s3793_s6  ;;  %v3160_v60 = vmul.f32 -1.442695, %v4775_v27 }
0x1461   :  { %3501 = vpow2.f32 %v3160_v60 }
0x1463   :  { %v3500_v41 = vpop.eup %3499 }
0x1464   :  { %v2575_v15 = vmul.f32 %v3500_v41, %v4708_v53 }
0x146b   :  { %v3502_v44 = vpop.eup %3501 }
0x146c   :  { %v2730_v55 = vadd.f32 1.0, %v3502_v44 }
0x14c8   :  { %v2578_v61 = vpop.permute.xlu0 %2577 }
0x14c9   :  { %v2580_v45 = vmul.f32 %v3500_v41, %v2578_v61 }
0x14ca   :  { %v2415_v16 = vpop.permute.xlu1 %2414 }
0x14cb   :  { %v4782_v1 = vadd.f32 %v2415_v16, %v2407_v54  ;;  %2582 = vrot.lane.b32.xlu1 %v2580_v45, %s3793_s6 }
0x14cd   :  { %3503 = vtanh.f32 %v4782_v1 }
0x14ce   :  { %3505 = vrcp.f32 %v2730_v55 }
0x14d1   :  { %v2743_v8 = vpop.permute.xlu0 %2742 }
0x14d2   :  { %v2744_v25 = vrot.slane %v2743_v8, 2 }
0x14d4   :  { %3507 = vtanh.f32 %v2744_v25 }
0x14d5   :  { %3509 = vpow2.f32 %v3151_v49 }
0x14d7   :  { %v3504_v9 = vpop.eup %3503 }
0x14d8   :  { %2420 = vrot.lane.b32.xlu0 %v3504_v9, %s3793_s6  ;;  %v3506_v11 = vpop.eup %3505 }
0x14d9   :  { %v2747_v29 = vmul.f32 %v3506_v11, %v4714_v59 }
0x14de   :  { %v3508_v13 = vpop.eup %3507 }
0x14df   :  { %v2748_v14 = vmul.f32 %v3508_v13, %v3506_v11  ;;  %v3510_v19 = vpop.eup %3509 }
0x14e0   :  { %v2403_v47 = vadd.f32 1.0, %v3510_v19 }
0x14e1   :  { %2750 = vrot.lane.b32.xlu1 %v2748_v14, %s3793_s6 }
0x14e2   :  { %3511 = vrcp.f32 %v2403_v47 }
0x14ec   :  { %v3512_v48 = vpop.eup %3511 }
0x153d   :  { %v2583_v22 = vpop.permute.xlu1 %2582 }
0x153e   :  { %v4789_v63 = vadd.f32 %v2583_v22, %v2575_v15 }
0x1540   :  { %3513 = vtanh.f32 %v4789_v63 }
0x154a   :  { %v3514_v38 = vpop.eup %3513  ;;  %v2421_v40 = vpop.permute.xlu0 %2420 }
0x154b   :  { %v2423_v26 = vmul.f32 %v3512_v48, %v2421_v40  ;;  %2588 = vrot.lane.b32.xlu0 %v3514_v38, %s3793_s6 }
0x154d   :  { %2593 = vrot.lane.b32.xlu1 %v2423_v26, %s3793_s6 }
0x1553   :  { %v2751_v17 = vpop.permute.xlu1 %2750 }
0x1554   :  { %v2753_v10 = vadd.f32 %v2751_v17, %v2747_v29 }
0x1556   :  { %3515 = vtanh.f32 %v2753_v10 }
0x1557   :  { %3517 = vpow2.f32 %v3156_v28 }
0x1560   :  { %v3516_v53 = vpop.eup %3515 }
0x1561   :  { %2756 = vrot.lane.b32.xlu0 %v3516_v53, %s3793_s6  ;;  %v3518_v7 = vpop.eup %3517 }
0x1562   :  { %v2571_v18 = vadd.f32 1.0, %v3518_v7 }
0x1564   :  { %3519 = vrcp.f32 %v2571_v18 }
0x156e   :  { %v3520_v2 = vpop.eup %3519 }
0x15bd   :  { %v2589_v30 = vpop.permute.xlu0 %2588 }
0x15be   :  { %v2591_v32 = vmul.f32 %v3520_v2, %v2589_v30 }
0x15bf   :  { %v2594_v34 = vpop.permute.xlu1 %2593 }
0x15c0   :  { %v2596_v35 = vsel %vm771_vm1, %v2591_v32, %v2594_v34  ;;  %2761 = vrot.lane.b32.xlu1 %v2591_v32, %s3793_s6 }
0x15c1   :  { %v2597_v59 = vpack.c.bf16 %v2596_v35, %v2596_v35 }
0x15c3   :  { %2631 = vmatmul.mubr.bf16.vlgmr.msra.gmra.mrb[52].mxu0 %v2597_v59 }
0x15c4   :  { %2767 = vmatpush1.bf16.msra.mxu0 %v3608_v50  ;;  %2798 = vmatprep.mubr.bf16.mxu0 %v4864_v5  ;;  %v2734_v5 = vrot.slane %v4775_v27, 2 }
0x15c5   :  { %2768 = vmatprep.subr.bf16.mxu0 %v3609_v42 }
0x15c6   :  { %v3161_v52 = vmul.f32 -1.442695, %v2734_v5 }
0x15c8   :  { %2769 = vmatpush1.bf16.msra.mxu0 %v3610_v33  ;;  %3521 = vpow2.f32 %v3161_v52 }
0x15c9   :  { %2770 = vmatprep.subr.bf16.mxu0 %v3611_v23 }
0x15cc   :  { %2771 = vmatpush1.bf16.msra.mxu0 %v3612_v0 }
0x15cd   :  { %2772 = vmatprep.subr.bf16.mxu0 %v3613_v43 }
0x15d0   :  { %2773 = vmatpush1.bf16.msra.mxu0 %v3614_v4 }
0x15d1   :  { %2774 = vmatprep.subr.bf16.mxu0 %v3615_v51 }
0x15d2   :  { %v3522_v56 = vpop.eup %3521 }
0x15d3   :  { %v2739_v57 = vadd.f32 1.0, %v3522_v56  ;;  %v2757_v12 = vpop.permute.xlu0 %2756 }
0x15d4   :  { %2775 = vmatpush1.bf16.msra.mxu0 %v3616_v24 }
0x15d5   :  { %2776 = vmatprep.subr.bf16.mxu0 %v3617_v21  ;;  %3523 = vrcp.f32 %v2739_v57 }
0x15d8   :  { %2777 = vmatpush1.bf16.msra.mxu0 %v3618_v39 }
0x15d9   :  { %2778 = vmatprep.subr.bf16.mxu0 %v4527_v62 }
0x15dc   :  { %2779 = vmatpush1.bf16.msra.mxu0 %v4530_v37 }
0x15dd   :  { %2780 = vmatprep.subr.bf16.mxu0 %v4533_v6 }
0x15df   :  { %v3524_v58 = vpop.eup %3523 }
0x15e0   :  { %2781 = vmatpush1.bf16.msra.mxu0 %v4536_v20  ;;  %v2759_v60 = vmul.f32 %v3524_v58, %v2757_v12 }
0x1632   :  { %v2762_v41 = vpop.permute.xlu1 %2761 }
0x1633   :  { %v2764_v61 = vsel %vm771_vm1, %v2759_v60, %v2762_v41 }
0x1634   :  { %v2765_v62 = vpack.c.bf16 %v2764_v61, %v2764_v61 }
0x1636   :  { %2799 = vmatmul.mubr.bf16.vlgmr.msra.gmra.mrb[56].mxu0 %v2765_v62 }
0x1696   :  { %v2632_v37 = vpop.f32.mrb[52].mxu0 }
0x1697   :  { %v2634_v45 = vpop.f32.mrb[53].mxu0  ;;  %v2633_v16 = vadd.f32 %v2632_v37, %v4865_v36  ;;  %v3269_v37 = vld [vmem:[#allocation12] sm:$0xff]  }
0x1698   :  { %v2635_v6 = vadd.f32 %v2634_v45, %v4268_v46  ;;  %v2636_v20 = vpop.f32.mrb[54].mxu0  ;;  %v3270_v45 = vld [vmem:[#allocation12 + $0x8] sm:$0xff]  }
0x1699   :  { %v2637_v54 = vpop.f32.mrb[55].mxu0  ;;  %v3157_v44 = vmul.f32 -1.442695, %v2633_v16 }
0x169a   :  { %3525 = vtanh.f32 %v2635_v6  ;;  %v3158_v7 = vmul.f32 -1.442695, %v2635_v6  ;;  %v3271_v6 = vld [vmem:[#allocation12 + $0x10] sm:$0xff]  }
0x169b   :  { %3527 = vpow2.f32 %v3157_v44 }
0x16a4   :  { %v3526_v27 = vpop.eup %3525 }
0x16a5   :  { %2654 = vrot.lane.b32.xlu0 %v3526_v27, %s3793_s6  ;;  %v3528_v55 = vpop.eup %3527  ;;  %v3272_v27 = vld [vmem:[#allocation12 + $0x18] sm:$0xff]  }
0x16a6   :  { %v2642_v8 = vadd.f32 1.0, %v3528_v55 }
0x16a8   :  { %3529 = vrcp.f32 %v2642_v8 }
0x16b2   :  { %v3530_v49 = vpop.eup %3529 }
0x16b3   :  { %v2652_v17 = vmul.f32 %v3530_v49, %v4782_v1 }
0x1709   :  { %v2800_v25 = vpop.f32.mrb[56].mxu0 }
0x170a   :  { %v2802_v9 = vpop.f32.mrb[57].mxu0  ;;  %v2801_v22 = vadd.f32 %v2800_v25, %v4133_v3 }
0x170b   :  { %v2803_v11 = vadd.f32 %v2802_v9, %v4866_v31  ;;  %v2804_v13 = vpop.f32.mrb[58].mxu0 }
0x170c   :  { %v2805_v14 = vpop.f32.mrb[59].mxu0  ;;  %v3162_v48 = vmul.f32 -1.442695, %v2801_v22 }
0x170d   :  { %3531 = vtanh.f32 %v2803_v11  ;;  %v3163_v50 = vmul.f32 -1.442695, %v2803_v11  ;;  %v3166_v14 = vld [vmem:[%s4851_s9] ss:$0 sm:$0xff]  ;;  %s3799_s9 = smov [#allocation14]  }
0x170e   :  { %3533 = vpow2.f32 %v3162_v48  ;;  %v4867_v48 = vlaneseq  ;;  %s3021_s4 = sshll.u32 %s3799_s9, 4  ;;  %s3022_s4 = int_to_ptr.vmem [resolvable:$true] %s3021_s4 }
0x170f   :  { %s3751_s28 = scalar_lea.vmem %s3022_s4, 32  ;;  %p3756_p7 = scmp.lt.s32.totalorder %s3022_s4, %s3022_s4 }
0x1710   :  { %p3752_p6 = scmp.ne.s32.totalorder %s3022_s4, %s3751_s28  ;;  %p3757_p8 = scmp.lt.s32.totalorder %s3751_s28, %s3751_s28 }
0x1712   :  { %p3758_p9 = por %p3757_p8, %p3756_p7 }
0x1714   :  { %p3759_p10 = pnand %p3758_p9, %p3752_p6 }
0x1717   :  { %v3532_v19 = vpop.eup %3531  ;;  %v2655_v47 = vpop.permute.xlu0 %2654 }
0x1718   :  { %v2657_v15 = vmul.f32 %v3530_v49, %v2655_v47  ;;  %2822 = vrot.lane.b32.xlu1 %v3532_v19, %s3793_s6  ;;  %v3534_v38 = vpop.eup %3533 }
0x1719   :  { %v2810_v40 = vadd.f32 1.0, %v3534_v38  ;;  %v2999_v38 = vand.u32 127, %v4867_v48 }
0x171a   :  { %2659 = vrot.lane.b32.xlu0 %v2657_v15, %s3793_s6 }
0x171b   :  { %3535 = vrcp.f32 %v2810_v40  ;;  %vm3000_vm4 = vcmp.lt.s32.totalorder %v2999_v38, 5 }
0x1725   :  { %v3536_v31 = vpop.eup %3535 }
0x1726   :  { %v2820_v2 = vmul.f32 %v3536_v31, %v4789_v63 }
0x178a   :  { %v2823_v26 = vpop.permute.xlu1 %2822 }
0x178b   :  { %v2825_v29 = vmul.f32 %v3536_v31, %v2823_v26 }
0x178c   :  { %v2660_v10 = vpop.permute.xlu0 %2659 }
0x178d   :  { %v2662_v53 = vadd.f32 %v2660_v10, %v2652_v17  ;;  %2827 = vrot.lane.b32.xlu1 %v2825_v29, %s3793_s6 }
0x178f   :  { %3537 = vtanh.f32 %v2662_v53 }
0x1790   :  { %3539 = vpow2.f32 %v3158_v7 }
0x1799   :  { %v3538_v28 = vpop.eup %3537 }
0x179a   :  { %2665 = vrot.lane.b32.xlu0 %v3538_v28, %s3793_s6  ;;  %v3540_v3 = vpop.eup %3539 }
0x179b   :  { %v2648_v18 = vadd.f32 1.0, %v3540_v3 }
0x179d   :  { %3541 = vrcp.f32 %v2648_v18 }
0x17a7   :  { %v3542_v34 = vpop.eup %3541 }
0x17ff   :  { %v2828_v30 = vpop.permute.xlu1 %2827 }
0x1800   :  { %v2830_v32 = vadd.f32 %v2828_v30, %v2820_v2 }
0x1802   :  { %3543 = vtanh.f32 %v2830_v32 }
0x1803   :  { %3545 = vpow2.f32 %v3163_v50 }
0x180c   :  { %v3544_v1 = vpop.eup %3543  ;;  %v2666_v35 = vpop.permute.xlu0 %2665 }
0x180d   :  { %v2668_v59 = vmul.f32 %v3542_v34, %v2666_v35  ;;  %2833 = vrot.lane.b32.xlu1 %v3544_v1, %s3793_s6  ;;  %v3546_v42 = vpop.eup %3545 }
0x180e   :  { %v2816_v33 = vadd.f32 1.0, %v3546_v42 }
0x180f   :  { %2838 = vrot.lane.b32.xlu0 %v2668_v59, %s3793_s6 }
0x1810   :  { %3547 = vrcp.f32 %v2816_v33 }
0x181a   :  { %v3548_v23 = vpop.eup %3547 }
0x187f   :  { %v2834_v0 = vpop.permute.xlu1 %2833 }
0x1880   :  { %v2836_v63 = vmul.f32 %v3548_v23, %v2834_v0 }
0x1881   :  { %v2839_v43 = vpop.permute.xlu0 %2838 }
0x1882   :  { %v2841_v4 = vsel %vm771_vm1, %v2836_v63, %v2839_v43 }
0x1883   :  { %v2842_v51 = vpack.c.bf16 %v2841_v4, %v2841_v4 }
0x1885   :  { %2876 = vmatmul.mubr.bf16.vlgmr.msra.gmra.mrb[64].mxu1 %v2842_v51 }
0x1958   :  { %v2877_v24 = vpop.f32.mrb[64].mxu1 }
0x1959   :  { %v2879_v21 = vpop.f32.mrb[65].mxu1  ;;  %v2878_v57 = vadd.f32 %v2877_v24, %v4865_v36 }
0x195a   :  { %v2880_v39 = vadd.f32 %v2879_v21, %v4268_v46  ;;  %v2881_v5 = vpop.f32.mrb[66].mxu1  ;;  %v3797_v46 = vmov 0.0  }
0x195b   :  { %v2882_v52 = vpop.f32.mrb[67].mxu1  ;;  %v3164_v12 = vmul.f32 -1.442695, %v2878_v57  ;;  %3177 = vmatprep.subr.bf16.mxu0 %v3797_v46  ;;  %3185 = vmatprep.mubr.msk.bf16.mxu0 %vm3798_vm3, %v3797_v46 }
0x195c   :  { %3549 = vtanh.f32 %v2880_v39  ;;  %3178 = vmatpush3.bf16.msra.mxu0 %v3269_v37  ;;  %v3165_v44 = vmul.f32 -1.442695, %v2880_v39 }
0x195d   :  { %3551 = vpow2.f32 %v3164_v12  ;;  %3179 = vmatprep.subr.bf16.mxu0 %v3797_v46 }
0x1960   :  { %3180 = vmatpush3.bf16.msra.mxu0 %v3270_v45 }
0x1961   :  { %3181 = vmatprep.subr.bf16.mxu0 %v3797_v46 }
0x1964   :  { %3182 = vmatpush3.bf16.msra.mxu0 %v3271_v6 }
0x1965   :  { %3183 = vmatprep.subr.bf16.mxu0 %v3797_v46 }
0x1966   :  { %v3550_v56 = vpop.eup %3549 }
0x1967   :  { %2899 = vrot.lane.b32.xlu1 %v3550_v56, %s3793_s6  ;;  %v3552_v58 = vpop.eup %3551 }
0x1968   :  { %v2887_v60 = vadd.f32 1.0, %v3552_v58  ;;  %3184 = vmatpush3.bf16.msra.mxu0 %v3272_v27 }
0x196a   :  { %3553 = vrcp.f32 %v2887_v60 }
0x1974   :  { %v3554_v41 = vpop.eup %3553 }
0x1975   :  { %v2897_v36 = vmul.f32 %v3554_v41, %v2662_v53 }
0x19d9   :  { %v2900_v61 = vpop.permute.xlu1 %2899 }
0x19da   :  { %v2902_v62 = vmul.f32 %v3554_v41, %v2900_v61 }
0x19dc   :  { %2904 = vrot.lane.b32.xlu0 %v2902_v62, %s3793_s6 }
0x1a4e   :  { %v2905_v20 = vpop.permute.xlu0 %2904 }
0x1a4f   :  { %v2907_v54 = vadd.f32 %v2905_v20, %v2897_v36 }
0x1a51   :  { %3555 = vtanh.f32 %v2907_v54 }
0x1a52   :  { %3557 = vpow2.f32 %v3165_v44 }
0x1a5b   :  { %v3556_v16 = vpop.eup %3555 }
0x1a5c   :  { %2910 = vrot.lane.b32.xlu1 %v3556_v16, %s3793_s6  ;;  %v3558_v55 = vpop.eup %3557 }
0x1a5d   :  { %v2893_v8 = vadd.f32 1.0, %v3558_v55 }
0x1a5f   :  { %3559 = vrcp.f32 %v2893_v8 }
0x1a69   :  { %v3560_v25 = vpop.eup %3559 }
0x1ace   :  { %v2911_v9 = vpop.permute.xlu1 %2910 }
0x1acf   :  { %v2913_v11 = vmul.f32 %v3560_v25, %v2911_v9 }
0x1ad1   :  { %v2914_v13 = vpack.c.bf16 %v2913_v11, %v2913_v11 }
0x1ad3   :  { %3186 = vmatmul.mubr.msk.bf16.vlgmr.msra.gmra.mrb[60].mxu0 %vm771_vm1, %v2914_v13 }
0x1ba6   :  { %v2991_v49 = vpop.f32.mrb[60].mxu0 }
0x1ba7   :  { %v2992_v19 = vadd.f32 %v3166_v14, %v2991_v49  ;;  %v3187_v47 = vpop.f32.mrb[61].mxu0 }
0x1ba8   :  { %v2994_v15 = vpop.f32.mrb[62].mxu0 }
0x1ba9   :  { %3561 = vtanh.f32 %v2992_v19  ;;  %v3188_v22 = vpop.f32.mrb[63].mxu0 }
0x1bb3   :  { %v3562_v40 = vpop.eup %3561 }
0x1bb4   :  { %v3001_v31 = vsel %vm3000_vm4, %v3562_v40, -1e+30 }
0x1bb5   :  { %v3003_v26 = vsel %vm3002_vm5, %v3001_v31, -inf }
0x1bb6   :  { %3004 = vmax.xlane.f32.xlu0 %v3003_v26 }
0x1c43   :  { %v3005_v29 = vpop.xlane.xlu0 %3004 }
0x1c44   :  { %v3006_v17 = vsub.f32 %v3001_v31, %v3005_v29 }
0x1c46   :  { %v3007_v10 = vmul.f32 1.442695, %v3006_v17 }
0x1c48   :  { %3563 = vpow2.f32 %v3007_v10 }
0x1c52   :  { %v3564_v53 = vpop.eup %3563 }
0x1c53   :  { %v3009_v28 = vsel %vm3002_vm5, %v3564_v53, 0.0 }
0x1c54   :  { %3010 = vadd.xlane.f32.xlu1 %v3009_v28 }
0x1ce1   :  { %v3011_v7 = vpop.xlane.xlu1 %3010 }
0x1ce2   :  { %3565 = vrcp.f32 %v3011_v7 }
0x1cec   :  { %v3566_v3 = vpop.eup %3565 }
0x1ced   :  { %v3013_v18 = vmul.f32 %v3566_v3, %v3564_v53 }
0x1cef   :  { %3014 = vst [vmem:[#allocation14] sm:$0x3] %v3013_v18 }
0x1cf0   :  { %3762 = shalt.err (!%p3759_p10)
}
0x1cf1   :  { %s3763_s15 = scalar_lea.hbm %s4852_s10, 32 }
0x1cf2   :  { %p3764_p11 = scmp.ne.s32.totalorder %s4852_s10, %s3763_s15  ;;  %p3767_p12 = scmp.lt.u32.totalorder %s3763_s15, %s4852_s10 }
0x1cf4   :  { %p3769_p13 = pnand %p3767_p12, %p3764_p11 }
0x1cf6   :  { %3772 = shalt.err (!%p3769_p13)
}
0x1cf7   :  { %3024 = dma.vmem_to_hbm [thread:$0]  %s3022_s4, 32, %s4852_s10, [#allocation5]  }
0x1cf8   :  { %3781 = dma.done.wait [#allocation5], 32  }
0x1cf9   :  { %3782 = vsyncadd [#allocation5], 4294967264 }
0x1cfa   :  { %3028 = vsyncpa [#allocation4], 1 }
0x1cfb   :  { %3029 = vsyncpa [#allocation7], 1 }
0x1cfc   :  { %3030 = vsyncpa [#allocation10], 1 }
0x1cfd   :  { %3031 = vsyncpa [#allocation13], 1 }
0x1cfe   :  { %3032 = vsyncpa [#allocation5], 1 }

</bundles_post_ra>
